<compile_context>
chip_gen: v7x
topology: tpu7x:2x2x1
jax: 0.10.0
libtpu: 0.0.40
codegen_flags: <defaults>
</compile_context>

<pallas_src>
from functools import partial

import jax
import jax.numpy as jnp
from jax.experimental import pallas as pl
from jax.experimental.pallas import tpu as pltpu

EPS = 1e-6


def _layernorm(x, g, b):
    # nn.LayerNorm semantics over the channel (last) dim, eps inside the sqrt.
    mu = jnp.mean(x, axis=-1, keepdims=True)
    var = jnp.mean(jnp.square(x - mu), axis=-1, keepdims=True)
    return (x - mu) * jax.lax.rsqrt(var + EPS) * g + b


# ------------------------------------------------------------------
# Stem: Conv2d(Cin, dim, kernel=4, stride=4) as a patchify matmul + channel LayerNorm.
# Each program receives the 4 image rows that make up one row of 4x4 patches (a free reshape
# of the NHWC input) and contracts them against the matching slices of the stem weight.
# ------------------------------------------------------------------
def _stem_kernel(x_ref, w_ref, b_ref, g_ref, beta_ref, o_ref):
    _, _, cin4 = x_ref.shape                                   # (4, Ws, 4*Cin)
    acc = jnp.dot(x_ref[0].astype(jnp.bfloat16), w_ref[0:cin4, :],
                  preferred_element_type=jnp.float32)
    for ky in range(1, 4):
        acc += jnp.dot(x_ref[ky].astype(jnp.bfloat16),
                       w_ref[ky * cin4:(ky + 1) * cin4, :],
                       preferred_element_type=jnp.float32)
    y = acc + b_ref[...]
    o_ref[...] = _layernorm(y, g_ref[...], beta_ref[...])


def stem(x_rows, w, b, g, beta, *, ws):
    nh, _, k4 = x_rows.shape                                   # (N*H, Ws, 4*Cin)
    n_prog = nh // 4                                           # one program per (n, hs)
    c = w.shape[1]
    return pl.pallas_call(
        _stem_kernel,
        out_shape=jax.ShapeDtypeStruct((n_prog * ws, c), jnp.float32),
        grid=(n_prog,),
        in_specs=[
            pl.BlockSpec((4, ws, k4), lambda i: (i, 0, 0)),
            pl.BlockSpec(w.shape, lambda i: (0, 0)),           # VMEM-resident weights
            pl.BlockSpec((1, c), lambda i: (0, 0)),
            pl.BlockSpec((1, c), lambda i: (0, 0)),
            pl.BlockSpec((1, c), lambda i: (0, 0)),
        ],
        out_specs=pl.BlockSpec((ws, c), lambda i: (i, 0)),     # lane-dense (Ws, 128) stores
        compiler_params=pltpu.CompilerParams(
            dimension_semantics=("parallel",),
            vmem_limit_bytes=32 * 1024 * 1024,
        ),
    )(x_rows, w, b, g, beta)


# ------------------------------------------------------------------
# Fused ConvNeXt block + global average pool (one program per image):
#   dw7x7(pad=3, groups=C) -> LN -> Linear(C,4C) -> GELU -> Linear(4C,C) -> gamma*. -> +x
#   -> AdaptiveAvgPool2d(1)
# Everything stays in VMEM; only the pooled [1, C] row per image is written to HBM.
# ------------------------------------------------------------------
def _block_pool_kernel(x_ref, dw_w_ref, dw_b_ref, lng_ref, lnb_ref,
                       w1_ref, b1_ref, w2_ref, b2_ref, gam_ref,
                       o_ref, xpad_ref, col_ref):
    _, hs, ws, c = x_ref.shape
    x = x_ref[0]                                               # (Hs, Ws, C) f32

    # Halo handled in VMEM (no HBM jnp.pad pass): x sits at columns [8, 8+Ws) so the store
    # below lands on a full sublane tile; columns [8+dx, 8+dx+Ws) give the dx-shifted view.
    xpad_ref[...] = jnp.zeros(xpad_ref.shape, jnp.float32)
    xpad_ref[:, 8:8 + ws, :] = x

    # Pre-stage the 7 column-shifted views once (7 shifted reads instead of 49 unaligned
    # sublane slices in the tap loop); rows give a zeroed 3-row halo in H.
    col_ref[:, 0:3, :, :] = jnp.zeros((7, 3, ws, c), jnp.float32)
    col_ref[:, hs + 3:hs + 6, :, :] = jnp.zeros((7, 3, ws, c), jnp.float32)
    for kx in range(7):
        off = 8 + kx - 3
        col_ref[kx, 3:3 + hs, :, :] = xpad_ref[:, off:off + ws, :]

    # Depthwise 7x7: 49 taps, aligned leading-dim slices only (pure VPU FMAs).
    acc = jnp.zeros((hs, ws, c), jnp.float32)
    for ky in range(7):
        for kx in range(7):
            acc = acc + col_ref[kx, ky:ky + hs, :, :] * dw_w_ref[ky * 7 + kx, :]
    dw = acc + dw_b_ref[...]

    # LN -> MLP -> layer-scale -> residual, all resident in VMEM; bf16 MXU / f32 accumulate.
    m = hs * ws
    x_rows = x.reshape(m, c)
    xn = _layernorm(dw.reshape(m, c), lng_ref[...], lnb_ref[...])
    h = jnp.dot(xn.astype(jnp.bfloat16), w1_ref[...],
                preferred_element_type=jnp.float32) + b1_ref[...]
    # TODO(synk): PyTorch ConvNeXt uses exact-erf nn.GELU(); tanh approximation used here.
    h = jax.nn.gelu(h, approximate=True)
    y = jnp.dot(h.astype(jnp.bfloat16), w2_ref[...],
                preferred_element_type=jnp.float32) + b2_ref[...]
    blk = x_rows + gam_ref[...] * y

    # Fused AdaptiveAvgPool2d(1): only the pooled row leaves the kernel.
    o_ref[0] = jnp.mean(blk, axis=0, keepdims=True)


def block_and_pool(feat4, dw_w, dw_b, lng, lnb, w1, b1, w2, b2, gam):
    n, hs, ws, c = feat4.shape
    hd = w1.shape[1]

    def wconst(shape):
        return pl.BlockSpec(shape, lambda b, _s=len(shape): (0,) * _s)

    return pl.pallas_call(
        _block_pool_kernel,
        out_shape=jax.ShapeDtypeStruct((n, 1, c), jnp.float32),
        grid=(n,),
        in_specs=[
            pl.BlockSpec((1, hs, ws, c), lambda b: (b, 0, 0, 0)),
            wconst((49, c)), wconst((1, c)), wconst((1, c)), wconst((1, c)),
            wconst((c, hd)), wconst((1, hd)), wconst((hd, c)),
            wconst((1, c)), wconst((1, c)),
        ],
        out_specs=pl.BlockSpec((1, 1, c), lambda b: (b, 0, 0)),
        scratch_shapes=[
            pltpu.VMEM((hs, ws + 16, c), jnp.float32),         # W-padded staging buffer
            pltpu.VMEM((7, hs + 6, ws, c), jnp.float32),       # 7 pre-shifted column views
        ],
        compiler_params=pltpu.CompilerParams(
            dimension_semantics=("parallel",),                 # images split across TCs (v7x)
            vmem_limit_bytes=32 * 1024 * 1024,
        ),
    )(feat4, dw_w, dw_b, lng, lnb, w1, b1, w2, b2, gam)


# ------------------------------------------------------------------
# Classifier head on the pooled features: LayerNorm(C) -> Conv2d(C, num_classes, 1) -> Flatten.
# Logit lane dim is padded to 128 for lane-dense stores; wrapper slices back.
# ------------------------------------------------------------------
def _head_kernel(p_ref, g_ref, b_ref, w_ref, bias_ref, o_ref):
    xn = _layernorm(p_ref[...], g_ref[...], b_ref[...])
    o_ref[...] = jnp.dot(xn.astype(jnp.bfloat16), w_ref[...],
                         preferred_element_type=jnp.float32) + bias_ref[...]


def head(pooled, g, b, w, bias):
    n, c = pooled.shape
    ncp = w.shape[1]

    def full2(shape):
        return pl.BlockSpec(shape, lambda i: (0, 0))

    return pl.pallas_call(
        _head_kernel,
        out_shape=jax.ShapeDtypeStruct((n, ncp), jnp.float32),
        grid=(1,),
        in_specs=[full2((n, c)), full2((1, c)), full2((1, c)),
                  full2((c, ncp)), full2((1, ncp))],
        out_specs=full2((n, ncp)),
        compiler_params=pltpu.CompilerParams(dimension_semantics=("arbitrary",)),
    )(pooled, g, b, w, bias)


# ------------------------------------------------------------------
# Full forward (PyTorch-style NCHW at the boundary).
# ------------------------------------------------------------------
def convnext_forward(x_nchw, p, *, num_classes):
    n, cin, hh, ww = x_nchw.shape
    hs, ws = hh // 4, ww // 4
    dim = p["stem_w"].shape[1]

    # NCHW -> NHWC so channels sit on the 128-lane axis (one small pass over the raw image).
    x = jnp.transpose(x_nchw, (0, 2, 3, 1)).astype(jnp.float32)
    # Free (metadata-only) reshape feeding the stem's BlockSpec: no HBM `patches` transpose.
    x_rows = x.reshape(n * hh, ws, 4 * cin)

    feat = stem(x_rows, p["stem_w"], p["stem_b"], p["stem_ln_g"], p["stem_ln_b"], ws=ws)
    feat4 = feat.reshape(n, hs, ws, dim)                       # free reshape

    pooled = block_and_pool(
        feat4, p["dw_w"], p["dw_b"], p["blk_ln_g"], p["blk_ln_b"],
        p["blk_w1"], p["blk_b1"], p["blk_w2"], p["blk_b2"], p["blk_gamma"],
    ).reshape(n, dim)

    logits = head(pooled, p["head_ln_g"], p["head_ln_b"], p["head_w"], p["head_b"])
    return logits[:, :num_classes]                             # Flatten + drop padded lanes


# ------------------------------------------------------------------
# Parameters + pure-JAX reference.
# ------------------------------------------------------------------
def init_params(key, cin=4, dim=128, hidden=512, num_classes=10, nc_pad=128):
    ks = jax.random.split(key, 5)
    f32, bf16 = jnp.float32, jnp.bfloat16
    head_w = 0.02 * jax.random.normal(ks[4], (dim, num_classes), f32)
    head_w = jnp.pad(head_w, ((0, 0), (0, nc_pad - num_classes)))    # lane-dense logits
    return {
        "stem_w": (0.02 * jax.random.normal(ks[0], (4 * 4 * cin, dim), f32)).astype(bf16),
        "stem_b": jnp.zeros((1, dim), f32),
        "stem_ln_g": jnp.ones((1, dim), f32),
        "stem_ln_b": jnp.zeros((1, dim), f32),
        "dw_w": 0.02 * jax.random.normal(ks[1], (49, dim), f32),
        "dw_b": jnp.zeros((1, dim), f32),
        "blk_ln_g": jnp.ones((1, dim), f32),
        "blk_ln_b": jnp.zeros((1, dim), f32),
        "blk_w1": (0.02 * jax.random.normal(ks[2], (dim, hidden), f32)).astype(bf16),
        "blk_b1": jnp.zeros((1, hidden), f32),
        "blk_w2": (0.02 * jax.random.normal(ks[3], (hidden, dim), f32)).astype(bf16),
        "blk_b2": jnp.zeros((1, dim), f32),
        "blk_gamma": 1e-6 * jnp.ones((1, dim), f32),
        "head_ln_g": jnp.ones((1, dim), f32),
        "head_ln_b": jnp.zeros((1, dim), f32),
        "head_w": head_w.astype(bf16),
        "head_b": jnp.zeros((1, nc_pad), f32),
    }


def convnext_reference(x_nchw, p, num_classes):
    f32 = jnp.float32
    n, cin, hh, ww = x_nchw.shape
    hs, ws = hh // 4, ww // 4
    dim = p["stem_w"].shape[1]
    x = jnp.transpose(x_nchw, (0, 2, 3, 1)).astype(f32)

    patches = (x.reshape(n, hs, 4, ws, 4, cin).transpose(0, 1, 3, 2, 4, 5)
               .reshape(n * hs * ws, 4 * 4 * cin))
    y = patches @ p["stem_w"].astype(f32) + p["stem_b"]
    feat = _layernorm(y, p["stem_ln_g"], p["stem_ln_b"]).reshape(n, hs, ws, dim)

    xp = jnp.pad(feat, ((0, 0), (3, 3), (3, 3), (0, 0)))
    dw = jnp.zeros_like(feat)
    for ky in range(7):
        for kx in range(7):
            dw = dw + xp[:, ky:ky + hs, kx:kx + ws, :] * p["dw_w"][ky * 7 + kx]
    dw = dw + p["dw_b"]

    xn = _layernorm(dw.reshape(-1, dim), p["blk_ln_g"], p["blk_ln_b"])
    h = jax.nn.gelu(xn @ p["blk_w1"].astype(f32) + p["blk_b1"], approximate=True)
    yy = h @ p["blk_w2"].astype(f32) + p["blk_b2"]
    blk = feat.reshape(-1, dim) + p["blk_gamma"] * yy

    pooled = blk.reshape(n, hs * ws, dim).mean(axis=1)
    pn = _layernorm(pooled, p["head_ln_g"], p["head_ln_b"])
    logits = pn @ p["head_w"].astype(f32) + p["head_b"]
    return logits[:, :num_classes]


if __name__ == "__main__":
    key = jax.random.PRNGKey(0)
    k_x, k_p = jax.random.split(key)

    N, CIN, H, W = 2, 4, 32, 32          # NCHW input; 4x4/4 stem -> 8x8x128 feature map
    NUM_CLASSES = 10
    x = jax.random.normal(k_x, (N, CIN, H, W), jnp.float32)
    params = init_params(k_p, cin=CIN, dim=128, hidden=512, num_classes=NUM_CLASSES)

    fwd = jax.jit(partial(convnext_forward, num_classes=NUM_CLASSES))
    logits = jax.block_until_ready(fwd(x, params))
    assert logits.shape == (N, NUM_CLASSES) and logits.dtype == jnp.float32

    ref = convnext_reference(x, params, NUM_CLASSES)
    err = float(jnp.max(jnp.abs(logits - ref)))
    assert err < 3e-2, f"max abs error {err} vs pure-JAX reference"
    print("KERNEL_OK")
</pallas_src>

<mosaic_0001>
module attributes {stable_mosaic.version = 11 : i64} {
  func.func @_stem_kernel(%arg0: i32, %arg1: memref<4x8x16xf32, #tpu.memory_space<vmem>>, %arg2: memref<64x128xbf16, #tpu.memory_space<vmem>>, %arg3: memref<1x128xf32, #tpu.memory_space<vmem>>, %arg4: memref<1x128xf32, #tpu.memory_space<vmem>>, %arg5: memref<1x128xf32, #tpu.memory_space<vmem>>, %arg6: memref<8x128xf32, #tpu.memory_space<vmem>>) attributes {dimension_semantics = [#tpu.dimension_semantics<parallel>], iteration_bounds = array<i64: 16>, scalar_prefetch = 0 : i64, scratch_operands = 0 : i64, tpu.core_type = #tpu.core_type<tc>, window_params = [{transform_indices = @transform_0, window_bounds = array<i64: 4, 8, 16>}, {pipeline_mode = #tpu.pipeline_mode<synchronous>, transform_indices = @transform_1, window_bounds = array<i64: 64, 128>}, {pipeline_mode = #tpu.pipeline_mode<synchronous>, transform_indices = @transform_2, window_bounds = array<i64: 1, 128>}, {pipeline_mode = #tpu.pipeline_mode<synchronous>, transform_indices = @transform_3, window_bounds = array<i64: 1, 128>}, {pipeline_mode = #tpu.pipeline_mode<synchronous>, transform_indices = @transform_4, window_bounds = array<i64: 1, 128>}, {transform_indices = @transform_5, window_bounds = array<i64: 8, 128>}]} {
    %c0 = arith.constant 0 : index
    %c0_0 = arith.constant 0 : index
    %c0_1 = arith.constant 0 : index
    %0 = vector.load %arg1[%c0, %c0_0, %c0_1] : memref<4x8x16xf32, #tpu.memory_space<vmem>>, vector<1x8x16xf32>
    %1 = vector.shape_cast %0 : vector<1x8x16xf32> to vector<8x16xf32>
    %2 = arith.truncf %1 : vector<8x16xf32> to vector<8x16xbf16>
    %c0_2 = arith.constant 0 : index
    %c0_3 = arith.constant 0 : index
    %3 = vector.load %arg2[%c0_2, %c0_3] : memref<64x128xbf16, #tpu.memory_space<vmem>>, vector<16x128xbf16>
    %cst = arith.constant dense<0.000000e+00> : vector<8x128xf32>
    %4 = tpu.matmul %2, %3, %cst {dimension_numbers = #tpu.dot_dimension_numbers<[1], [0], [0], [1], [0, 0, 1, 1], [], []>} : vector<8x16xbf16>, vector<16x128xbf16>, vector<8x128xf32> -> vector<8x128xf32>
    %c1 = arith.constant 1 : index
    %c0_4 = arith.constant 0 : index
    %c0_5 = arith.constant 0 : index
    %5 = vector.load %arg1[%c1, %c0_4, %c0_5] : memref<4x8x16xf32, #tpu.memory_space<vmem>>, vector<1x8x16xf32>
    %6 = vector.shape_cast %5 : vector<1x8x16xf32> to vector<8x16xf32>
    %7 = arith.truncf %6 : vector<8x16xf32> to vector<8x16xbf16>
    %c16 = arith.constant 16 : index
    %c0_6 = arith.constant 0 : index
    %8 = vector.load %arg2[%c16, %c0_6] : memref<64x128xbf16, #tpu.memory_space<vmem>>, vector<16x128xbf16>
    %cst_7 = arith.constant dense<0.000000e+00> : vector<8x128xf32>
    %9 = tpu.matmul %7, %8, %cst_7 {dimension_numbers = #tpu.dot_dimension_numbers<[1], [0], [0], [1], [0, 0, 1, 1], [], []>} : vector<8x16xbf16>, vector<16x128xbf16>, vector<8x128xf32> -> vector<8x128xf32>
    %10 = arith.addf %4, %9 : vector<8x128xf32>
    %c2 = arith.constant 2 : index
    %c0_8 = arith.constant 0 : index
    %c0_9 = arith.constant 0 : index
    %11 = vector.load %arg1[%c2, %c0_8, %c0_9] : memref<4x8x16xf32, #tpu.memory_space<vmem>>, vector<1x8x16xf32>
    %12 = vector.shape_cast %11 : vector<1x8x16xf32> to vector<8x16xf32>
    %13 = arith.truncf %12 : vector<8x16xf32> to vector<8x16xbf16>
    %c32 = arith.constant 32 : index
    %c0_10 = arith.constant 0 : index
    %14 = vector.load %arg2[%c32, %c0_10] : memref<64x128xbf16, #tpu.memory_space<vmem>>, vector<16x128xbf16>
    %cst_11 = arith.constant dense<0.000000e+00> : vector<8x128xf32>
    %15 = tpu.matmul %13, %14, %cst_11 {dimension_numbers = #tpu.dot_dimension_numbers<[1], [0], [0], [1], [0, 0, 1, 1], [], []>} : vector<8x16xbf16>, vector<16x128xbf16>, vector<8x128xf32> -> vector<8x128xf32>
    %16 = arith.addf %10, %15 : vector<8x128xf32>
    %c3 = arith.constant 3 : index
    %c0_12 = arith.constant 0 : index
    %c0_13 = arith.constant 0 : index
    %17 = vector.load %arg1[%c3, %c0_12, %c0_13] : memref<4x8x16xf32, #tpu.memory_space<vmem>>, vector<1x8x16xf32>
    %18 = vector.shape_cast %17 : vector<1x8x16xf32> to vector<8x16xf32>
    %19 = arith.truncf %18 : vector<8x16xf32> to vector<8x16xbf16>
    %c48 = arith.constant 48 : index
    %c0_14 = arith.constant 0 : index
    %20 = vector.load %arg2[%c48, %c0_14] : memref<64x128xbf16, #tpu.memory_space<vmem>>, vector<16x128xbf16>
    %cst_15 = arith.constant dense<0.000000e+00> : vector<8x128xf32>
    %21 = tpu.matmul %19, %20, %cst_15 {dimension_numbers = #tpu.dot_dimension_numbers<[1], [0], [0], [1], [0, 0, 1, 1], [], []>} : vector<8x16xbf16>, vector<16x128xbf16>, vector<8x128xf32> -> vector<8x128xf32>
    %22 = arith.addf %16, %21 : vector<8x128xf32>
    %c0_16 = arith.constant 0 : index
    %c0_17 = arith.constant 0 : index
    %23 = vector.load %arg3[%c0_16, %c0_17] : memref<1x128xf32, #tpu.memory_space<vmem>>, vector<1x128xf32>
    %24 = vector.broadcast %23 : vector<1x128xf32> to vector<8x128xf32>
    %25 = arith.addf %22, %24 : vector<8x128xf32>
    %c0_18 = arith.constant 0 : index
    %c0_19 = arith.constant 0 : index
    %26 = vector.load %arg4[%c0_18, %c0_19] : memref<1x128xf32, #tpu.memory_space<vmem>>, vector<1x128xf32>
    %c0_20 = arith.constant 0 : index
    %c0_21 = arith.constant 0 : index
    %27 = vector.load %arg5[%c0_20, %c0_21] : memref<1x128xf32, #tpu.memory_space<vmem>>, vector<1x128xf32>
    %cst_22 = arith.constant dense<0.000000e+00> : vector<8xf32>
    %28 = vector.multi_reduction <add>, %25, %cst_22 [1] : vector<8x128xf32> to vector<8xf32>
    %29 = vector.shape_cast %28 : vector<8xf32> to vector<8x1xf32>
    %cst_23 = arith.constant 1.280000e+02 : f32
    %30 = vector.broadcast %cst_23 : f32 to vector<8x1xf32>
    %31 = arith.divf %29, %30 : vector<8x1xf32>
    %32 = vector.broadcast %31 : vector<8x1xf32> to vector<8x128xf32>
    %33 = arith.subf %25, %32 : vector<8x128xf32>
    %34 = arith.mulf %33, %33 : vector<8x128xf32>
    %cst_24 = arith.constant dense<0.000000e+00> : vector<8xf32>
    %35 = vector.multi_reduction <add>, %34, %cst_24 [1] : vector<8x128xf32> to vector<8xf32>
    %36 = vector.shape_cast %35 : vector<8xf32> to vector<8x1xf32>
    %cst_25 = arith.constant 1.280000e+02 : f32
    %37 = vector.broadcast %cst_25 : f32 to vector<8x1xf32>
    %38 = arith.divf %36, %37 : vector<8x1xf32>
    %39 = vector.broadcast %31 : vector<8x1xf32> to vector<8x128xf32>
    %40 = arith.subf %25, %39 : vector<8x128xf32>
    %cst_26 = arith.constant 9.99999997E-7 : f32
    %41 = vector.broadcast %cst_26 : f32 to vector<8x1xf32>
    %42 = arith.addf %38, %41 : vector<8x1xf32>
    %43 = math.rsqrt %42 : vector<8x1xf32>
    %44 = vector.broadcast %43 : vector<8x1xf32> to vector<8x128xf32>
    %45 = arith.mulf %40, %44 : vector<8x128xf32>
    %46 = vector.broadcast %26 : vector<1x128xf32> to vector<8x128xf32>
    %47 = arith.mulf %45, %46 : vector<8x128xf32>
    %48 = vector.broadcast %27 : vector<1x128xf32> to vector<8x128xf32>
    %49 = arith.addf %47, %48 : vector<8x128xf32>
    %c0_27 = arith.constant 0 : index
    %c0_28 = arith.constant 0 : index
    %50 = vector.load %arg6[%c0_27, %c0_28] : memref<8x128xf32, #tpu.memory_space<vmem>>, vector<8x128xf32>
    tpu.vector_store %arg6[%c0_27, %c0_28], %49 {strides = array<i32>} : memref<8x128xf32, #tpu.memory_space<vmem>>, vector<8x128xf32>,
    return
  }
  func.func @transform_0(%arg0: i32) -> (i32, i32, i32) {
    %c0_i32 = arith.constant 0 : i32
    %c0_i32_0 = arith.constant 0 : i32
    %c0_i32_1 = arith.constant 0 : i32
    return %arg0, %c0_i32, %c0_i32_0 : i32, i32, i32
  }
  func.func @transform_1(%arg0: i32) -> (i32, i32) {
    %c0_i32 = arith.constant 0 : i32
    %c0_i32_0 = arith.constant 0 : i32
    %c0_i32_1 = arith.constant 0 : i32
    return %c0_i32, %c0_i32_0 : i32, i32
  }
  func.func @transform_2(%arg0: i32) -> (i32, i32) {
    %c0_i32 = arith.constant 0 : i32
    %c0_i32_0 = arith.constant 0 : i32
    %c0_i32_1 = arith.constant 0 : i32
    return %c0_i32, %c0_i32_0 : i32, i32
  }
  func.func @transform_3(%arg0: i32) -> (i32, i32) {
    %c0_i32 = arith.constant 0 : i32
    %c0_i32_0 = arith.constant 0 : i32
    %c0_i32_1 = arith.constant 0 : i32
    return %c0_i32, %c0_i32_0 : i32, i32
  }
  func.func @transform_4(%arg0: i32) -> (i32, i32) {
    %c0_i32 = arith.constant 0 : i32
    %c0_i32_0 = arith.constant 0 : i32
    %c0_i32_1 = arith.constant 0 : i32
    return %c0_i32, %c0_i32_0 : i32, i32
  }
  func.func @transform_5(%arg0: i32) -> (i32, i32) {
    %c0_i32 = arith.constant 0 : i32
    %c0_i32_0 = arith.constant 0 : i32
    return %arg0, %c0_i32 : i32, i32
  }
}

module attributes {stable_mosaic.version = 11 : i64} {
  func.func @_head_kernel(%arg0: i32, %arg1: memref<2x128xf32, #tpu.memory_space<vmem>>, %arg2: memref<1x128xf32, #tpu.memory_space<vmem>>, %arg3: memref<1x128xf32, #tpu.memory_space<vmem>>, %arg4: memref<128x128xbf16, #tpu.memory_space<vmem>>, %arg5: memref<1x128xf32, #tpu.memory_space<vmem>>, %arg6: memref<2x128xf32, #tpu.memory_space<vmem>>) attributes {dimension_semantics = [#tpu.dimension_semantics<arbitrary>], iteration_bounds = array<i64: 1>, scalar_prefetch = 0 : i64, scratch_operands = 0 : i64, tpu.core_type = #tpu.core_type<tc>, window_params = [{pipeline_mode = #tpu.pipeline_mode<synchronous>, transform_indices = @transform_0, window_bounds = array<i64: 2, 128>}, {pipeline_mode = #tpu.pipeline_mode<synchronous>, transform_indices = @transform_1, window_bounds = array<i64: 1, 128>}, {pipeline_mode = #tpu.pipeline_mode<synchronous>, transform_indices = @transform_2, window_bounds = array<i64: 1, 128>}, {pipeline_mode = #tpu.pipeline_mode<synchronous>, transform_indices = @transform_3, window_bounds = array<i64: 128, 128>}, {pipeline_mode = #tpu.pipeline_mode<synchronous>, transform_indices = @transform_4, window_bounds = array<i64: 1, 128>}, {pipeline_mode = #tpu.pipeline_mode<synchronous>, transform_indices = @transform_5, window_bounds = array<i64: 2, 128>}]} {
    %c0 = arith.constant 0 : index
    %c0_0 = arith.constant 0 : index
    %0 = vector.load %arg1[%c0, %c0_0] : memref<2x128xf32, #tpu.memory_space<vmem>>, vector<2x128xf32>
    %c0_1 = arith.constant 0 : index
    %c0_2 = arith.constant 0 : index
    %1 = vector.load %arg2[%c0_1, %c0_2] : memref<1x128xf32, #tpu.memory_space<vmem>>, vector<1x128xf32>
    %c0_3 = arith.constant 0 : index
    %c0_4 = arith.constant 0 : index
    %2 = vector.load %arg3[%c0_3, %c0_4] : memref<1x128xf32, #tpu.memory_space<vmem>>, vector<1x128xf32>
    %cst = arith.constant dense<0.000000e+00> : vector<2xf32>
    %3 = vector.multi_reduction <add>, %0, %cst [1] : vector<2x128xf32> to vector<2xf32>
    %4 = vector.shape_cast %3 : vector<2xf32> to vector<2x1xf32>
    %cst_5 = arith.constant 1.280000e+02 : f32
    %5 = vector.broadcast %cst_5 : f32 to vector<2x1xf32>
    %6 = arith.divf %4, %5 : vector<2x1xf32>
    %7 = vector.broadcast %6 : vector<2x1xf32> to vector<2x128xf32>
    %8 = arith.subf %0, %7 : vector<2x128xf32>
    %9 = arith.mulf %8, %8 : vector<2x128xf32>
    %cst_6 = arith.constant dense<0.000000e+00> : vector<2xf32>
    %10 = vector.multi_reduction <add>, %9, %cst_6 [1] : vector<2x128xf32> to vector<2xf32>
    %11 = vector.shape_cast %10 : vector<2xf32> to vector<2x1xf32>
    %cst_7 = arith.constant 1.280000e+02 : f32
    %12 = vector.broadcast %cst_7 : f32 to vector<2x1xf32>
    %13 = arith.divf %11, %12 : vector<2x1xf32>
    %14 = vector.broadcast %6 : vector<2x1xf32> to vector<2x128xf32>
    %15 = arith.subf %0, %14 : vector<2x128xf32>
    %cst_8 = arith.constant 9.99999997E-7 : f32
    %16 = vector.broadcast %cst_8 : f32 to vector<2x1xf32>
    %17 = arith.addf %13, %16 : vector<2x1xf32>
    %18 = math.rsqrt %17 : vector<2x1xf32>
    %19 = vector.broadcast %18 : vector<2x1xf32> to vector<2x128xf32>
    %20 = arith.mulf %15, %19 : vector<2x128xf32>
    %21 = vector.broadcast %1 : vector<1x128xf32> to vector<2x128xf32>
    %22 = arith.mulf %20, %21 : vector<2x128xf32>
    %23 = vector.broadcast %2 : vector<1x128xf32> to vector<2x128xf32>
    %24 = arith.addf %22, %23 : vector<2x128xf32>
    %25 = arith.truncf %24 : vector<2x128xf32> to vector<2x128xbf16>
    %c0_9 = arith.constant 0 : index
    %c0_10 = arith.constant 0 : index
    %26 = vector.load %arg4[%c0_9, %c0_10] : memref<128x128xbf16, #tpu.memory_space<vmem>>, vector<128x128xbf16>
    %cst_11 = arith.constant dense<0.000000e+00> : vector<2x128xf32>
    %27 = tpu.matmul %25, %26, %cst_11 {dimension_numbers = #tpu.dot_dimension_numbers<[1], [0], [0], [1], [0, 0, 1, 1], [], []>} : vector<2x128xbf16>, vector<128x128xbf16>, vector<2x128xf32> -> vector<2x128xf32>
    %c0_12 = arith.constant 0 : index
    %c0_13 = arith.constant 0 : index
    %28 = vector.load %arg5[%c0_12, %c0_13] : memref<1x128xf32, #tpu.memory_space<vmem>>, vector<1x128xf32>
    %29 = vector.broadcast %28 : vector<1x128xf32> to vector<2x128xf32>
    %30 = arith.addf %27, %29 : vector<2x128xf32>
    %c0_14 = arith.constant 0 : index
    %c0_15 = arith.constant 0 : index
    %31 = vector.load %arg6[%c0_14, %c0_15] : memref<2x128xf32, #tpu.memory_space<vmem>>, vector<2x128xf32>
    tpu.vector_store %arg6[%c0_14, %c0_15], %30 {strides = array<i32>} : memref<2x128xf32, #tpu.memory_space<vmem>>, vector<2x128xf32>,
    return
  }
  func.func @transform_0(%arg0: i32) -> (i32, i32) {
    %c0_i32 = arith.constant 0 : i32
    %c0_i32_0 = arith.constant 0 : i32
    %c0_i32_1 = arith.constant 0 : i32
    return %c0_i32, %c0_i32_0 : i32, i32
  }
  func.func @transform_1(%arg0: i32) -> (i32, i32) {
    %c0_i32 = arith.constant 0 : i32
    %c0_i32_0 = arith.constant 0 : i32
    %c0_i32_1 = arith.constant 0 : i32
    return %c0_i32, %c0_i32_0 : i32, i32
  }
  func.func @transform_2(%arg0: i32) -> (i32, i32) {
    %c0_i32 = arith.constant 0 : i32
    %c0_i32_0 = arith.constant 0 : i32
    %c0_i32_1 = arith.constant 0 : i32
    return %c0_i32, %c0_i32_0 : i32, i32
  }
  func.func @transform_3(%arg0: i32) -> (i32, i32) {
    %c0_i32 = arith.constant 0 : i32
    %c0_i32_0 = arith.constant 0 : i32
    %c0_i32_1 = arith.constant 0 : i32
    return %c0_i32, %c0_i32_0 : i32, i32
  }
  func.func @transform_4(%arg0: i32) -> (i32, i32) {
    %c0_i32 = arith.constant 0 : i32
    %c0_i32_0 = arith.constant 0 : i32
    %c0_i32_1 = arith.constant 0 : i32
    return %c0_i32, %c0_i32_0 : i32, i32
  }
  func.func @transform_5(%arg0: i32) -> (i32, i32) {
    %c0_i32 = arith.constant 0 : i32
    %c0_i32_0 = arith.constant 0 : i32
    %c0_i32_1 = arith.constant 0 : i32
    return %c0_i32, %c0_i32_0 : i32, i32
  }
}

module attributes {stable_mosaic.version = 11 : i64} {
  func.func @_block_pool_kernel(%arg0: i32, %arg1: memref<1x8x8x128xf32, #tpu.memory_space<vmem>>, %arg2: memref<49x128xf32, #tpu.memory_space<vmem>>, %arg3: memref<1x128xf32, #tpu.memory_space<vmem>>, %arg4: memref<1x128xf32, #tpu.memory_space<vmem>>, %arg5: memref<1x128xf32, #tpu.memory_space<vmem>>, %arg6: memref<128x512xbf16, #tpu.memory_space<vmem>>, %arg7: memref<1x512xf32, #tpu.memory_space<vmem>>, %arg8: memref<512x128xbf16, #tpu.memory_space<vmem>>, %arg9: memref<1x128xf32, #tpu.memory_space<vmem>>, %arg10: memref<1x128xf32, #tpu.memory_space<vmem>>, %arg11: memref<1x1x128xf32, #tpu.memory_space<vmem>>, %arg12: memref<8x24x128xf32, #tpu.memory_space<vmem>>, %arg13: memref<7x14x8x128xf32, #tpu.memory_space<vmem>>) attributes {dimension_semantics = [#tpu.dimension_semantics<parallel>], iteration_bounds = array<i64: 2>, scalar_prefetch = 0 : i64, scratch_operands = 2 : i64, tpu.core_type = #tpu.core_type<tc>, window_params = [{transform_indices = @transform_0, window_bounds = array<i64: 1, 8, 8, 128>}, {pipeline_mode = #tpu.pipeline_mode<synchronous>, transform_indices = @transform_1, window_bounds = array<i64: 49, 128>}, {pipeline_mode = #tpu.pipeline_mode<synchronous>, transform_indices = @transform_2, window_bounds = array<i64: 1, 128>}, {pipeline_mode = #tpu.pipeline_mode<synchronous>, transform_indices = @transform_3, window_bounds = array<i64: 1, 128>}, {pipeline_mode = #tpu.pipeline_mode<synchronous>, transform_indices = @transform_4, window_bounds = array<i64: 1, 128>}, {pipeline_mode = #tpu.pipeline_mode<synchronous>, transform_indices = @transform_5, window_bounds = array<i64: 128, 512>}, {pipeline_mode = #tpu.pipeline_mode<synchronous>, transform_indices = @transform_6, window_bounds = array<i64: 1, 512>}, {pipeline_mode = #tpu.pipeline_mode<synchronous>, transform_indices = @transform_7, window_bounds = array<i64: 512, 128>}, {pipeline_mode = #tpu.pipeline_mode<synchronous>, transform_indices = @transform_8, window_bounds = array<i64: 1, 128>}, {pipeline_mode = #tpu.pipeline_mode<synchronous>, transform_indices = @transform_9, window_bounds = array<i64: 1, 128>}, {transform_indices = @transform_10, window_bounds = array<i64: 1, 1, 128>}]} {
    %c0 = arith.constant 0 : index
    %c0_0 = arith.constant 0 : index
    %c0_1 = arith.constant 0 : index
    %c0_2 = arith.constant 0 : index
    %0 = vector.load %arg1[%c0, %c0_0, %c0_1, %c0_2] : memref<1x8x8x128xf32, #tpu.memory_space<vmem>>, vector<1x8x8x128xf32>
    %1 = vector.shape_cast %0 : vector<1x8x8x128xf32> to vector<8x8x128xf32>
    %cst = arith.constant 0.000000e+00 : f32
    %2 = vector.broadcast %cst : f32 to vector<8x24x128xf32>
    %c0_3 = arith.constant 0 : index
    %c0_4 = arith.constant 0 : index
    %c0_5 = arith.constant 0 : index
    %3 = vector.load %arg12[%c0_3, %c0_4, %c0_5] : memref<8x24x128xf32, #tpu.memory_space<vmem>>, vector<8x24x128xf32>
    tpu.vector_store %arg12[%c0_3, %c0_4, %c0_5], %2 {strides = array<i32>} : memref<8x24x128xf32, #tpu.memory_space<vmem>>, vector<8x24x128xf32>,
    %c0_6 = arith.constant 0 : index
    %c8 = arith.constant 8 : index
    %c0_7 = arith.constant 0 : index
    %4 = vector.load %arg12[%c0_6, %c8, %c0_7] : memref<8x24x128xf32, #tpu.memory_space<vmem>>, vector<8x8x128xf32>
    tpu.vector_store %arg12[%c0_6, %c8, %c0_7], %1 {strides = array<i32>} : memref<8x24x128xf32, #tpu.memory_space<vmem>>, vector<8x8x128xf32>,
    %cst_8 = arith.constant 0.000000e+00 : f32
    %5 = vector.broadcast %cst_8 : f32 to vector<7x3x8x128xf32>
    %c0_9 = arith.constant 0 : index
    %c0_10 = arith.constant 0 : index
    %c0_11 = arith.constant 0 : index
    %c0_12 = arith.constant 0 : index
    %6 = vector.load %arg13[%c0_9, %c0_10, %c0_11, %c0_12] : memref<7x14x8x128xf32, #tpu.memory_space<vmem>>, vector<7x3x8x128xf32>
    tpu.vector_store %arg13[%c0_9, %c0_10, %c0_11, %c0_12], %5 {strides = array<i32>} : memref<7x14x8x128xf32, #tpu.memory_space<vmem>>, vector<7x3x8x128xf32>,
    %cst_13 = arith.constant 0.000000e+00 : f32
    %7 = vector.broadcast %cst_13 : f32 to vector<7x3x8x128xf32>
    %c0_14 = arith.constant 0 : index
    %c11 = arith.constant 11 : index
    %c0_15 = arith.constant 0 : index
    %c0_16 = arith.constant 0 : index
    %8 = vector.load %arg13[%c0_14, %c11, %c0_15, %c0_16] : memref<7x14x8x128xf32, #tpu.memory_space<vmem>>, vector<7x3x8x128xf32>
    tpu.vector_store %arg13[%c0_14, %c11, %c0_15, %c0_16], %7 {strides = array<i32>} : memref<7x14x8x128xf32, #tpu.memory_space<vmem>>, vector<7x3x8x128xf32>,
    %c0_17 = arith.constant 0 : index
    %c5 = arith.constant 5 : index
    %c0_18 = arith.constant 0 : index
    %9 = vector.load %arg12[%c0_17, %c5, %c0_18] : memref<8x24x128xf32, #tpu.memory_space<vmem>>, vector<8x8x128xf32>
    %c0_19 = arith.constant 0 : index
    %c3 = arith.constant 3 : index
    %c0_20 = arith.constant 0 : index
    %c0_21 = arith.constant 0 : index
    %10 = vector.load %arg13[%c0_19, %c3, %c0_20, %c0_21] : memref<7x14x8x128xf32, #tpu.memory_space<vmem>>, vector<1x8x8x128xf32>
    %11 = vector.shape_cast %10 : vector<1x8x8x128xf32> to vector<8x8x128xf32>
    %12 = vector.shape_cast %9 : vector<8x8x128xf32> to vector<1x8x8x128xf32>
    tpu.vector_store %arg13[%c0_19, %c3, %c0_20, %c0_21], %12 {strides = array<i32>} : memref<7x14x8x128xf32, #tpu.memory_space<vmem>>, vector<1x8x8x128xf32>,
    %c0_22 = arith.constant 0 : index
    %c6 = arith.constant 6 : index
    %c0_23 = arith.constant 0 : index
    %13 = vector.load %arg12[%c0_22, %c6, %c0_23] : memref<8x24x128xf32, #tpu.memory_space<vmem>>, vector<8x8x128xf32>
    %c1 = arith.constant 1 : index
    %c3_24 = arith.constant 3 : index
    %c0_25 = arith.constant 0 : index
    %c0_26 = arith.constant 0 : index
    %14 = vector.load %arg13[%c1, %c3_24, %c0_25, %c0_26] : memref<7x14x8x128xf32, #tpu.memory_space<vmem>>, vector<1x8x8x128xf32>
    %15 = vector.shape_cast %14 : vector<1x8x8x128xf32> to vector<8x8x128xf32>
    %16 = vector.shape_cast %13 : vector<8x8x128xf32> to vector<1x8x8x128xf32>
    tpu.vector_store %arg13[%c1, %c3_24, %c0_25, %c0_26], %16 {strides = array<i32>} : memref<7x14x8x128xf32, #tpu.memory_space<vmem>>, vector<1x8x8x128xf32>,
    %c0_27 = arith.constant 0 : index
    %c7 = arith.constant 7 : index
    %c0_28 = arith.constant 0 : index
    %17 = vector.load %arg12[%c0_27, %c7, %c0_28] : memref<8x24x128xf32, #tpu.memory_space<vmem>>, vector<8x8x128xf32>
    %c2 = arith.constant 2 : index
    %c3_29 = arith.constant 3 : index
    %c0_30 = arith.constant 0 : index
    %c0_31 = arith.constant 0 : index
    %18 = vector.load %arg13[%c2, %c3_29, %c0_30, %c0_31] : memref<7x14x8x128xf32, #tpu.memory_space<vmem>>, vector<1x8x8x128xf32>
    %19 = vector.shape_cast %18 : vector<1x8x8x128xf32> to vector<8x8x128xf32>
    %20 = vector.shape_cast %17 : vector<8x8x128xf32> to vector<1x8x8x128xf32>
    tpu.vector_store %arg13[%c2, %c3_29, %c0_30, %c0_31], %20 {strides = array<i32>} : memref<7x14x8x128xf32, #tpu.memory_space<vmem>>, vector<1x8x8x128xf32>,
    %c0_32 = arith.constant 0 : index
    %c8_33 = arith.constant 8 : index
    %c0_34 = arith.constant 0 : index
    %21 = vector.load %arg12[%c0_32, %c8_33, %c0_34] : memref<8x24x128xf32, #tpu.memory_space<vmem>>, vector<8x8x128xf32>
    %c3_35 = arith.constant 3 : index
    %c3_36 = arith.constant 3 : index
    %c0_37 = arith.constant 0 : index
    %c0_38 = arith.constant 0 : index
    %22 = vector.load %arg13[%c3_35, %c3_36, %c0_37, %c0_38] : memref<7x14x8x128xf32, #tpu.memory_space<vmem>>, vector<1x8x8x128xf32>
    %23 = vector.shape_cast %22 : vector<1x8x8x128xf32> to vector<8x8x128xf32>
    %24 = vector.shape_cast %21 : vector<8x8x128xf32> to vector<1x8x8x128xf32>
    tpu.vector_store %arg13[%c3_35, %c3_36, %c0_37, %c0_38], %24 {strides = array<i32>} : memref<7x14x8x128xf32, #tpu.memory_space<vmem>>, vector<1x8x8x128xf32>,
    %c0_39 = arith.constant 0 : index
    %c9 = arith.constant 9 : index
    %c0_40 = arith.constant 0 : index
    %25 = vector.load %arg12[%c0_39, %c9, %c0_40] : memref<8x24x128xf32, #tpu.memory_space<vmem>>, vector<8x8x128xf32>
    %c4 = arith.constant 4 : index
    %c3_41 = arith.constant 3 : index
    %c0_42 = arith.constant 0 : index
    %c0_43 = arith.constant 0 : index
    %26 = vector.load %arg13[%c4, %c3_41, %c0_42, %c0_43] : memref<7x14x8x128xf32, #tpu.memory_space<vmem>>, vector<1x8x8x128xf32>
    %27 = vector.shape_cast %26 : vector<1x8x8x128xf32> to vector<8x8x128xf32>
    %28 = vector.shape_cast %25 : vector<8x8x128xf32> to vector<1x8x8x128xf32>
    tpu.vector_store %arg13[%c4, %c3_41, %c0_42, %c0_43], %28 {strides = array<i32>} : memref<7x14x8x128xf32, #tpu.memory_space<vmem>>, vector<1x8x8x128xf32>,
    %c0_44 = arith.constant 0 : index
    %c10 = arith.constant 10 : index
    %c0_45 = arith.constant 0 : index
    %29 = vector.load %arg12[%c0_44, %c10, %c0_45] : memref<8x24x128xf32, #tpu.memory_space<vmem>>, vector<8x8x128xf32>
    %c5_46 = arith.constant 5 : index
    %c3_47 = arith.constant 3 : index
    %c0_48 = arith.constant 0 : index
    %c0_49 = arith.constant 0 : index
    %30 = vector.load %arg13[%c5_46, %c3_47, %c0_48, %c0_49] : memref<7x14x8x128xf32, #tpu.memory_space<vmem>>, vector<1x8x8x128xf32>
    %31 = vector.shape_cast %30 : vector<1x8x8x128xf32> to vector<8x8x128xf32>
    %32 = vector.shape_cast %29 : vector<8x8x128xf32> to vector<1x8x8x128xf32>
    tpu.vector_store %arg13[%c5_46, %c3_47, %c0_48, %c0_49], %32 {strides = array<i32>} : memref<7x14x8x128xf32, #tpu.memory_space<vmem>>, vector<1x8x8x128xf32>,
    %c0_50 = arith.constant 0 : index
    %c11_51 = arith.constant 11 : index
    %c0_52 = arith.constant 0 : index
    %33 = vector.load %arg12[%c0_50, %c11_51, %c0_52] : memref<8x24x128xf32, #tpu.memory_space<vmem>>, vector<8x8x128xf32>
    %c6_53 = arith.constant 6 : index
    %c3_54 = arith.constant 3 : index
    %c0_55 = arith.constant 0 : index
    %c0_56 = arith.constant 0 : index
    %34 = vector.load %arg13[%c6_53, %c3_54, %c0_55, %c0_56] : memref<7x14x8x128xf32, #tpu.memory_space<vmem>>, vector<1x8x8x128xf32>
    %35 = vector.shape_cast %34 : vector<1x8x8x128xf32> to vector<8x8x128xf32>
    %36 = vector.shape_cast %33 : vector<8x8x128xf32> to vector<1x8x8x128xf32>
    tpu.vector_store %arg13[%c6_53, %c3_54, %c0_55, %c0_56], %36 {strides = array<i32>} : memref<7x14x8x128xf32, #tpu.memory_space<vmem>>, vector<1x8x8x128xf32>,
    %cst_57 = arith.constant 0.000000e+00 : f32
    %37 = vector.broadcast %cst_57 : f32 to vector<8x8x128xf32>
    %c0_58 = arith.constant 0 : index
    %c0_59 = arith.constant 0 : index
    %c0_60 = arith.constant 0 : index
    %c0_61 = arith.constant 0 : index
    %38 = vector.load %arg13[%c0_58, %c0_59, %c0_60, %c0_61] : memref<7x14x8x128xf32, #tpu.memory_space<vmem>>, vector<1x8x8x128xf32>
    %39 = vector.shape_cast %38 : vector<1x8x8x128xf32> to vector<8x8x128xf32>
    %c0_62 = arith.constant 0 : index
    %c0_63 = arith.constant 0 : index
    %40 = vector.load %arg2[%c0_62, %c0_63] : memref<49x128xf32, #tpu.memory_space<vmem>>, vector<1x128xf32>
    %41 = vector.shape_cast %40 : vector<1x128xf32> to vector<128xf32>
    %42 = vector.shape_cast %41 : vector<128xf32> to vector<1x1x128xf32>
    %43 = vector.broadcast %42 : vector<1x1x128xf32> to vector<8x8x128xf32>
    %44 = arith.mulf %39, %43 : vector<8x8x128xf32>
    %45 = arith.addf %37, %44 : vector<8x8x128xf32>
    %c1_64 = arith.constant 1 : index
    %c0_65 = arith.constant 0 : index
    %c0_66 = arith.constant 0 : index
    %c0_67 = arith.constant 0 : index
    %46 = vector.load %arg13[%c1_64, %c0_65, %c0_66, %c0_67] : memref<7x14x8x128xf32, #tpu.memory_space<vmem>>, vector<1x8x8x128xf32>
    %47 = vector.shape_cast %46 : vector<1x8x8x128xf32> to vector<8x8x128xf32>
    %c1_68 = arith.constant 1 : index
    %c0_69 = arith.constant 0 : index
    %48 = vector.load %arg2[%c1_68, %c0_69] : memref<49x128xf32, #tpu.memory_space<vmem>>, vector<1x128xf32>
    %49 = vector.shape_cast %48 : vector<1x128xf32> to vector<128xf32>
    %50 = vector.shape_cast %49 : vector<128xf32> to vector<1x1x128xf32>
    %51 = vector.broadcast %50 : vector<1x1x128xf32> to vector<8x8x128xf32>
    %52 = arith.mulf %47, %51 : vector<8x8x128xf32>
    %53 = arith.addf %45, %52 : vector<8x8x128xf32>
    %c2_70 = arith.constant 2 : index
    %c0_71 = arith.constant 0 : index
    %c0_72 = arith.constant 0 : index
    %c0_73 = arith.constant 0 : index
    %54 = vector.load %arg13[%c2_70, %c0_71, %c0_72, %c0_73] : memref<7x14x8x128xf32, #tpu.memory_space<vmem>>, vector<1x8x8x128xf32>
    %55 = vector.shape_cast %54 : vector<1x8x8x128xf32> to vector<8x8x128xf32>
    %c2_74 = arith.constant 2 : index
    %c0_75 = arith.constant 0 : index
    %56 = vector.load %arg2[%c2_74, %c0_75] : memref<49x128xf32, #tpu.memory_space<vmem>>, vector<1x128xf32>
    %57 = vector.shape_cast %56 : vector<1x128xf32> to vector<128xf32>
    %58 = vector.shape_cast %57 : vector<128xf32> to vector<1x1x128xf32>
    %59 = vector.broadcast %58 : vector<1x1x128xf32> to vector<8x8x128xf32>
    %60 = arith.mulf %55, %59 : vector<8x8x128xf32>
    %61 = arith.addf %53, %60 : vector<8x8x128xf32>
    %c3_76 = arith.constant 3 : index
    %c0_77 = arith.constant 0 : index
    %c0_78 = arith.constant 0 : index
    %c0_79 = arith.constant 0 : index
    %62 = vector.load %arg13[%c3_76, %c0_77, %c0_78, %c0_79] : memref<7x14x8x128xf32, #tpu.memory_space<vmem>>, vector<1x8x8x128xf32>
    %63 = vector.shape_cast %62 : vector<1x8x8x128xf32> to vector<8x8x128xf32>
    %c3_80 = arith.constant 3 : index
    %c0_81 = arith.constant 0 : index
    %64 = vector.load %arg2[%c3_80, %c0_81] : memref<49x128xf32, #tpu.memory_space<vmem>>, vector<1x128xf32>
    %65 = vector.shape_cast %64 : vector<1x128xf32> to vector<128xf32>
    %66 = vector.shape_cast %65 : vector<128xf32> to vector<1x1x128xf32>
    %67 = vector.broadcast %66 : vector<1x1x128xf32> to vector<8x8x128xf32>
    %68 = arith.mulf %63, %67 : vector<8x8x128xf32>
    %69 = arith.addf %61, %68 : vector<8x8x128xf32>
    %c4_82 = arith.constant 4 : index
    %c0_83 = arith.constant 0 : index
    %c0_84 = arith.constant 0 : index
    %c0_85 = arith.constant 0 : index
    %70 = vector.load %arg13[%c4_82, %c0_83, %c0_84, %c0_85] : memref<7x14x8x128xf32, #tpu.memory_space<vmem>>, vector<1x8x8x128xf32>
    %71 = vector.shape_cast %70 : vector<1x8x8x128xf32> to vector<8x8x128xf32>
    %c4_86 = arith.constant 4 : index
    %c0_87 = arith.constant 0 : index
    %72 = vector.load %arg2[%c4_86, %c0_87] : memref<49x128xf32, #tpu.memory_space<vmem>>, vector<1x128xf32>
    %73 = vector.shape_cast %72 : vector<1x128xf32> to vector<128xf32>
    %74 = vector.shape_cast %73 : vector<128xf32> to vector<1x1x128xf32>
    %75 = vector.broadcast %74 : vector<1x1x128xf32> to vector<8x8x128xf32>
    %76 = arith.mulf %71, %75 : vector<8x8x128xf32>
    %77 = arith.addf %69, %76 : vector<8x8x128xf32>
    %c5_88 = arith.constant 5 : index
    %c0_89 = arith.constant 0 : index
    %c0_90 = arith.constant 0 : index
    %c0_91 = arith.constant 0 : index
    %78 = vector.load %arg13[%c5_88, %c0_89, %c0_90, %c0_91] : memref<7x14x8x128xf32, #tpu.memory_space<vmem>>, vector<1x8x8x128xf32>
    %79 = vector.shape_cast %78 : vector<1x8x8x128xf32> to vector<8x8x128xf32>
    %c5_92 = arith.constant 5 : index
    %c0_93 = arith.constant 0 : index
    %80 = vector.load %arg2[%c5_92, %c0_93] : memref<49x128xf32, #tpu.memory_space<vmem>>, vector<1x128xf32>
    %81 = vector.shape_cast %80 : vector<1x128xf32> to vector<128xf32>
    %82 = vector.shape_cast %81 : vector<128xf32> to vector<1x1x128xf32>
    %83 = vector.broadcast %82 : vector<1x1x128xf32> to vector<8x8x128xf32>
    %84 = arith.mulf %79, %83 : vector<8x8x128xf32>
    %85 = arith.addf %77, %84 : vector<8x8x128xf32>
    %c6_94 = arith.constant 6 : index
    %c0_95 = arith.constant 0 : index
    %c0_96 = arith.constant 0 : index
    %c0_97 = arith.constant 0 : index
    %86 = vector.load %arg13[%c6_94, %c0_95, %c0_96, %c0_97] : memref<7x14x8x128xf32, #tpu.memory_space<vmem>>, vector<1x8x8x128xf32>
    %87 = vector.shape_cast %86 : vector<1x8x8x128xf32> to vector<8x8x128xf32>
    %c6_98 = arith.constant 6 : index
    %c0_99 = arith.constant 0 : index
    %88 = vector.load %arg2[%c6_98, %c0_99] : memref<49x128xf32, #tpu.memory_space<vmem>>, vector<1x128xf32>
    %89 = vector.shape_cast %88 : vector<1x128xf32> to vector<128xf32>
    %90 = vector.shape_cast %89 : vector<128xf32> to vector<1x1x128xf32>
    %91 = vector.broadcast %90 : vector<1x1x128xf32> to vector<8x8x128xf32>
    %92 = arith.mulf %87, %91 : vector<8x8x128xf32>
    %93 = arith.addf %85, %92 : vector<8x8x128xf32>
    %c0_100 = arith.constant 0 : index
    %c1_101 = arith.constant 1 : index
    %c0_102 = arith.constant 0 : index
    %c0_103 = arith.constant 0 : index
    %94 = vector.load %arg13[%c0_100, %c1_101, %c0_102, %c0_103] : memref<7x14x8x128xf32, #tpu.memory_space<vmem>>, vector<1x8x8x128xf32>
    %95 = vector.shape_cast %94 : vector<1x8x8x128xf32> to vector<8x8x128xf32>
    %c7_104 = arith.constant 7 : index
    %c0_105 = arith.constant 0 : index
    %96 = vector.load %arg2[%c7_104, %c0_105] : memref<49x128xf32, #tpu.memory_space<vmem>>, vector<1x128xf32>
    %97 = vector.shape_cast %96 : vector<1x128xf32> to vector<128xf32>
    %98 = vector.shape_cast %97 : vector<128xf32> to vector<1x1x128xf32>
    %99 = vector.broadcast %98 : vector<1x1x128xf32> to vector<8x8x128xf32>
    %100 = arith.mulf %95, %99 : vector<8x8x128xf32>
    %101 = arith.addf %93, %100 : vector<8x8x128xf32>
    %c1_106 = arith.constant 1 : index
    %c1_107 = arith.constant 1 : index
    %c0_108 = arith.constant 0 : index
    %c0_109 = arith.constant 0 : index
    %102 = vector.load %arg13[%c1_106, %c1_107, %c0_108, %c0_109] : memref<7x14x8x128xf32, #tpu.memory_space<vmem>>, vector<1x8x8x128xf32>
    %103 = vector.shape_cast %102 : vector<1x8x8x128xf32> to vector<8x8x128xf32>
    %c8_110 = arith.constant 8 : index
    %c0_111 = arith.constant 0 : index
    %104 = vector.load %arg2[%c8_110, %c0_111] : memref<49x128xf32, #tpu.memory_space<vmem>>, vector<1x128xf32>
    %105 = vector.shape_cast %104 : vector<1x128xf32> to vector<128xf32>
    %106 = vector.shape_cast %105 : vector<128xf32> to vector<1x1x128xf32>
    %107 = vector.broadcast %106 : vector<1x1x128xf32> to vector<8x8x128xf32>
    %108 = arith.mulf %103, %107 : vector<8x8x128xf32>
    %109 = arith.addf %101, %108 : vector<8x8x128xf32>
    %c2_112 = arith.constant 2 : index
    %c1_113 = arith.constant 1 : index
    %c0_114 = arith.constant 0 : index
    %c0_115 = arith.constant 0 : index
    %110 = vector.load %arg13[%c2_112, %c1_113, %c0_114, %c0_115] : memref<7x14x8x128xf32, #tpu.memory_space<vmem>>, vector<1x8x8x128xf32>
    %111 = vector.shape_cast %110 : vector<1x8x8x128xf32> to vector<8x8x128xf32>
    %c9_116 = arith.constant 9 : index
    %c0_117 = arith.constant 0 : index
    %112 = vector.load %arg2[%c9_116, %c0_117] : memref<49x128xf32, #tpu.memory_space<vmem>>, vector<1x128xf32>
    %113 = vector.shape_cast %112 : vector<1x128xf32> to vector<128xf32>
    %114 = vector.shape_cast %113 : vector<128xf32> to vector<1x1x128xf32>
    %115 = vector.broadcast %114 : vector<1x1x128xf32> to vector<8x8x128xf32>
    %116 = arith.mulf %111, %115 : vector<8x8x128xf32>
    %117 = arith.addf %109, %116 : vector<8x8x128xf32>
    %c3_118 = arith.constant 3 : index
    %c1_119 = arith.constant 1 : index
    %c0_120 = arith.constant 0 : index
    %c0_121 = arith.constant 0 : index
    %118 = vector.load %arg13[%c3_118, %c1_119, %c0_120, %c0_121] : memref<7x14x8x128xf32, #tpu.memory_space<vmem>>, vector<1x8x8x128xf32>
    %119 = vector.shape_cast %118 : vector<1x8x8x128xf32> to vector<8x8x128xf32>
    %c10_122 = arith.constant 10 : index
    %c0_123 = arith.constant 0 : index
    %120 = vector.load %arg2[%c10_122, %c0_123] : memref<49x128xf32, #tpu.memory_space<vmem>>, vector<1x128xf32>
    %121 = vector.shape_cast %120 : vector<1x128xf32> to vector<128xf32>
    %122 = vector.shape_cast %121 : vector<128xf32> to vector<1x1x128xf32>
    %123 = vector.broadcast %122 : vector<1x1x128xf32> to vector<8x8x128xf32>
    %124 = arith.mulf %119, %123 : vector<8x8x128xf32>
    %125 = arith.addf %117, %124 : vector<8x8x128xf32>
    %c4_124 = arith.constant 4 : index
    %c1_125 = arith.constant 1 : index
    %c0_126 = arith.constant 0 : index
    %c0_127 = arith.constant 0 : index
    %126 = vector.load %arg13[%c4_124, %c1_125, %c0_126, %c0_127] : memref<7x14x8x128xf32, #tpu.memory_space<vmem>>, vector<1x8x8x128xf32>
    %127 = vector.shape_cast %126 : vector<1x8x8x128xf32> to vector<8x8x128xf32>
    %c11_128 = arith.constant 11 : index
    %c0_129 = arith.constant 0 : index
    %128 = vector.load %arg2[%c11_128, %c0_129] : memref<49x128xf32, #tpu.memory_space<vmem>>, vector<1x128xf32>
    %129 = vector.shape_cast %128 : vector<1x128xf32> to vector<128xf32>
    %130 = vector.shape_cast %129 : vector<128xf32> to vector<1x1x128xf32>
    %131 = vector.broadcast %130 : vector<1x1x128xf32> to vector<8x8x128xf32>
    %132 = arith.mulf %127, %131 : vector<8x8x128xf32>
    %133 = arith.addf %125, %132 : vector<8x8x128xf32>
    %c5_130 = arith.constant 5 : index
    %c1_131 = arith.constant 1 : index
    %c0_132 = arith.constant 0 : index
    %c0_133 = arith.constant 0 : index
    %134 = vector.load %arg13[%c5_130, %c1_131, %c0_132, %c0_133] : memref<7x14x8x128xf32, #tpu.memory_space<vmem>>, vector<1x8x8x128xf32>
    %135 = vector.shape_cast %134 : vector<1x8x8x128xf32> to vector<8x8x128xf32>
    %c12 = arith.constant 12 : index
    %c0_134 = arith.constant 0 : index
    %136 = vector.load %arg2[%c12, %c0_134] : memref<49x128xf32, #tpu.memory_space<vmem>>, vector<1x128xf32>
    %137 = vector.shape_cast %136 : vector<1x128xf32> to vector<128xf32>
    %138 = vector.shape_cast %137 : vector<128xf32> to vector<1x1x128xf32>
    %139 = vector.broadcast %138 : vector<1x1x128xf32> to vector<8x8x128xf32>
    %140 = arith.mulf %135, %139 : vector<8x8x128xf32>
    %141 = arith.addf %133, %140 : vector<8x8x128xf32>
    %c6_135 = arith.constant 6 : index
    %c1_136 = arith.constant 1 : index
    %c0_137 = arith.constant 0 : index
    %c0_138 = arith.constant 0 : index
    %142 = vector.load %arg13[%c6_135, %c1_136, %c0_137, %c0_138] : memref<7x14x8x128xf32, #tpu.memory_space<vmem>>, vector<1x8x8x128xf32>
    %143 = vector.shape_cast %142 : vector<1x8x8x128xf32> to vector<8x8x128xf32>
    %c13 = arith.constant 13 : index
    %c0_139 = arith.constant 0 : index
    %144 = vector.load %arg2[%c13, %c0_139] : memref<49x128xf32, #tpu.memory_space<vmem>>, vector<1x128xf32>
    %145 = vector.shape_cast %144 : vector<1x128xf32> to vector<128xf32>
    %146 = vector.shape_cast %145 : vector<128xf32> to vector<1x1x128xf32>
    %147 = vector.broadcast %146 : vector<1x1x128xf32> to vector<8x8x128xf32>
    %148 = arith.mulf %143, %147 : vector<8x8x128xf32>
    %149 = arith.addf %141, %148 : vector<8x8x128xf32>
    %c0_140 = arith.constant 0 : index
    %c2_141 = arith.constant 2 : index
    %c0_142 = arith.constant 0 : index
    %c0_143 = arith.constant 0 : index
    %150 = vector.load %arg13[%c0_140, %c2_141, %c0_142, %c0_143] : memref<7x14x8x128xf32, #tpu.memory_space<vmem>>, vector<1x8x8x128xf32>
    %151 = vector.shape_cast %150 : vector<1x8x8x128xf32> to vector<8x8x128xf32>
    %c14 = arith.constant 14 : index
    %c0_144 = arith.constant 0 : index
    %152 = vector.load %arg2[%c14, %c0_144] : memref<49x128xf32, #tpu.memory_space<vmem>>, vector<1x128xf32>
    %153 = vector.shape_cast %152 : vector<1x128xf32> to vector<128xf32>
    %154 = vector.shape_cast %153 : vector<128xf32> to vector<1x1x128xf32>
    %155 = vector.broadcast %154 : vector<1x1x128xf32> to vector<8x8x128xf32>
    %156 = arith.mulf %151, %155 : vector<8x8x128xf32>
    %157 = arith.addf %149, %156 : vector<8x8x128xf32>
    %c1_145 = arith.constant 1 : index
    %c2_146 = arith.constant 2 : index
    %c0_147 = arith.constant 0 : index
    %c0_148 = arith.constant 0 : index
    %158 = vector.load %arg13[%c1_145, %c2_146, %c0_147, %c0_148] : memref<7x14x8x128xf32, #tpu.memory_space<vmem>>, vector<1x8x8x128xf32>
    %159 = vector.shape_cast %158 : vector<1x8x8x128xf32> to vector<8x8x128xf32>
    %c15 = arith.constant 15 : index
    %c0_149 = arith.constant 0 : index
    %160 = vector.load %arg2[%c15, %c0_149] : memref<49x128xf32, #tpu.memory_space<vmem>>, vector<1x128xf32>
    %161 = vector.shape_cast %160 : vector<1x128xf32> to vector<128xf32>
    %162 = vector.shape_cast %161 : vector<128xf32> to vector<1x1x128xf32>
    %163 = vector.broadcast %162 : vector<1x1x128xf32> to vector<8x8x128xf32>
    %164 = arith.mulf %159, %163 : vector<8x8x128xf32>
    %165 = arith.addf %157, %164 : vector<8x8x128xf32>
    %c2_150 = arith.constant 2 : index
    %c2_151 = arith.constant 2 : index
    %c0_152 = arith.constant 0 : index
    %c0_153 = arith.constant 0 : index
    %166 = vector.load %arg13[%c2_150, %c2_151, %c0_152, %c0_153] : memref<7x14x8x128xf32, #tpu.memory_space<vmem>>, vector<1x8x8x128xf32>
    %167 = vector.shape_cast %166 : vector<1x8x8x128xf32> to vector<8x8x128xf32>
    %c16 = arith.constant 16 : index
    %c0_154 = arith.constant 0 : index
    %168 = vector.load %arg2[%c16, %c0_154] : memref<49x128xf32, #tpu.memory_space<vmem>>, vector<1x128xf32>
    %169 = vector.shape_cast %168 : vector<1x128xf32> to vector<128xf32>
    %170 = vector.shape_cast %169 : vector<128xf32> to vector<1x1x128xf32>
    %171 = vector.broadcast %170 : vector<1x1x128xf32> to vector<8x8x128xf32>
    %172 = arith.mulf %167, %171 : vector<8x8x128xf32>
    %173 = arith.addf %165, %172 : vector<8x8x128xf32>
    %c3_155 = arith.constant 3 : index
    %c2_156 = arith.constant 2 : index
    %c0_157 = arith.constant 0 : index
    %c0_158 = arith.constant 0 : index
    %174 = vector.load %arg13[%c3_155, %c2_156, %c0_157, %c0_158] : memref<7x14x8x128xf32, #tpu.memory_space<vmem>>, vector<1x8x8x128xf32>
    %175 = vector.shape_cast %174 : vector<1x8x8x128xf32> to vector<8x8x128xf32>
    %c17 = arith.constant 17 : index
    %c0_159 = arith.constant 0 : index
    %176 = vector.load %arg2[%c17, %c0_159] : memref<49x128xf32, #tpu.memory_space<vmem>>, vector<1x128xf32>
    %177 = vector.shape_cast %176 : vector<1x128xf32> to vector<128xf32>
    %178 = vector.shape_cast %177 : vector<128xf32> to vector<1x1x128xf32>
    %179 = vector.broadcast %178 : vector<1x1x128xf32> to vector<8x8x128xf32>
    %180 = arith.mulf %175, %179 : vector<8x8x128xf32>
    %181 = arith.addf %173, %180 : vector<8x8x128xf32>
    %c4_160 = arith.constant 4 : index
    %c2_161 = arith.constant 2 : index
    %c0_162 = arith.constant 0 : index
    %c0_163 = arith.constant 0 : index
    %182 = vector.load %arg13[%c4_160, %c2_161, %c0_162, %c0_163] : memref<7x14x8x128xf32, #tpu.memory_space<vmem>>, vector<1x8x8x128xf32>
    %183 = vector.shape_cast %182 : vector<1x8x8x128xf32> to vector<8x8x128xf32>
    %c18 = arith.constant 18 : index
    %c0_164 = arith.constant 0 : index
    %184 = vector.load %arg2[%c18, %c0_164] : memref<49x128xf32, #tpu.memory_space<vmem>>, vector<1x128xf32>
    %185 = vector.shape_cast %184 : vector<1x128xf32> to vector<128xf32>
    %186 = vector.shape_cast %185 : vector<128xf32> to vector<1x1x128xf32>
    %187 = vector.broadcast %186 : vector<1x1x128xf32> to vector<8x8x128xf32>
    %188 = arith.mulf %183, %187 : vector<8x8x128xf32>
    %189 = arith.addf %181, %188 : vector<8x8x128xf32>
    %c5_165 = arith.constant 5 : index
    %c2_166 = arith.constant 2 : index
    %c0_167 = arith.constant 0 : index
    %c0_168 = arith.constant 0 : index
    %190 = vector.load %arg13[%c5_165, %c2_166, %c0_167, %c0_168] : memref<7x14x8x128xf32, #tpu.memory_space<vmem>>, vector<1x8x8x128xf32>
    %191 = vector.shape_cast %190 : vector<1x8x8x128xf32> to vector<8x8x128xf32>
    %c19 = arith.constant 19 : index
    %c0_169 = arith.constant 0 : index
    %192 = vector.load %arg2[%c19, %c0_169] : memref<49x128xf32, #tpu.memory_space<vmem>>, vector<1x128xf32>
    %193 = vector.shape_cast %192 : vector<1x128xf32> to vector<128xf32>
    %194 = vector.shape_cast %193 : vector<128xf32> to vector<1x1x128xf32>
    %195 = vector.broadcast %194 : vector<1x1x128xf32> to vector<8x8x128xf32>
    %196 = arith.mulf %191, %195 : vector<8x8x128xf32>
    %197 = arith.addf %189, %196 : vector<8x8x128xf32>
    %c6_170 = arith.constant 6 : index
    %c2_171 = arith.constant 2 : index
    %c0_172 = arith.constant 0 : index
    %c0_173 = arith.constant 0 : index
    %198 = vector.load %arg13[%c6_170, %c2_171, %c0_172, %c0_173] : memref<7x14x8x128xf32, #tpu.memory_space<vmem>>, vector<1x8x8x128xf32>
    %199 = vector.shape_cast %198 : vector<1x8x8x128xf32> to vector<8x8x128xf32>
    %c20 = arith.constant 20 : index
    %c0_174 = arith.constant 0 : index
    %200 = vector.load %arg2[%c20, %c0_174] : memref<49x128xf32, #tpu.memory_space<vmem>>, vector<1x128xf32>
    %201 = vector.shape_cast %200 : vector<1x128xf32> to vector<128xf32>
    %202 = vector.shape_cast %201 : vector<128xf32> to vector<1x1x128xf32>
    %203 = vector.broadcast %202 : vector<1x1x128xf32> to vector<8x8x128xf32>
    %204 = arith.mulf %199, %203 : vector<8x8x128xf32>
    %205 = arith.addf %197, %204 : vector<8x8x128xf32>
    %c0_175 = arith.constant 0 : index
    %c3_176 = arith.constant 3 : index
    %c0_177 = arith.constant 0 : index
    %c0_178 = arith.constant 0 : index
    %206 = vector.load %arg13[%c0_175, %c3_176, %c0_177, %c0_178] : memref<7x14x8x128xf32, #tpu.memory_space<vmem>>, vector<1x8x8x128xf32>
    %207 = vector.shape_cast %206 : vector<1x8x8x128xf32> to vector<8x8x128xf32>
    %c21 = arith.constant 21 : index
    %c0_179 = arith.constant 0 : index
    %208 = vector.load %arg2[%c21, %c0_179] : memref<49x128xf32, #tpu.memory_space<vmem>>, vector<1x128xf32>
    %209 = vector.shape_cast %208 : vector<1x128xf32> to vector<128xf32>
    %210 = vector.shape_cast %209 : vector<128xf32> to vector<1x1x128xf32>
    %211 = vector.broadcast %210 : vector<1x1x128xf32> to vector<8x8x128xf32>
    %212 = arith.mulf %207, %211 : vector<8x8x128xf32>
    %213 = arith.addf %205, %212 : vector<8x8x128xf32>
    %c1_180 = arith.constant 1 : index
    %c3_181 = arith.constant 3 : index
    %c0_182 = arith.constant 0 : index
    %c0_183 = arith.constant 0 : index
    %214 = vector.load %arg13[%c1_180, %c3_181, %c0_182, %c0_183] : memref<7x14x8x128xf32, #tpu.memory_space<vmem>>, vector<1x8x8x128xf32>
    %215 = vector.shape_cast %214 : vector<1x8x8x128xf32> to vector<8x8x128xf32>
    %c22 = arith.constant 22 : index
    %c0_184 = arith.constant 0 : index
    %216 = vector.load %arg2[%c22, %c0_184] : memref<49x128xf32, #tpu.memory_space<vmem>>, vector<1x128xf32>
    %217 = vector.shape_cast %216 : vector<1x128xf32> to vector<128xf32>
    %218 = vector.shape_cast %217 : vector<128xf32> to vector<1x1x128xf32>
    %219 = vector.broadcast %218 : vector<1x1x128xf32> to vector<8x8x128xf32>
    %220 = arith.mulf %215, %219 : vector<8x8x128xf32>
    %221 = arith.addf %213, %220 : vector<8x8x128xf32>
    %c2_185 = arith.constant 2 : index
    %c3_186 = arith.constant 3 : index
    %c0_187 = arith.constant 0 : index
    %c0_188 = arith.constant 0 : index
    %222 = vector.load %arg13[%c2_185, %c3_186, %c0_187, %c0_188] : memref<7x14x8x128xf32, #tpu.memory_space<vmem>>, vector<1x8x8x128xf32>
    %223 = vector.shape_cast %222 : vector<1x8x8x128xf32> to vector<8x8x128xf32>
    %c23 = arith.constant 23 : index
    %c0_189 = arith.constant 0 : index
    %224 = vector.load %arg2[%c23, %c0_189] : memref<49x128xf32, #tpu.memory_space<vmem>>, vector<1x128xf32>
    %225 = vector.shape_cast %224 : vector<1x128xf32> to vector<128xf32>
    %226 = vector.shape_cast %225 : vector<128xf32> to vector<1x1x128xf32>
    %227 = vector.broadcast %226 : vector<1x1x128xf32> to vector<8x8x128xf32>
    %228 = arith.mulf %223, %227 : vector<8x8x128xf32>
    %229 = arith.addf %221, %228 : vector<8x8x128xf32>
    %c3_190 = arith.constant 3 : index
    %c3_191 = arith.constant 3 : index
    %c0_192 = arith.constant 0 : index
    %c0_193 = arith.constant 0 : index
    %230 = vector.load %arg13[%c3_190, %c3_191, %c0_192, %c0_193] : memref<7x14x8x128xf32, #tpu.memory_space<vmem>>, vector<1x8x8x128xf32>
    %231 = vector.shape_cast %230 : vector<1x8x8x128xf32> to vector<8x8x128xf32>
    %c24 = arith.constant 24 : index
    %c0_194 = arith.constant 0 : index
    %232 = vector.load %arg2[%c24, %c0_194] : memref<49x128xf32, #tpu.memory_space<vmem>>, vector<1x128xf32>
    %233 = vector.shape_cast %232 : vector<1x128xf32> to vector<128xf32>
    %234 = vector.shape_cast %233 : vector<128xf32> to vector<1x1x128xf32>
    %235 = vector.broadcast %234 : vector<1x1x128xf32> to vector<8x8x128xf32>
    %236 = arith.mulf %231, %235 : vector<8x8x128xf32>
    %237 = arith.addf %229, %236 : vector<8x8x128xf32>
    %c4_195 = arith.constant 4 : index
    %c3_196 = arith.constant 3 : index
    %c0_197 = arith.constant 0 : index
    %c0_198 = arith.constant 0 : index
    %238 = vector.load %arg13[%c4_195, %c3_196, %c0_197, %c0_198] : memref<7x14x8x128xf32, #tpu.memory_space<vmem>>, vector<1x8x8x128xf32>
    %239 = vector.shape_cast %238 : vector<1x8x8x128xf32> to vector<8x8x128xf32>
    %c25 = arith.constant 25 : index
    %c0_199 = arith.constant 0 : index
    %240 = vector.load %arg2[%c25, %c0_199] : memref<49x128xf32, #tpu.memory_space<vmem>>, vector<1x128xf32>
    %241 = vector.shape_cast %240 : vector<1x128xf32> to vector<128xf32>
    %242 = vector.shape_cast %241 : vector<128xf32> to vector<1x1x128xf32>
    %243 = vector.broadcast %242 : vector<1x1x128xf32> to vector<8x8x128xf32>
    %244 = arith.mulf %239, %243 : vector<8x8x128xf32>
    %245 = arith.addf %237, %244 : vector<8x8x128xf32>
    %c5_200 = arith.constant 5 : index
    %c3_201 = arith.constant 3 : index
    %c0_202 = arith.constant 0 : index
    %c0_203 = arith.constant 0 : index
    %246 = vector.load %arg13[%c5_200, %c3_201, %c0_202, %c0_203] : memref<7x14x8x128xf32, #tpu.memory_space<vmem>>, vector<1x8x8x128xf32>
    %247 = vector.shape_cast %246 : vector<1x8x8x128xf32> to vector<8x8x128xf32>
    %c26 = arith.constant 26 : index
    %c0_204 = arith.constant 0 : index
    %248 = vector.load %arg2[%c26, %c0_204] : memref<49x128xf32, #tpu.memory_space<vmem>>, vector<1x128xf32>
    %249 = vector.shape_cast %248 : vector<1x128xf32> to vector<128xf32>
    %250 = vector.shape_cast %249 : vector<128xf32> to vector<1x1x128xf32>
    %251 = vector.broadcast %250 : vector<1x1x128xf32> to vector<8x8x128xf32>
    %252 = arith.mulf %247, %251 : vector<8x8x128xf32>
    %253 = arith.addf %245, %252 : vector<8x8x128xf32>
    %c6_205 = arith.constant 6 : index
    %c3_206 = arith.constant 3 : index
    %c0_207 = arith.constant 0 : index
    %c0_208 = arith.constant 0 : index
    %254 = vector.load %arg13[%c6_205, %c3_206, %c0_207, %c0_208] : memref<7x14x8x128xf32, #tpu.memory_space<vmem>>, vector<1x8x8x128xf32>
    %255 = vector.shape_cast %254 : vector<1x8x8x128xf32> to vector<8x8x128xf32>
    %c27 = arith.constant 27 : index
    %c0_209 = arith.constant 0 : index
    %256 = vector.load %arg2[%c27, %c0_209] : memref<49x128xf32, #tpu.memory_space<vmem>>, vector<1x128xf32>
    %257 = vector.shape_cast %256 : vector<1x128xf32> to vector<128xf32>
    %258 = vector.shape_cast %257 : vector<128xf32> to vector<1x1x128xf32>
    %259 = vector.broadcast %258 : vector<1x1x128xf32> to vector<8x8x128xf32>
    %260 = arith.mulf %255, %259 : vector<8x8x128xf32>
    %261 = arith.addf %253, %260 : vector<8x8x128xf32>
    %c0_210 = arith.constant 0 : index
    %c4_211 = arith.constant 4 : index
    %c0_212 = arith.constant 0 : index
    %c0_213 = arith.constant 0 : index
    %262 = vector.load %arg13[%c0_210, %c4_211, %c0_212, %c0_213] : memref<7x14x8x128xf32, #tpu.memory_space<vmem>>, vector<1x8x8x128xf32>
    %263 = vector.shape_cast %262 : vector<1x8x8x128xf32> to vector<8x8x128xf32>
    %c28 = arith.constant 28 : index
    %c0_214 = arith.constant 0 : index
    %264 = vector.load %arg2[%c28, %c0_214] : memref<49x128xf32, #tpu.memory_space<vmem>>, vector<1x128xf32>
    %265 = vector.shape_cast %264 : vector<1x128xf32> to vector<128xf32>
    %266 = vector.shape_cast %265 : vector<128xf32> to vector<1x1x128xf32>
    %267 = vector.broadcast %266 : vector<1x1x128xf32> to vector<8x8x128xf32>
    %268 = arith.mulf %263, %267 : vector<8x8x128xf32>
    %269 = arith.addf %261, %268 : vector<8x8x128xf32>
    %c1_215 = arith.constant 1 : index
    %c4_216 = arith.constant 4 : index
    %c0_217 = arith.constant 0 : index
    %c0_218 = arith.constant 0 : index
    %270 = vector.load %arg13[%c1_215, %c4_216, %c0_217, %c0_218] : memref<7x14x8x128xf32, #tpu.memory_space<vmem>>, vector<1x8x8x128xf32>
    %271 = vector.shape_cast %270 : vector<1x8x8x128xf32> to vector<8x8x128xf32>
    %c29 = arith.constant 29 : index
    %c0_219 = arith.constant 0 : index
    %272 = vector.load %arg2[%c29, %c0_219] : memref<49x128xf32, #tpu.memory_space<vmem>>, vector<1x128xf32>
    %273 = vector.shape_cast %272 : vector<1x128xf32> to vector<128xf32>
    %274 = vector.shape_cast %273 : vector<128xf32> to vector<1x1x128xf32>
    %275 = vector.broadcast %274 : vector<1x1x128xf32> to vector<8x8x128xf32>
    %276 = arith.mulf %271, %275 : vector<8x8x128xf32>
    %277 = arith.addf %269, %276 : vector<8x8x128xf32>
    %c2_220 = arith.constant 2 : index
    %c4_221 = arith.constant 4 : index
    %c0_222 = arith.constant 0 : index
    %c0_223 = arith.constant 0 : index
    %278 = vector.load %arg13[%c2_220, %c4_221, %c0_222, %c0_223] : memref<7x14x8x128xf32, #tpu.memory_space<vmem>>, vector<1x8x8x128xf32>
    %279 = vector.shape_cast %278 : vector<1x8x8x128xf32> to vector<8x8x128xf32>
    %c30 = arith.constant 30 : index
    %c0_224 = arith.constant 0 : index
    %280 = vector.load %arg2[%c30, %c0_224] : memref<49x128xf32, #tpu.memory_space<vmem>>, vector<1x128xf32>
    %281 = vector.shape_cast %280 : vector<1x128xf32> to vector<128xf32>
    %282 = vector.shape_cast %281 : vector<128xf32> to vector<1x1x128xf32>
    %283 = vector.broadcast %282 : vector<1x1x128xf32> to vector<8x8x128xf32>
    %284 = arith.mulf %279, %283 : vector<8x8x128xf32>
    %285 = arith.addf %277, %284 : vector<8x8x128xf32>
    %c3_225 = arith.constant 3 : index
    %c4_226 = arith.constant 4 : index
    %c0_227 = arith.constant 0 : index
    %c0_228 = arith.constant 0 : index
    %286 = vector.load %arg13[%c3_225, %c4_226, %c0_227, %c0_228] : memref<7x14x8x128xf32, #tpu.memory_space<vmem>>, vector<1x8x8x128xf32>
    %287 = vector.shape_cast %286 : vector<1x8x8x128xf32> to vector<8x8x128xf32>
    %c31 = arith.constant 31 : index
    %c0_229 = arith.constant 0 : index
    %288 = vector.load %arg2[%c31, %c0_229] : memref<49x128xf32, #tpu.memory_space<vmem>>, vector<1x128xf32>
    %289 = vector.shape_cast %288 : vector<1x128xf32> to vector<128xf32>
    %290 = vector.shape_cast %289 : vector<128xf32> to vector<1x1x128xf32>
    %291 = vector.broadcast %290 : vector<1x1x128xf32> to vector<8x8x128xf32>
    %292 = arith.mulf %287, %291 : vector<8x8x128xf32>
    %293 = arith.addf %285, %292 : vector<8x8x128xf32>
    %c4_230 = arith.constant 4 : index
    %c4_231 = arith.constant 4 : index
    %c0_232 = arith.constant 0 : index
    %c0_233 = arith.constant 0 : index
    %294 = vector.load %arg13[%c4_230, %c4_231, %c0_232, %c0_233] : memref<7x14x8x128xf32, #tpu.memory_space<vmem>>, vector<1x8x8x128xf32>
    %295 = vector.shape_cast %294 : vector<1x8x8x128xf32> to vector<8x8x128xf32>
    %c32 = arith.constant 32 : index
    %c0_234 = arith.constant 0 : index
    %296 = vector.load %arg2[%c32, %c0_234] : memref<49x128xf32, #tpu.memory_space<vmem>>, vector<1x128xf32>
    %297 = vector.shape_cast %296 : vector<1x128xf32> to vector<128xf32>
    %298 = vector.shape_cast %297 : vector<128xf32> to vector<1x1x128xf32>
    %299 = vector.broadcast %298 : vector<1x1x128xf32> to vector<8x8x128xf32>
    %300 = arith.mulf %295, %299 : vector<8x8x128xf32>
    %301 = arith.addf %293, %300 : vector<8x8x128xf32>
    %c5_235 = arith.constant 5 : index
    %c4_236 = arith.constant 4 : index
    %c0_237 = arith.constant 0 : index
    %c0_238 = arith.constant 0 : index
    %302 = vector.load %arg13[%c5_235, %c4_236, %c0_237, %c0_238] : memref<7x14x8x128xf32, #tpu.memory_space<vmem>>, vector<1x8x8x128xf32>
    %303 = vector.shape_cast %302 : vector<1x8x8x128xf32> to vector<8x8x128xf32>
    %c33 = arith.constant 33 : index
    %c0_239 = arith.constant 0 : index
    %304 = vector.load %arg2[%c33, %c0_239] : memref<49x128xf32, #tpu.memory_space<vmem>>, vector<1x128xf32>
    %305 = vector.shape_cast %304 : vector<1x128xf32> to vector<128xf32>
    %306 = vector.shape_cast %305 : vector<128xf32> to vector<1x1x128xf32>
    %307 = vector.broadcast %306 : vector<1x1x128xf32> to vector<8x8x128xf32>
    %308 = arith.mulf %303, %307 : vector<8x8x128xf32>
    %309 = arith.addf %301, %308 : vector<8x8x128xf32>
    %c6_240 = arith.constant 6 : index
    %c4_241 = arith.constant 4 : index
    %c0_242 = arith.constant 0 : index
    %c0_243 = arith.constant 0 : index
    %310 = vector.load %arg13[%c6_240, %c4_241, %c0_242, %c0_243] : memref<7x14x8x128xf32, #tpu.memory_space<vmem>>, vector<1x8x8x128xf32>
    %311 = vector.shape_cast %310 : vector<1x8x8x128xf32> to vector<8x8x128xf32>
    %c34 = arith.constant 34 : index
    %c0_244 = arith.constant 0 : index
    %312 = vector.load %arg2[%c34, %c0_244] : memref<49x128xf32, #tpu.memory_space<vmem>>, vector<1x128xf32>
    %313 = vector.shape_cast %312 : vector<1x128xf32> to vector<128xf32>
    %314 = vector.shape_cast %313 : vector<128xf32> to vector<1x1x128xf32>
    %315 = vector.broadcast %314 : vector<1x1x128xf32> to vector<8x8x128xf32>
    %316 = arith.mulf %311, %315 : vector<8x8x128xf32>
    %317 = arith.addf %309, %316 : vector<8x8x128xf32>
    %c0_245 = arith.constant 0 : index
    %c5_246 = arith.constant 5 : index
    %c0_247 = arith.constant 0 : index
    %c0_248 = arith.constant 0 : index
    %318 = vector.load %arg13[%c0_245, %c5_246, %c0_247, %c0_248] : memref<7x14x8x128xf32, #tpu.memory_space<vmem>>, vector<1x8x8x128xf32>
    %319 = vector.shape_cast %318 : vector<1x8x8x128xf32> to vector<8x8x128xf32>
    %c35 = arith.constant 35 : index
    %c0_249 = arith.constant 0 : index
    %320 = vector.load %arg2[%c35, %c0_249] : memref<49x128xf32, #tpu.memory_space<vmem>>, vector<1x128xf32>
    %321 = vector.shape_cast %320 : vector<1x128xf32> to vector<128xf32>
    %322 = vector.shape_cast %321 : vector<128xf32> to vector<1x1x128xf32>
    %323 = vector.broadcast %322 : vector<1x1x128xf32> to vector<8x8x128xf32>
    %324 = arith.mulf %319, %323 : vector<8x8x128xf32>
    %325 = arith.addf %317, %324 : vector<8x8x128xf32>
    %c1_250 = arith.constant 1 : index
    %c5_251 = arith.constant 5 : index
    %c0_252 = arith.constant 0 : index
    %c0_253 = arith.constant 0 : index
    %326 = vector.load %arg13[%c1_250, %c5_251, %c0_252, %c0_253] : memref<7x14x8x128xf32, #tpu.memory_space<vmem>>, vector<1x8x8x128xf32>
    %327 = vector.shape_cast %326 : vector<1x8x8x128xf32> to vector<8x8x128xf32>
    %c36 = arith.constant 36 : index
    %c0_254 = arith.constant 0 : index
    %328 = vector.load %arg2[%c36, %c0_254] : memref<49x128xf32, #tpu.memory_space<vmem>>, vector<1x128xf32>
    %329 = vector.shape_cast %328 : vector<1x128xf32> to vector<128xf32>
    %330 = vector.shape_cast %329 : vector<128xf32> to vector<1x1x128xf32>
    %331 = vector.broadcast %330 : vector<1x1x128xf32> to vector<8x8x128xf32>
    %332 = arith.mulf %327, %331 : vector<8x8x128xf32>
    %333 = arith.addf %325, %332 : vector<8x8x128xf32>
    %c2_255 = arith.constant 2 : index
    %c5_256 = arith.constant 5 : index
    %c0_257 = arith.constant 0 : index
    %c0_258 = arith.constant 0 : index
    %334 = vector.load %arg13[%c2_255, %c5_256, %c0_257, %c0_258] : memref<7x14x8x128xf32, #tpu.memory_space<vmem>>, vector<1x8x8x128xf32>
    %335 = vector.shape_cast %334 : vector<1x8x8x128xf32> to vector<8x8x128xf32>
    %c37 = arith.constant 37 : index
    %c0_259 = arith.constant 0 : index
    %336 = vector.load %arg2[%c37, %c0_259] : memref<49x128xf32, #tpu.memory_space<vmem>>, vector<1x128xf32>
    %337 = vector.shape_cast %336 : vector<1x128xf32> to vector<128xf32>
    %338 = vector.shape_cast %337 : vector<128xf32> to vector<1x1x128xf32>
    %339 = vector.broadcast %338 : vector<1x1x128xf32> to vector<8x8x128xf32>
    %340 = arith.mulf %335, %339 : vector<8x8x128xf32>
    %341 = arith.addf %333, %340 : vector<8x8x128xf32>
    %c3_260 = arith.constant 3 : index
    %c5_261 = arith.constant 5 : index
    %c0_262 = arith.constant 0 : index
    %c0_263 = arith.constant 0 : index
    %342 = vector.load %arg13[%c3_260, %c5_261, %c0_262, %c0_263] : memref<7x14x8x128xf32, #tpu.memory_space<vmem>>, vector<1x8x8x128xf32>
    %343 = vector.shape_cast %342 : vector<1x8x8x128xf32> to vector<8x8x128xf32>
    %c38 = arith.constant 38 : index
    %c0_264 = arith.constant 0 : index
    %344 = vector.load %arg2[%c38, %c0_264] : memref<49x128xf32, #tpu.memory_space<vmem>>, vector<1x128xf32>
    %345 = vector.shape_cast %344 : vector<1x128xf32> to vector<128xf32>
    %346 = vector.shape_cast %345 : vector<128xf32> to vector<1x1x128xf32>
    %347 = vector.broadcast %346 : vector<1x1x128xf32> to vector<8x8x128xf32>
    %348 = arith.mulf %343, %347 : vector<8x8x128xf32>
    %349 = arith.addf %341, %348 : vector<8x8x128xf32>
    %c4_265 = arith.constant 4 : index
    %c5_266 = arith.constant 5 : index
    %c0_267 = arith.constant 0 : index
    %c0_268 = arith.constant 0 : index
    %350 = vector.load %arg13[%c4_265, %c5_266, %c0_267, %c0_268] : memref<7x14x8x128xf32, #tpu.memory_space<vmem>>, vector<1x8x8x128xf32>
    %351 = vector.shape_cast %350 : vector<1x8x8x128xf32> to vector<8x8x128xf32>
    %c39 = arith.constant 39 : index
    %c0_269 = arith.constant 0 : index
    %352 = vector.load %arg2[%c39, %c0_269] : memref<49x128xf32, #tpu.memory_space<vmem>>, vector<1x128xf32>
    %353 = vector.shape_cast %352 : vector<1x128xf32> to vector<128xf32>
    %354 = vector.shape_cast %353 : vector<128xf32> to vector<1x1x128xf32>
    %355 = vector.broadcast %354 : vector<1x1x128xf32> to vector<8x8x128xf32>
    %356 = arith.mulf %351, %355 : vector<8x8x128xf32>
    %357 = arith.addf %349, %356 : vector<8x8x128xf32>
    %c5_270 = arith.constant 5 : index
    %c5_271 = arith.constant 5 : index
    %c0_272 = arith.constant 0 : index
    %c0_273 = arith.constant 0 : index
    %358 = vector.load %arg13[%c5_270, %c5_271, %c0_272, %c0_273] : memref<7x14x8x128xf32, #tpu.memory_space<vmem>>, vector<1x8x8x128xf32>
    %359 = vector.shape_cast %358 : vector<1x8x8x128xf32> to vector<8x8x128xf32>
    %c40 = arith.constant 40 : index
    %c0_274 = arith.constant 0 : index
    %360 = vector.load %arg2[%c40, %c0_274] : memref<49x128xf32, #tpu.memory_space<vmem>>, vector<1x128xf32>
    %361 = vector.shape_cast %360 : vector<1x128xf32> to vector<128xf32>
    %362 = vector.shape_cast %361 : vector<128xf32> to vector<1x1x128xf32>
    %363 = vector.broadcast %362 : vector<1x1x128xf32> to vector<8x8x128xf32>
    %364 = arith.mulf %359, %363 : vector<8x8x128xf32>
    %365 = arith.addf %357, %364 : vector<8x8x128xf32>
    %c6_275 = arith.constant 6 : index
    %c5_276 = arith.constant 5 : index
    %c0_277 = arith.constant 0 : index
    %c0_278 = arith.constant 0 : index
    %366 = vector.load %arg13[%c6_275, %c5_276, %c0_277, %c0_278] : memref<7x14x8x128xf32, #tpu.memory_space<vmem>>, vector<1x8x8x128xf32>
    %367 = vector.shape_cast %366 : vector<1x8x8x128xf32> to vector<8x8x128xf32>
    %c41 = arith.constant 41 : index
    %c0_279 = arith.constant 0 : index
    %368 = vector.load %arg2[%c41, %c0_279] : memref<49x128xf32, #tpu.memory_space<vmem>>, vector<1x128xf32>
    %369 = vector.shape_cast %368 : vector<1x128xf32> to vector<128xf32>
    %370 = vector.shape_cast %369 : vector<128xf32> to vector<1x1x128xf32>
    %371 = vector.broadcast %370 : vector<1x1x128xf32> to vector<8x8x128xf32>
    %372 = arith.mulf %367, %371 : vector<8x8x128xf32>
    %373 = arith.addf %365, %372 : vector<8x8x128xf32>
    %c0_280 = arith.constant 0 : index
    %c6_281 = arith.constant 6 : index
    %c0_282 = arith.constant 0 : index
    %c0_283 = arith.constant 0 : index
    %374 = vector.load %arg13[%c0_280, %c6_281, %c0_282, %c0_283] : memref<7x14x8x128xf32, #tpu.memory_space<vmem>>, vector<1x8x8x128xf32>
    %375 = vector.shape_cast %374 : vector<1x8x8x128xf32> to vector<8x8x128xf32>
    %c42 = arith.constant 42 : index
    %c0_284 = arith.constant 0 : index
    %376 = vector.load %arg2[%c42, %c0_284] : memref<49x128xf32, #tpu.memory_space<vmem>>, vector<1x128xf32>
    %377 = vector.shape_cast %376 : vector<1x128xf32> to vector<128xf32>
    %378 = vector.shape_cast %377 : vector<128xf32> to vector<1x1x128xf32>
    %379 = vector.broadcast %378 : vector<1x1x128xf32> to vector<8x8x128xf32>
    %380 = arith.mulf %375, %379 : vector<8x8x128xf32>
    %381 = arith.addf %373, %380 : vector<8x8x128xf32>
    %c1_285 = arith.constant 1 : index
    %c6_286 = arith.constant 6 : index
    %c0_287 = arith.constant 0 : index
    %c0_288 = arith.constant 0 : index
    %382 = vector.load %arg13[%c1_285, %c6_286, %c0_287, %c0_288] : memref<7x14x8x128xf32, #tpu.memory_space<vmem>>, vector<1x8x8x128xf32>
    %383 = vector.shape_cast %382 : vector<1x8x8x128xf32> to vector<8x8x128xf32>
    %c43 = arith.constant 43 : index
    %c0_289 = arith.constant 0 : index
    %384 = vector.load %arg2[%c43, %c0_289] : memref<49x128xf32, #tpu.memory_space<vmem>>, vector<1x128xf32>
    %385 = vector.shape_cast %384 : vector<1x128xf32> to vector<128xf32>
    %386 = vector.shape_cast %385 : vector<128xf32> to vector<1x1x128xf32>
    %387 = vector.broadcast %386 : vector<1x1x128xf32> to vector<8x8x128xf32>
    %388 = arith.mulf %383, %387 : vector<8x8x128xf32>
    %389 = arith.addf %381, %388 : vector<8x8x128xf32>
    %c2_290 = arith.constant 2 : index
    %c6_291 = arith.constant 6 : index
    %c0_292 = arith.constant 0 : index
    %c0_293 = arith.constant 0 : index
    %390 = vector.load %arg13[%c2_290, %c6_291, %c0_292, %c0_293] : memref<7x14x8x128xf32, #tpu.memory_space<vmem>>, vector<1x8x8x128xf32>
    %391 = vector.shape_cast %390 : vector<1x8x8x128xf32> to vector<8x8x128xf32>
    %c44 = arith.constant 44 : index
    %c0_294 = arith.constant 0 : index
    %392 = vector.load %arg2[%c44, %c0_294] : memref<49x128xf32, #tpu.memory_space<vmem>>, vector<1x128xf32>
    %393 = vector.shape_cast %392 : vector<1x128xf32> to vector<128xf32>
    %394 = vector.shape_cast %393 : vector<128xf32> to vector<1x1x128xf32>
    %395 = vector.broadcast %394 : vector<1x1x128xf32> to vector<8x8x128xf32>
    %396 = arith.mulf %391, %395 : vector<8x8x128xf32>
    %397 = arith.addf %389, %396 : vector<8x8x128xf32>
    %c3_295 = arith.constant 3 : index
    %c6_296 = arith.constant 6 : index
    %c0_297 = arith.constant 0 : index
    %c0_298 = arith.constant 0 : index
    %398 = vector.load %arg13[%c3_295, %c6_296, %c0_297, %c0_298] : memref<7x14x8x128xf32, #tpu.memory_space<vmem>>, vector<1x8x8x128xf32>
    %399 = vector.shape_cast %398 : vector<1x8x8x128xf32> to vector<8x8x128xf32>
    %c45 = arith.constant 45 : index
    %c0_299 = arith.constant 0 : index
    %400 = vector.load %arg2[%c45, %c0_299] : memref<49x128xf32, #tpu.memory_space<vmem>>, vector<1x128xf32>
    %401 = vector.shape_cast %400 : vector<1x128xf32> to vector<128xf32>
    %402 = vector.shape_cast %401 : vector<128xf32> to vector<1x1x128xf32>
    %403 = vector.broadcast %402 : vector<1x1x128xf32> to vector<8x8x128xf32>
    %404 = arith.mulf %399, %403 : vector<8x8x128xf32>
    %405 = arith.addf %397, %404 : vector<8x8x128xf32>
    %c4_300 = arith.constant 4 : index
    %c6_301 = arith.constant 6 : index
    %c0_302 = arith.constant 0 : index
    %c0_303 = arith.constant 0 : index
    %406 = vector.load %arg13[%c4_300, %c6_301, %c0_302, %c0_303] : memref<7x14x8x128xf32, #tpu.memory_space<vmem>>, vector<1x8x8x128xf32>
    %407 = vector.shape_cast %406 : vector<1x8x8x128xf32> to vector<8x8x128xf32>
    %c46 = arith.constant 46 : index
    %c0_304 = arith.constant 0 : index
    %408 = vector.load %arg2[%c46, %c0_304] : memref<49x128xf32, #tpu.memory_space<vmem>>, vector<1x128xf32>
    %409 = vector.shape_cast %408 : vector<1x128xf32> to vector<128xf32>
    %410 = vector.shape_cast %409 : vector<128xf32> to vector<1x1x128xf32>
    %411 = vector.broadcast %410 : vector<1x1x128xf32> to vector<8x8x128xf32>
    %412 = arith.mulf %407, %411 : vector<8x8x128xf32>
    %413 = arith.addf %405, %412 : vector<8x8x128xf32>
    %c5_305 = arith.constant 5 : index
    %c6_306 = arith.constant 6 : index
    %c0_307 = arith.constant 0 : index
    %c0_308 = arith.constant 0 : index
    %414 = vector.load %arg13[%c5_305, %c6_306, %c0_307, %c0_308] : memref<7x14x8x128xf32, #tpu.memory_space<vmem>>, vector<1x8x8x128xf32>
    %415 = vector.shape_cast %414 : vector<1x8x8x128xf32> to vector<8x8x128xf32>
    %c47 = arith.constant 47 : index
    %c0_309 = arith.constant 0 : index
    %416 = vector.load %arg2[%c47, %c0_309] : memref<49x128xf32, #tpu.memory_space<vmem>>, vector<1x128xf32>
    %417 = vector.shape_cast %416 : vector<1x128xf32> to vector<128xf32>
    %418 = vector.shape_cast %417 : vector<128xf32> to vector<1x1x128xf32>
    %419 = vector.broadcast %418 : vector<1x1x128xf32> to vector<8x8x128xf32>
    %420 = arith.mulf %415, %419 : vector<8x8x128xf32>
    %421 = arith.addf %413, %420 : vector<8x8x128xf32>
    %c6_310 = arith.constant 6 : index
    %c6_311 = arith.constant 6 : index
    %c0_312 = arith.constant 0 : index
    %c0_313 = arith.constant 0 : index
    %422 = vector.load %arg13[%c6_310, %c6_311, %c0_312, %c0_313] : memref<7x14x8x128xf32, #tpu.memory_space<vmem>>, vector<1x8x8x128xf32>
    %423 = vector.shape_cast %422 : vector<1x8x8x128xf32> to vector<8x8x128xf32>
    %c48 = arith.constant 48 : index
    %c0_314 = arith.constant 0 : index
    %424 = vector.load %arg2[%c48, %c0_314] : memref<49x128xf32, #tpu.memory_space<vmem>>, vector<1x128xf32>
    %425 = vector.shape_cast %424 : vector<1x128xf32> to vector<128xf32>
    %426 = vector.shape_cast %425 : vector<128xf32> to vector<1x1x128xf32>
    %427 = vector.broadcast %426 : vector<1x1x128xf32> to vector<8x8x128xf32>
    %428 = arith.mulf %423, %427 : vector<8x8x128xf32>
    %429 = arith.addf %421, %428 : vector<8x8x128xf32>
    %c0_315 = arith.constant 0 : index
    %c0_316 = arith.constant 0 : index
    %430 = vector.load %arg3[%c0_315, %c0_316] : memref<1x128xf32, #tpu.memory_space<vmem>>, vector<1x128xf32>
    %431 = vector.shape_cast %430 : vector<1x128xf32> to vector<1x1x128xf32>
    %432 = vector.broadcast %431 : vector<1x1x128xf32> to vector<8x8x128xf32>
    %433 = arith.addf %429, %432 : vector<8x8x128xf32>
    %434 = vector.shape_cast %1 : vector<8x8x128xf32> to vector<64x128xf32>
    %435 = vector.shape_cast %433 : vector<8x8x128xf32> to vector<64x128xf32>
    %c0_317 = arith.constant 0 : index
    %c0_318 = arith.constant 0 : index
    %436 = vector.load %arg4[%c0_317, %c0_318] : memref<1x128xf32, #tpu.memory_space<vmem>>, vector<1x128xf32>
    %c0_319 = arith.constant 0 : index
    %c0_320 = arith.constant 0 : index
    %437 = vector.load %arg5[%c0_319, %c0_320] : memref<1x128xf32, #tpu.memory_space<vmem>>, vector<1x128xf32>
    %cst_321 = arith.constant dense<0.000000e+00> : vector<64xf32>
    %438 = vector.multi_reduction <add>, %435, %cst_321 [1] : vector<64x128xf32> to vector<64xf32>
    %439 = vector.shape_cast %438 : vector<64xf32> to vector<64x1xf32>
    %cst_322 = arith.constant 1.280000e+02 : f32
    %440 = vector.broadcast %cst_322 : f32 to vector<64x1xf32>
    %441 = arith.divf %439, %440 : vector<64x1xf32>
    %442 = vector.broadcast %441 : vector<64x1xf32> to vector<64x128xf32>
    %443 = arith.subf %435, %442 : vector<64x128xf32>
    %444 = arith.mulf %443, %443 : vector<64x128xf32>
    %cst_323 = arith.constant dense<0.000000e+00> : vector<64xf32>
    %445 = vector.multi_reduction <add>, %444, %cst_323 [1] : vector<64x128xf32> to vector<64xf32>
    %446 = vector.shape_cast %445 : vector<64xf32> to vector<64x1xf32>
    %cst_324 = arith.constant 1.280000e+02 : f32
    %447 = vector.broadcast %cst_324 : f32 to vector<64x1xf32>
    %448 = arith.divf %446, %447 : vector<64x1xf32>
    %449 = vector.broadcast %441 : vector<64x1xf32> to vector<64x128xf32>
    %450 = arith.subf %435, %449 : vector<64x128xf32>
    %cst_325 = arith.constant 9.99999997E-7 : f32
    %451 = vector.broadcast %cst_325 : f32 to vector<64x1xf32>
    %452 = arith.addf %448, %451 : vector<64x1xf32>
    %453 = math.rsqrt %452 : vector<64x1xf32>
    %454 = vector.broadcast %453 : vector<64x1xf32> to vector<64x128xf32>
    %455 = arith.mulf %450, %454 : vector<64x128xf32>
    %456 = vector.broadcast %436 : vector<1x128xf32> to vector<64x128xf32>
    %457 = arith.mulf %455, %456 : vector<64x128xf32>
    %458 = vector.broadcast %437 : vector<1x128xf32> to vector<64x128xf32>
    %459 = arith.addf %457, %458 : vector<64x128xf32>
    %460 = arith.truncf %459 : vector<64x128xf32> to vector<64x128xbf16>
    %c0_326 = arith.constant 0 : index
    %c0_327 = arith.constant 0 : index
    %461 = vector.load %arg6[%c0_326, %c0_327] : memref<128x512xbf16, #tpu.memory_space<vmem>>, vector<128x512xbf16>
    %cst_328 = arith.constant dense<0.000000e+00> : vector<64x512xf32>
    %462 = tpu.matmul %460, %461, %cst_328 {dimension_numbers = #tpu.dot_dimension_numbers<[1], [0], [0], [1], [0, 0, 1, 1], [], []>} : vector<64x128xbf16>, vector<128x512xbf16>, vector<64x512xf32> -> vector<64x512xf32>
    %c0_329 = arith.constant 0 : index
    %c0_330 = arith.constant 0 : index
    %463 = vector.load %arg7[%c0_329, %c0_330] : memref<1x512xf32, #tpu.memory_space<vmem>>, vector<1x512xf32>
    %464 = vector.broadcast %463 : vector<1x512xf32> to vector<64x512xf32>
    %465 = arith.addf %462, %464 : vector<64x512xf32>
    %466 = arith.mulf %465, %465 : vector<64x512xf32>
    %467 = arith.mulf %465, %466 : vector<64x512xf32>
    %cst_331 = arith.constant 4.471500e-02 : f32
    %468 = vector.broadcast %cst_331 : f32 to vector<64x512xf32>
    %469 = arith.mulf %468, %467 : vector<64x512xf32>
    %470 = arith.addf %465, %469 : vector<64x512xf32>
    %cst_332 = arith.constant 0.797884583 : f32
    %471 = vector.broadcast %cst_332 : f32 to vector<64x512xf32>
    %472 = arith.mulf %471, %470 : vector<64x512xf32>
    %473 = math.tanh %472 : vector<64x512xf32>
    %cst_333 = arith.constant 1.000000e+00 : f32
    %474 = vector.broadcast %cst_333 : f32 to vector<64x512xf32>
    %475 = arith.addf %474, %473 : vector<64x512xf32>
    %cst_334 = arith.constant 5.000000e-01 : f32
    %476 = vector.broadcast %cst_334 : f32 to vector<64x512xf32>
    %477 = arith.mulf %476, %475 : vector<64x512xf32>
    %478 = arith.mulf %465, %477 : vector<64x512xf32>
    %479 = arith.truncf %478 : vector<64x512xf32> to vector<64x512xbf16>
    %c0_335 = arith.constant 0 : index
    %c0_336 = arith.constant 0 : index
    %480 = vector.load %arg8[%c0_335, %c0_336] : memref<512x128xbf16, #tpu.memory_space<vmem>>, vector<512x128xbf16>
    %cst_337 = arith.constant dense<0.000000e+00> : vector<64x128xf32>
    %481 = tpu.matmul %479, %480, %cst_337 {dimension_numbers = #tpu.dot_dimension_numbers<[1], [0], [0], [1], [0, 0, 1, 1], [], []>} : vector<64x512xbf16>, vector<512x128xbf16>, vector<64x128xf32> -> vector<64x128xf32>
    %c0_338 = arith.constant 0 : index
    %c0_339 = arith.constant 0 : index
    %482 = vector.load %arg9[%c0_338, %c0_339] : memref<1x128xf32, #tpu.memory_space<vmem>>, vector<1x128xf32>
    %483 = vector.broadcast %482 : vector<1x128xf32> to vector<64x128xf32>
    %484 = arith.addf %481, %483 : vector<64x128xf32>
    %c0_340 = arith.constant 0 : index
    %c0_341 = arith.constant 0 : index
    %485 = vector.load %arg10[%c0_340, %c0_341] : memref<1x128xf32, #tpu.memory_space<vmem>>, vector<1x128xf32>
    %486 = vector.broadcast %485 : vector<1x128xf32> to vector<64x128xf32>
    %487 = arith.mulf %486, %484 : vector<64x128xf32>
    %488 = arith.addf %434, %487 : vector<64x128xf32>
    %cst_342 = arith.constant dense<0.000000e+00> : vector<128xf32>
    %489 = vector.multi_reduction <add>, %488, %cst_342 [0] : vector<64x128xf32> to vector<128xf32>
    %490 = vector.shape_cast %489 : vector<128xf32> to vector<1x128xf32>
    %cst_343 = arith.constant 6.400000e+01 : f32
    %491 = vector.broadcast %cst_343 : f32 to vector<1x128xf32>
    %492 = arith.divf %490, %491 : vector<1x128xf32>
    %c0_344 = arith.constant 0 : index
    %c0_345 = arith.constant 0 : index
    %c0_346 = arith.constant 0 : index
    %493 = vector.load %arg11[%c0_344, %c0_345, %c0_346] : memref<1x1x128xf32, #tpu.memory_space<vmem>>, vector<1x1x128xf32>
    %494 = vector.shape_cast %493 : vector<1x1x128xf32> to vector<1x128xf32>
    %495 = vector.shape_cast %492 : vector<1x128xf32> to vector<1x1x128xf32>
    tpu.vector_store %arg11[%c0_344, %c0_345, %c0_346], %495 {strides = array<i32>} : memref<1x1x128xf32, #tpu.memory_space<vmem>>, vector<1x1x128xf32>,
    return
  }
  func.func @transform_0(%arg0: i32) -> (i32, i32, i32, i32) {
    %c0_i32 = arith.constant 0 : i32
    %c0_i32_0 = arith.constant 0 : i32
    %c0_i32_1 = arith.constant 0 : i32
    %c0_i32_2 = arith.constant 0 : i32
    return %arg0, %c0_i32, %c0_i32_0, %c0_i32_1 : i32, i32, i32, i32
  }
  func.func @transform_1(%arg0: i32) -> (i32, i32) {
    %c0_i32 = arith.constant 0 : i32
    %c0_i32_0 = arith.constant 0 : i32
    %c0_i32_1 = arith.constant 0 : i32
    return %c0_i32, %c0_i32_0 : i32, i32
  }
  func.func @transform_2(%arg0: i32) -> (i32, i32) {
    %c0_i32 = arith.constant 0 : i32
    %c0_i32_0 = arith.constant 0 : i32
    %c0_i32_1 = arith.constant 0 : i32
    return %c0_i32, %c0_i32_0 : i32, i32
  }
  func.func @transform_3(%arg0: i32) -> (i32, i32) {
    %c0_i32 = arith.constant 0 : i32
    %c0_i32_0 = arith.constant 0 : i32
    %c0_i32_1 = arith.constant 0 : i32
    return %c0_i32, %c0_i32_0 : i32, i32
  }
  func.func @transform_4(%arg0: i32) -> (i32, i32) {
    %c0_i32 = arith.constant 0 : i32
    %c0_i32_0 = arith.constant 0 : i32
    %c0_i32_1 = arith.constant 0 : i32
    return %c0_i32, %c0_i32_0 : i32, i32
  }
  func.func @transform_5(%arg0: i32) -> (i32, i32) {
    %c0_i32 = arith.constant 0 : i32
    %c0_i32_0 = arith.constant 0 : i32
    %c0_i32_1 = arith.constant 0 : i32
    return %c0_i32, %c0_i32_0 : i32, i32
  }
  func.func @transform_6(%arg0: i32) -> (i32, i32) {
    %c0_i32 = arith.constant 0 : i32
    %c0_i32_0 = arith.constant 0 : i32
    %c0_i32_1 = arith.constant 0 : i32
    return %c0_i32, %c0_i32_0 : i32, i32
  }
  func.func @transform_7(%arg0: i32) -> (i32, i32) {
    %c0_i32 = arith.constant 0 : i32
    %c0_i32_0 = arith.constant 0 : i32
    %c0_i32_1 = arith.constant 0 : i32
    return %c0_i32, %c0_i32_0 : i32, i32
  }
  func.func @transform_8(%arg0: i32) -> (i32, i32) {
    %c0_i32 = arith.constant 0 : i32
    %c0_i32_0 = arith.constant 0 : i32
    %c0_i32_1 = arith.constant 0 : i32
    return %c0_i32, %c0_i32_0 : i32, i32
  }
  func.func @transform_9(%arg0: i32) -> (i32, i32) {
    %c0_i32 = arith.constant 0 : i32
    %c0_i32_0 = arith.constant 0 : i32
    %c0_i32_1 = arith.constant 0 : i32
    return %c0_i32, %c0_i32_0 : i32, i32
  }
  func.func @transform_10(%arg0: i32) -> (i32, i32, i32) {
    %c0_i32 = arith.constant 0 : i32
    %c0_i32_0 = arith.constant 0 : i32
    %c0_i32_1 = arith.constant 0 : i32
    return %arg0, %c0_i32, %c0_i32_0 : i32, i32, i32
  }
}

</mosaic_0001>

<bundles_post_ra>
// kernel: convnext_forward.3
= control target key start
LH: loop header
LB: loop body
LE: loop exit
PB: predicated region body
PF: predicated region fallthrough
CT: control target
= control target key end

     0   :  { %s646_s18 = smov 0   ;;  %s697_s0 = inlined_call_operand.vmem [shape: f32[64,8,16], index: 0, kind: input, shape index: {}]   ;;  %s698_s1 = inlined_call_operand.vmem [shape: bf16[64,128], index: 1, kind: input, shape index: {}]   ;;  %s699_s2 = inlined_call_operand.vmem [shape: f32[1,128], index: 2, kind: input, shape index: {}]   ;;  %s700_s3 = inlined_call_operand.vmem [shape: f32[1,128], index: 3, kind: input, shape index: {}]   ;;  %s701_s4 = inlined_call_operand.vmem [shape: f32[1,128], index: 4, kind: input, shape index: {}]   ;;  %s702_s5 = inlined_call_operand.vmem [shape: f32[128,128], index: 5, kind: output, shape index: {}]  }
   0x1 LB: > { %s652_s19 = sadd.s32 4294967295, %s612_s18   ;;  %p538_p0 = scmp.ge.s32.totalorder %s612_s18, 1  ;;  %s612_s18 = sphi %s646_s18, %s15_s18  }
   0x2   : > { %p188_p1 = scmp.lt.s32.totalorder %s612_s18, 17 }
   0x4   : > { %p189_p2 = pnand %p538_p0, %p188_p1 }
   0x5   : > { %v600_v0 = vld [vmem:[%s698_s1 + $0x8] sm:$0xff] (!%p189_p2)   ;;  %v614_v1 = vmov (!%p189_p2), 0.0   ;;  %v601_v2 = vld [vmem:[%s698_s1] sm:$0xff] (!%p189_p2)   ;;  %vm615_vm0 = vmmov (!%p189_p2), 0   ;;  %s539_s24 = sshll.u32 (!%p189_p2), %s652_s19, 2  ;;  %v602_v3 = vld [vmem:[%s698_s1 + $0x10] sm:$0xff] (!%p189_p2)  }
   0x6   : > { %192 = sbr.rel (%p189_p2) target bundleno = 557 (0x22d), region = 40  ;;  %566 = vmatprep.subr.bf16.mxu0 (!%p189_p2), %v614_v1  ;;  %572 = vmatprep.subr.bf16.mxu1 (!%p189_p2), %v614_v1  ;;  %p216_p3 = scmp.lt.s32.totalorder (!%p189_p2), %s539_s24, 63  ;;  %vm241_vm1 = vcmask (!%p189_p2), 130048   ;;  %v603_v6 = vld [vmem:[%s698_s1 + $0x18] sm:$0xff] (!%p189_p2)   ;;  %v553_v29 = vld [vmem:[%s699_s2] ss:$0 sm:$0xff] (!%p189_p2) }
   0x7   : > { %567 = vmatpush3.bf16.msra.mxu0 (!%p189_p2), %v600_v0  ;;  %568 = vmatprep.mubr.msk.bf16.mxu0 (!%p189_p2), %vm615_vm0, %v614_v1  ;;  %p221_p4 = scmp.lt.s32.totalorder (!%p189_p2), %s652_s19, 15  ;;  %v554_v42 = vld [vmem:[%s700_s3] ss:$0 sm:$0xff] (!%p189_p2) }
   0x8   : > { %573 = vmatpush3.bf16.msra.mxu1 (!%p189_p2), %v601_v2  ;;  %574 = vmatprep.mubr.msk.bf16.mxu1 (!%p189_p2), %vm615_vm0, %v614_v1  ;;  %v555_v44 = vld [vmem:[%s701_s4] ss:$0 sm:$0xff] (!%p189_p2) }
   0x9   : > { %578 = vmatprep.subr.bf16.mxu0 (!%p189_p2), %v614_v1  ;;  %584 = vmatprep.subr.bf16.mxu1 (!%p189_p2), %v614_v1 }
   0xd   : > { %s704_s24 = smov (!%p216_p3, %s539_s24), 63  ;;  %s706_s19 = smov (!%p221_p4, %s652_s19), 15 }
   0xe   : > { %s540_s25 = sshll.u32 %s704_s24, 3  ;;  %s541_s12 = sshll.u32 %s706_s19, 3 }
   0xf   : > { %s219_s28 = scalar_lea.vmem %s697_s0, %s540_s25  ;;  %s224_s17 = scalar_lea.vmem %s702_s5, %s541_s12 }
  0x10   : > { %v542_v4 = vld [vmem:[%s219_s28 + $0x8] sm:$0xff]  ;;  %v226_v5 = vld [vmem:[%s219_s28] sm:$0xff]  ;;  %v547_v9 = vld [vmem:[%s219_s28 + $0x10] sm:$0xff] }
  0x11   : > { %v232_v7 = vpack.c.bf16 %v542_v4, %v542_v4  ;;  %v227_v8 = vpack.c.bf16 %v226_v5, %v226_v5  ;;  %v550_v10 = vld [vmem:[%s219_s28 + $0x18] sm:$0xff]  ;;  %v336_v11 = vpack.c.bf16 %v547_v9, %v547_v9 }
  0x12   : > { %v391_v12 = vpack.c.bf16 %v550_v10, %v550_v10 }
  0x13   : > { %569 = vmatmul.mubr.msk.bf16.vlgmr.msra.gmra.mrb[0].mxu0 %vm241_vm1, %v232_v7  ;;  %575 = vmatmul.mubr.msk.bf16.vlgmr.msra.gmra.mrb[0].mxu1 %vm241_vm1, %v227_v8 }
  0x14   : > { %579 = vmatpush3.bf16.msra.mxu0 %v602_v3  ;;  %585 = vmatpush3.bf16.msra.mxu1 %v603_v6 }
  0x15   : > { %580 = vmatprep.mubr.msk.bf16.mxu0 %vm615_vm0, %v614_v1  ;;  %586 = vmatprep.mubr.msk.bf16.mxu1 %vm615_vm0, %v614_v1 }
  0x1b   : > { %581 = vmatmul.mubr.msk.bf16.vlgmr.msra.gmra.mrb[4].mxu0 %vm241_vm1, %v336_v11  ;;  %587 = vmatmul.mubr.msk.bf16.vlgmr.msra.gmra.mrb[4].mxu1 %vm241_vm1, %v391_v12 }
  0xe6   : > { %v279_v13 = vpop.f32.mrb[0].mxu0  ;;  %v328_v14 = vpop.f32.mrb[0].mxu1 }
  0xe7   : > { %v329_v15 = vadd.f32 %v328_v14, %v279_v13  ;;  %v570_v16 = vpop.f32.mrb[1].mxu0  ;;  %v576_v17 = vpop.f32.mrb[1].mxu1 }
  0xe8   : > { %v282_v18 = vpop.f32.mrb[2].mxu0  ;;  %v331_v19 = vpop.f32.mrb[2].mxu1 }
  0xe9   : > { %v571_v20 = vpop.f32.mrb[3].mxu0  ;;  %v577_v21 = vpop.f32.mrb[3].mxu1 }
  0xee   : > { %v382_v22 = vpop.f32.mrb[4].mxu0  ;;  %v437_v23 = vpop.f32.mrb[4].mxu1 }
  0xef   : > { %v388_v24 = vadd.f32 %v382_v22, %v329_v15  ;;  %v582_v25 = vpop.f32.mrb[5].mxu0  ;;  %v588_v26 = vpop.f32.mrb[5].mxu1 }
  0xf0   : > { %v385_v27 = vpop.f32.mrb[6].mxu0  ;;  %v440_v28 = vpop.f32.mrb[6].mxu1 }
  0xf1   : > { %v443_v30 = vadd.f32 %v437_v23, %v388_v24  ;;  %v583_v31 = vpop.f32.mrb[7].mxu0  ;;  %v589_v32 = vpop.f32.mrb[7].mxu1 }
  0xf3   : > { %v451_v33 = vadd.f32 %v553_v29, %v443_v30 }
  0xf5   : > { %454 = vadd.xlane.f32.xlu0 %v451_v33 }
 0x182   : > { %v455_v34 = vpop.xlane.xlu0 %454 }
 0x183   : > { %v457_v35 = vmul.f32 0.0078125, %v455_v34 }
 0x185   : > { %v458_v36 = vsub.f32 %v451_v33, %v457_v35 }
 0x187   : > { %v459_v37 = vmul.f32 %v458_v36, %v458_v36 }
 0x189   : > { %460 = vadd.xlane.f32.xlu0 %v459_v37 }
 0x216   : > { %v461_v38 = vpop.xlane.xlu0 %460 }
 0x217   : > { %v462_v39 = vmul.f32 0.0078125, %v461_v38 }
 0x219   : > { %v463_v40 = vadd.f32 1e-06, %v462_v39 }
 0x21b   : > { %604 = vrsqrt.f32 %v463_v40 }
 0x225   : > { %v605_v41 = vpop.eup %604 }
 0x226   : > { %v465_v43 = vmul.f32 %v605_v41, %v458_v36 }
 0x228   : > { %v472_v45 = vmul.f32 %v554_v42, %v465_v43 }
 0x22a   : > { %v479_v46 = vadd.f32 %v555_v44, %v472_v45 }
 0x22c   : > { %480 = vst [vmem:[%s224_s17] sm:$0xff] %v479_v46 }
 0x22d PF: > { %s15_s18 = sadd.s32 1, %s612_s18  }
 0x22e   : > { %p12_p5 = scmp.ge.s32.totalorder %s15_s18, 18  }
 0x230   :  { %14 = sbr.rel (!%p12_p5) target bundleno = 1 (0x1), region = 73 }

// kernel: convnext_forward.5
= control target key start
LH: loop header
LB: loop body
LE: loop exit
PB: predicated region body
PF: predicated region fallthrough
CT: control target
= control target key end

     0   :  { %vm25_vm0 = vcmask 1041408   ;;  %s341_s0 = inlined_call_operand.vmem [shape: f32[2,128], index: 0, kind: input, shape index: {}]   ;;  %s342_s1 = inlined_call_operand.vmem [shape: f32[1,128], index: 1, kind: input, shape index: {}]   ;;  %s343_s2 = inlined_call_operand.vmem [shape: f32[1,128], index: 2, kind: input, shape index: {}]   ;;  %s344_s3 = inlined_call_operand.vmem [shape: bf16[128,128], index: 3, kind: input, shape index: {}]   ;;  %s345_s4 = inlined_call_operand.vmem [shape: f32[1,128], index: 4, kind: input, shape index: {}]   ;;  %s346_s5 = inlined_call_operand.hbm [shape: f32[2,128], index: 5, kind: output, shape index: {}]  }
   0x1   :  { %v22_v0 = vld [vmem:[%s341_s0] sm:$0x3] }
   0x2   :  { %v26_v1 = vsel %vm25_vm0, %v22_v0, 0.0 }
   0x3   :  { %27 = vadd.xlane.f32.xlu0 %v26_v1 }
   0x4   :  { %10 = vsyncpa [#allocation3], 0  ;;  %v224_v2 = vld [vmem:[%s344_s3] sm:$0xff]   ;;  %v258_v3 = vmov 0.0   ;;  %v225_v4 = vld [vmem:[%s344_s3 + $0x8] sm:$0xff]   ;;  %vm259_vm1 = vmmov 0  }
   0x5   :  { %201 = vmatprep.subr.bf16.mxu0 %v258_v3  ;;  %v226_v10 = vld [vmem:[%s344_s3 + $0x10] sm:$0xff]   ;;  %v227_v11 = vld [vmem:[%s344_s3 + $0x18] sm:$0xff]   ;;  %v228_v12 = vld [vmem:[%s344_s3 + $0x20] sm:$0xff]   ;;  %217 = vmatprep.mubr.msk.bf16.mxu0 %vm259_vm1, %v258_v3  ;;  %s260_s15 = smov [#allocation2]  }
   0x6   :  { %202 = vmatpush3.bf16.msra.mxu0 %v224_v2  ;;  %v229_v13 = vld [vmem:[%s344_s3 + $0x28] sm:$0xff]   ;;  %v230_v14 = vld [vmem:[%s344_s3 + $0x30] sm:$0xff]   ;;  %v231_v15 = vld [vmem:[%s344_s3 + $0x38] sm:$0xff]   ;;  %s173_s16 = sshll.u32 %s260_s15, 4  ;;  %s174_s16 = int_to_ptr.vmem [resolvable:$true] %s173_s16 }
   0x7   :  { %203 = vmatprep.subr.bf16.mxu0 %v258_v3  ;;  %v181_v20 = vld [vmem:[%s342_s1] ss:$0 sm:$0xff]  ;;  %s234_s1 = scalar_lea.vmem %s174_s16, 32  ;;  %p239_p1 = scmp.lt.s32.totalorder %s174_s16, %s174_s16 }
   0x8   :  { %v182_v22 = vld [vmem:[%s343_s2] ss:$0 sm:$0xff]  ;;  %p235_p0 = scmp.ne.s32.totalorder %s174_s16, %s234_s1  ;;  %p240_p2 = scmp.lt.s32.totalorder %s234_s1, %s234_s1 }
   0x9   :  { %v183_v26 = vld [vmem:[%s345_s4] ss:$0 sm:$0xff] }
   0xa   :  { %204 = vmatpush3.bf16.msra.mxu0 %v225_v4  ;;  %p241_p3 = por %p240_p2, %p239_p1 }
   0xb   :  { %205 = vmatprep.subr.bf16.mxu0 %v258_v3 }
   0xc   :  { %p242_p4 = pnand %p241_p3, %p235_p0 }
   0xe   :  { %206 = vmatpush3.bf16.msra.mxu0 %v226_v10 }
   0xf   :  { %207 = vmatprep.subr.bf16.mxu0 %v258_v3 }
  0x12   :  { %208 = vmatpush3.bf16.msra.mxu0 %v227_v11 }
  0x13   :  { %209 = vmatprep.subr.bf16.mxu0 %v258_v3 }
  0x16   :  { %210 = vmatpush3.bf16.msra.mxu0 %v228_v12 }
  0x17   :  { %211 = vmatprep.subr.bf16.mxu0 %v258_v3 }
  0x1a   :  { %212 = vmatpush3.bf16.msra.mxu0 %v229_v13 }
  0x1b   :  { %213 = vmatprep.subr.bf16.mxu0 %v258_v3 }
  0x1e   :  { %214 = vmatpush3.bf16.msra.mxu0 %v230_v14 }
  0x1f   :  { %215 = vmatprep.subr.bf16.mxu0 %v258_v3 }
  0x22   :  { %216 = vmatpush3.bf16.msra.mxu0 %v231_v15 }
  0x90   :  { %v28_v5 = vpop.xlane.xlu0 %27 }
  0x91   :  { %v30_v6 = vmul.f32 0.0078125, %v28_v5 }
  0x93   :  { %v31_v7 = vsub.f32 %v22_v0, %v30_v6 }
  0x95   :  { %v32_v8 = vmul.f32 %v31_v7, %v31_v7 }
  0x97   :  { %v33_v9 = vsel %vm25_vm0, %v32_v8, 0.0 }
  0x98   :  { %34 = vadd.xlane.f32.xlu0 %v33_v9 }
 0x125   :  { %v35_v16 = vpop.xlane.xlu0 %34 }
 0x126   :  { %v36_v17 = vmul.f32 0.0078125, %v35_v16 }
 0x128   :  { %v37_v18 = vadd.f32 1e-06, %v36_v17 }
 0x12a   :  { %232 = vrsqrt.f32 %v37_v18 }
 0x134   :  { %v233_v19 = vpop.eup %232 }
 0x135   :  { %v39_v21 = vmul.f32 %v233_v19, %v31_v7 }
 0x137   :  { %v46_v23 = vmul.f32 %v181_v20, %v39_v21 }
 0x139   :  { %v53_v24 = vadd.f32 %v182_v22, %v46_v23 }
 0x13b   :  { %v54_v25 = vpack.c.bf16 %v53_v24, %v53_v24 }
 0x13d   :  { %218 = vmatmul.mubr.bf16.vlgmr.msra.gmra.mrb[0].mxu0 %v54_v25 }
 0x210   :  { %v160_v27 = vpop.f32.mrb[0].mxu0 }
 0x211   :  { %v161_v28 = vadd.f32 %v183_v26, %v160_v27  ;;  %v219_v29 = vpop.f32.mrb[1].mxu0 }
 0x212   :  { %v163_v30 = vpop.f32.mrb[2].mxu0 }
 0x213   :  { %166 = vst [vmem:[#allocation2] sm:$0x3] %v161_v28  ;;  %v220_v31 = vpop.f32.mrb[3].mxu0 }
 0x214   :  { %245 = shalt.err (!%p242_p4)
}
 0x215   :  { %s246_s4 = scalar_lea.hbm %s346_s5, 32 }
 0x216   :  { %p247_p5 = scmp.ne.s32.totalorder %s346_s5, %s246_s4  ;;  %p250_p6 = scmp.lt.u32.totalorder %s246_s4, %s346_s5 }
 0x218   :  { %p252_p7 = pnand %p250_p6, %p247_p5 }
 0x21a   :  { %255 = shalt.err (!%p252_p7)
}
 0x21b   :  { %176 = dma.vmem_to_hbm [thread:$0]  %s174_s16, 32, %s346_s5, [#allocation3]  }
 0x21c   :  { %256 = dma.done.wait [#allocation3], 32  }
 0x21d   :  { %257 = vsyncadd [#allocation3], 4294967264 }
 0x21e   :  { %180 = vsyncpa [#allocation3], 1 }

// kernel: convnext_forward.4
= control target key start
LH: loop header
LB: loop body
LE: loop exit
PB: predicated region body
PF: predicated region fallthrough
CT: control target
= control target key end

     0   :  { %s3779_s13 = smov 0   ;;  %s5923_s0 = inlined_call_operand.vmem [shape: f32[2,8,8,128], index: 0, kind: input, shape index: {}]   ;;  %s5924_s1 = inlined_call_operand.vmem [shape: f32[49,128], index: 1, kind: input, shape index: {}]   ;;  %s5925_s2 = inlined_call_operand.vmem [shape: f32[1,128], index: 2, kind: input, shape index: {}]   ;;  %s5926_s3 = inlined_call_operand.vmem [shape: f32[1,128], index: 3, kind: input, shape index: {}]   ;;  %s5927_s4 = inlined_call_operand.vmem [shape: f32[1,128], index: 4, kind: input, shape index: {}]   ;;  %s5928_s5 = inlined_call_operand.vmem [shape: bf16[128,512], index: 5, kind: input, shape index: {}]   ;;  %s5929_s6 = inlined_call_operand.vmem [shape: f32[1,512], index: 6, kind: input, shape index: {}]   ;;  %s5930_s7 = inlined_call_operand.vmem [shape: bf16[512,128], index: 7, kind: input, shape index: {}]   ;;  %s5931_s8 = inlined_call_operand.vmem [shape: f32[1,128], index: 8, kind: input, shape index: {}]   ;;  %s5932_s9 = inlined_call_operand.vmem [shape: f32[1,128], index: 9, kind: input, shape index: {}]   ;;  %s5933_s10 = inlined_call_operand.vmem [shape: f32[2,1,128], index: 10, kind: output, shape index: {}]  }
   0x1 LB: > { %s3302_s14 = sadd.s32 4294967295, %s3720_s13   ;;  %p3306_p0 = scmp.ge.s32.totalorder %s3720_s13, 1  ;;  %s3720_s13 = sphi %s3779_s13, %s20_s13  }
   0x2   : > { %p312_p1 = scmp.lt.s32.totalorder %s3720_s13, 3 }
   0x4   : > { %p313_p2 = pnand %p3306_p0, %p312_p1 }
   0x6   : > { %316 = sbr.rel (%p313_p2) target bundleno = 1070 (0x42e), region = 60 }
   0xd   : > { %p3787_p3 = scmp.lt.s32.totalorder %s3302_s14, 1  ;;  %v3794_v0 = vld [vmem:[%s5924_s1] ss:$0 sm:$0xff]  ;;  %v3799_v1 = vld [vmem:[%s5924_s1 + $0x1] ss:$0 sm:$0xff]  ;;  %v3722_v2 = vmov 0.0  }
   0xe   : > { %6042 = vst [vmem:[#allocation4_spill] sm:$0xff] %v3794_v0  ;;  %365 = vst [vmem:[#allocation2] sm:$0xff] %v3722_v2  ;;  %v572_v3 = vmul.f32 0.0, %v3794_v0  ;;  %v602_v4 = vmul.f32 0.0, %v3799_v1  ;;  %v3806_v5 = vld [vmem:[%s5924_s1 + $0x2] ss:$0 sm:$0xff] }
   0xf   : > { %367 = vst [vmem:[#allocation2 + $0x10] sm:$0xff] %v3722_v2  ;;  %368 = vst [vmem:[#allocation2 + $0x18] sm:$0xff] %v3722_v2  ;;  %v3811_v6 = vld [vmem:[%s5924_s1 + $0x3] ss:$0 sm:$0xff]  ;;  %s6335_s14 = smov (!%p3787_p3, %s3302_s14), 1  ;;  %v632_v7 = vmul.f32 0.0, %v3806_v5 }
  0x10   : > { %370 = vst [vmem:[#allocation2 + $0x28] sm:$0xff] %v3722_v2  ;;  %371 = vst [vmem:[#allocation2 + $0x30] sm:$0xff] %v3722_v2  ;;  %v3821_v8 = vld [vmem:[%s5924_s1 + $0x4] ss:$0 sm:$0xff]  ;;  %v610_v9 = vadd.f32 %v602_v4, %v572_v3  ;;  %v662_v10 = vmul.f32 0.0, %v3811_v6  ;;  %s3429_s26 = sshll.u32 %s6335_s14, 6  ;;  %s355_s30 = scalar_lea.vmem %s5933_s10, %s6335_s14 }
  0x11   : > { %373 = vst [vmem:[#allocation2 + $0x40] sm:$0xff] %v3722_v2  ;;  %374 = vst [vmem:[#allocation2 + $0x48] sm:$0xff] %v3722_v2  ;;  %v3828_v11 = vld [vmem:[%s5924_s1 + $0x5] ss:$0 sm:$0xff]  ;;  %v3833_v12 = vld [vmem:[%s5924_s1 + $0x6] ss:$0 sm:$0xff]  ;;  %s3838_s15 = scalar_lea.vmem %s5923_s0, %s3429_s26 }
  0x12   : > { %376 = vst [vmem:[#allocation2 + $0x58] sm:$0xff] %v3722_v2  ;;  %377 = vst [vmem:[#allocation2 + $0x60] sm:$0xff] %v3722_v2  ;;  %v640_v13 = vadd.f32 %v632_v7, %v610_v9  ;;  %v692_v14 = vmul.f32 0.0, %v3821_v8  ;;  %v3844_v15 = vld [vmem:[%s5924_s1 + $0x7] ss:$0 sm:$0xff]  ;;  %v3855_v18 = vld [vmem:[%s3838_s15 + $0x8] sm:$0xff] }
  0x13   : > { %379 = vst [vmem:[#allocation2 + $0x70] sm:$0xff] %v3722_v2  ;;  %380 = vst [vmem:[#allocation2 + $0x78] sm:$0xff] %v3722_v2  ;;  %v3849_v16 = vld [vmem:[%s5924_s1 + $0x8] ss:$0 sm:$0xff]  ;;  %v3852_v17 = vld [vmem:[%s3838_s15] sm:$0xff]  ;;  %v722_v22 = vmul.f32 0.0, %v3828_v11  ;;  %v3914_v35 = vmul.f32 %v3811_v6, %v3855_v18 }
  0x14   : > { %382 = vst [vmem:[#allocation2 + $0x88] sm:$0xff] %v3722_v2  ;;  %383 = vst [vmem:[#allocation2 + $0x90] sm:$0xff] %v3722_v2  ;;  %v3858_v19 = vld [vmem:[%s3838_s15 + $0x10] sm:$0xff]  ;;  %v3861_v20 = vld [vmem:[%s3838_s15 + $0x18] sm:$0xff]  ;;  %v670_v21 = vadd.f32 %v662_v10, %v640_v13  ;;  %v752_v26 = vmul.f32 0.0, %v3833_v12  ;;  %v3878_v27 = vmul.f32 0.0, %v3844_v15  ;;  %v3910_v34 = vmul.f32 %v3811_v6, %v3852_v17 }
  0x15   : > { %385 = vst [vmem:[#allocation2 + $0xa0] sm:$0xff] %v3722_v2  ;;  %386 = vst [vmem:[#allocation2 + $0xa8] sm:$0xff] %v3722_v2  ;;  %v3871_v23 = vld [vmem:[%s5924_s1 + $0x9] ss:$0 sm:$0xff]  ;;  %v3874_v24 = vld [vmem:[%s3838_s15 + $0x20] sm:$0xff]  ;;  %v3881_v28 = vmul.f32 0.0, %v3849_v16  ;;  %v3918_v36 = vmul.f32 %v3811_v6, %v3858_v19  ;;  %v3936_v41 = vmul.f32 %v3811_v6, %v3861_v20 }
  0x16   : > { %388 = vst [vmem:[#allocation2 + $0xb8] sm:$0xff] %v3722_v2  ;;  %6043 = vst [vmem:[#allocation5_spill] sm:$0xff] %v3852_v17  ;;  %v700_v25 = vadd.f32 %v692_v14, %v670_v21  ;;  %v3886_v29 = vld [vmem:[%s5924_s1 + $0xa] ss:$0 sm:$0xff]  ;;  %v3895_v31 = vld [vmem:[%s5924_s1 + $0xb] ss:$0 sm:$0xff]  ;;  %v4000_v63 = vmul.f32 %v3811_v6, %v3874_v24 }
  0x17   : > { %6044 = vst [vmem:[#allocation6_spill] sm:$0xff] %v3855_v18  ;;  %6045 = vst [vmem:[#allocation7_spill] sm:$0xff] %v3858_v19  ;;  %v3890_v30 = vld [vmem:[%s3838_s15 + $0x28] sm:$0xff]  ;;  %v3921_v37 = vmul.f32 0.0, %v3871_v23  ;;  %v363_v40 = vld [vmem:[%s3838_s15 + $0x30] sm:$0xff]  ;;  %v3939_v43 = vmul.f32 0.0, %v3886_v29  ;;  %v3943_v44 = vmul.f32 %v3886_v29, %v3852_v17  ;;  %v3953_v47 = vmul.f32 %v3886_v29, %v3855_v18 }
  0x18   : > { %6046 = vst [vmem:[#allocation8_spill] sm:$0xff] %v3861_v20  ;;  %389 = vst [vmem:[#allocation2 + $0x8] sm:$0xff] %v3852_v17  ;;  %v3900_v32 = vld [vmem:[%s5924_s1 + $0xc] ss:$0 sm:$0xff]  ;;  %v3905_v33 = vld [vmem:[%s5924_s1 + $0xd] ss:$0 sm:$0xff]  ;;  %v730_v42 = vadd.f32 %v722_v22, %v700_v25  ;;  %v3970_v53 = vmul.f32 %v3886_v29, %v3858_v19  ;;  %v3974_v54 = vmul.f32 %v3886_v29, %v3861_v20 }
  0x19   : > { %390 = vst [vmem:[#allocation2 + $0x20] sm:$0xff] %v3855_v18  ;;  %391 = vst [vmem:[#allocation2 + $0x38] sm:$0xff] %v3858_v19  ;;  %v3926_v38 = vld [vmem:[%s5924_s1 + $0xe] ss:$0 sm:$0xff]  ;;  %v3931_v39 = vld [vmem:[%s5924_s1 + $0xf] ss:$0 sm:$0xff]  ;;  %v4014_v10 = vmul.f32 %v3886_v29, %v3874_v24 }
  0x1a   : > { %392 = vst [vmem:[#allocation2 + $0x50] sm:$0xff] %v3861_v20  ;;  %6047 = vst [vmem:[#allocation9_spill] sm:$0xff] %v3874_v24  ;;  %v3948_v45 = vld [vmem:[%s5924_s1 + $0x10] ss:$0 sm:$0xff]  ;;  %v364_v46 = vld [vmem:[%s3838_s15 + $0x38] sm:$0xff]  ;;  %v3956_v48 = vmul.f32 0.0, %v3895_v31  ;;  %v4010_v9 = vadd.f32 %v752_v26, %v730_v42 }
  0x1b   : > { %393 = vst [vmem:[#allocation2 + $0x68] sm:$0xff] %v3874_v24  ;;  %6048 = vst [vmem:[#allocation10_spill] sm:$0xff] %v3895_v31  ;;  %v3959_v49 = vmul.f32 0.0, %v3900_v32  ;;  %v3962_v50 = vmul.f32 0.0, %v3905_v33  ;;  %v3977_v55 = vmul.f32 0.0, %v3926_v38  ;;  %v3980_v56 = vmul.f32 0.0, %v3931_v39 }
  0x1c   : > { %6049 = vst [vmem:[#allocation11_spill] sm:$0xff] %v3900_v32  ;;  %6050 = vst [vmem:[#allocation12_spill] sm:$0xff] %v3905_v33  ;;  %v3985_v57 = vld [vmem:[%s5924_s1 + $0x11] ss:$0 sm:$0xff]  ;;  %v3996_v62 = vmul.f32 0.0, %v3948_v45 }
  0x1d   : > { %394 = vst [vmem:[#allocation2 + $0x80] sm:$0xff] %v3890_v30  ;;  %6051 = vst [vmem:[#allocation13_spill] sm:$0xff] %v3910_v34  ;;  %v4027_v25 = vmul.f32 0.0, %v3985_v57  ;;  %v4031_v26 = vmul.f32 %v3985_v57, %v3852_v17  ;;  %v4058_v17 = vmul.f32 %v3985_v57, %v3858_v19 }
  0x1e   : > { %6052 = vst [vmem:[#allocation14_spill] sm:$0xff] %v3931_v39  ;;  %6053 = vst [vmem:[#allocation15_spill] sm:$0xff] %v3943_v44 }
  0x1f   : > { %6054 = vst [vmem:[#allocation16_spill] sm:$0xff] %v3948_v45  ;;  %395 = vst [vmem:[#allocation2 + $0x98] sm:$0xff] %v363_v40 }
  0x20   : > { %6055 = vst [vmem:[#allocation17_spill] sm:$0xff] %v3953_v47  ;;  %396 = vst [vmem:[#allocation2 + $0xb0] sm:$0xff] %v364_v46  ;;  %v3964_v51 = vld [vmem:[#allocation2 + $0x1d] sm:$0xff]  ;;  %v3966_v52 = vld [vmem:[#allocation2 + $0x35] sm:$0xff] }
  0x21   : > { %6056 = vst [vmem:[#allocation18_spill] sm:$0xff] %v3980_v56  ;;  %v3987_v58 = vld [vmem:[#allocation2 + $0x4d] sm:$0xff]  ;;  %v3989_v59 = vld [vmem:[#allocation2 + $0x1e] sm:$0xff]  ;;  %v576_v60 = vmul.f32 %v3794_v0, %v3964_v51  ;;  %v577_v61 = vmul.f32 %v3794_v0, %v3966_v52  ;;  %6057 = vst [vmem:[#allocation19_spill] sm:$0xff] %v3996_v62 }
  0x22   : > { %6058 = vst [vmem:[#allocation20_spill] sm:$0xff] %v4000_v63  ;;  %v4002_v2 = vld [vmem:[#allocation2 + $0x36] sm:$0xff]  ;;  %v4004_v3 = vld [vmem:[#allocation2 + $0x4e] sm:$0xff]  ;;  %v578_v4 = vmul.f32 %v3794_v0, %v3987_v58  ;;  %v606_v7 = vmul.f32 %v3799_v1, %v3989_v59  ;;  %6059 = vst [vmem:[#allocation21_spill] sm:$0xff] %v4010_v9 }
  0x23   : > { %6060 = vst [vmem:[#allocation22_spill] sm:$0xff] %v4014_v10  ;;  %v4016_v13 = vld [vmem:[#allocation2 + $0x1f] sm:$0xff]  ;;  %v4018_v6 = vld [vmem:[#allocation2 + $0x37] sm:$0xff]  ;;  %v4020_v14 = vld [vmem:[#allocation2 + $0x4f] sm:$0xff]  ;;  %v607_v21 = vmul.f32 %v3799_v1, %v4002_v2  ;;  %v608_v22 = vmul.f32 %v3799_v1, %v4004_v3 }
  0x24   : > { %6061 = vst [vmem:[#allocation23_spill] sm:$0xff] %v4027_v25  ;;  %6062 = vst [vmem:[#allocation24_spill] sm:$0xff] %v4031_v26  ;;  %v4033_v40 = vld [vmem:[#allocation2 + $0x21] sm:$0xff]  ;;  %v4035_v42 = vld [vmem:[#allocation2 + $0x39] sm:$0xff]  ;;  %v614_v46 = vadd.f32 %v606_v7, %v576_v60  ;;  %v636_v47 = vmul.f32 %v3806_v5, %v4016_v13  ;;  %v637_v10 = vmul.f32 %v3806_v5, %v4018_v6 }
  0x25   : > { %v638_v44 = vmul.f32 %v3806_v5, %v4020_v14  ;;  %v4046_v63 = vld [vmem:[%s5924_s1 + $0x12] ss:$0 sm:$0xff]  ;;  %v4050_v34 = vld [vmem:[#allocation2 + $0x22] sm:$0xff]  ;;  %v615_v0 = vadd.f32 %v607_v21, %v577_v61  ;;  %v616_v60 = vadd.f32 %v608_v22, %v578_v4  ;;  %v4054_v7 = vmul.f32 %v3985_v57, %v3855_v18  ;;  %6065 = vst [vmem:[#allocation27_spill] sm:$0xff] %v4058_v17  ;;  %v4063_v25 = vld [vmem:[%s5924_s1 + $0x13] ss:$0 sm:$0xff] }
  0x26   : > { %6063 = vst [vmem:[#allocation25_spill] sm:$0xff] %v4046_v63  ;;  %v4048_v26 = vld [vmem:[#allocation2 + $0x51] sm:$0xff]  ;;  %6066 = vst [vmem:[#allocation28_spill] sm:$0xff] %v4063_v25  ;;  %v4065_v62 = vld [vmem:[#allocation2 + $0x3a] sm:$0xff]  ;;  %v644_v39 = vadd.f32 %v636_v47, %v614_v46  ;;  %v696_v61 = vmul.f32 %v3821_v8, %v4033_v40  ;;  %v790_v4 = vadd.f32 %v3878_v27, %v4010_v9 }
  0x27   : > { %6064 = vst [vmem:[#allocation26_spill] sm:$0xff] %v4054_v7  ;;  %6067 = vst [vmem:[#allocation29_spill] sm:$0xff] %v4065_v62  ;;  %v4067_v45 = vld [vmem:[#allocation2 + $0x52] sm:$0xff]  ;;  %v4075_v21 = vmul.f32 %v3985_v57, %v3861_v20  ;;  %v4077_v22 = vld [vmem:[#allocation2 + $0x23] sm:$0xff]  ;;  %v645_v7 = vadd.f32 %v637_v10, %v615_v0  ;;  %v646_v19 = vadd.f32 %v638_v44, %v616_v60  ;;  %v4096_v0 = vmul.f32 0.0, %v4046_v63 }
  0x28   : > { %v4079_v17 = vld [vmem:[#allocation2 + $0x3b] sm:$0xff]  ;;  %v697_v18 = vmul.f32 %v3821_v8, %v4035_v42  ;;  %v698_v47 = vmul.f32 %v3821_v8, %v4048_v26  ;;  %v4088_v27 = vld [vmem:[%s5924_s1 + $0x14] ss:$0 sm:$0xff]  ;;  %v674_v9 = vadd.f32 %v3914_v35, %v644_v39  ;;  %v726_v20 = vmul.f32 %v3828_v11, %v4050_v34 }
  0x29   : > { %6068 = vst [vmem:[#allocation30_spill] sm:$0xff] %v4075_v21  ;;  %6069 = vst [vmem:[#allocation31_spill] sm:$0xff] %v4088_v27  ;;  %v4090_v46 = vld [vmem:[#allocation2 + $0x53] sm:$0xff]  ;;  %v4099_v44 = vmul.f32 0.0, %v4063_v25  ;;  %v675_v10 = vadd.f32 %v3918_v36, %v645_v7  ;;  %v676_v60 = vadd.f32 %v3936_v41, %v646_v19  ;;  %v727_v21 = vmul.f32 %v3828_v11, %v4065_v62 }
  0x2a   : > { %6070 = vst [vmem:[#allocation32_spill] sm:$0xff] %v4090_v46  ;;  %6071 = vst [vmem:[#allocation33_spill] sm:$0xff] %v4096_v0  ;;  %v728_v56 = vmul.f32 %v3828_v11, %v4067_v45  ;;  %v704_v35 = vadd.f32 %v696_v61, %v674_v9  ;;  %v756_v39 = vmul.f32 %v3833_v12, %v4077_v22  ;;  %v4112_v25 = vmul.f32 0.0, %v4088_v27 }
  0x2b   : > { %6072 = vst [vmem:[#allocation34_spill] sm:$0xff] %v4099_v44  ;;  %v757_v0 = vmul.f32 %v3833_v12, %v4079_v17  ;;  %v705_v44 = vadd.f32 %v697_v18, %v675_v10  ;;  %v706_v36 = vadd.f32 %v698_v47, %v676_v60  ;;  %v758_v19 = vmul.f32 %v3833_v12, %v4090_v46  ;;  %v4129_v18 = vld [vmem:[#allocation2 + $0x7] sm:$0xff] }
  0x2c   : > { %6073 = vst [vmem:[#allocation35_spill] sm:$0xff] %v4112_v25  ;;  %v820_v41 = vadd.f32 %v3881_v28, %v790_v4  ;;  %v734_v7 = vadd.f32 %v726_v20, %v704_v35  ;;  %v786_v9 = vmul.f32 %v3844_v15, %v3966_v52  ;;  %v4121_v61 = vmul.f32 %v3985_v57, %v3874_v24  ;;  %v4127_v25 = vld [vmem:[#allocation2 + $0x6] sm:$0xff] }
  0x2d   : > { %v4125_v63 = vmul.f32 %v3886_v29, %v3890_v30  ;;  %v735_v47 = vadd.f32 %v727_v21, %v705_v44  ;;  %v736_v10 = vadd.f32 %v728_v56, %v706_v36  ;;  %v787_v20 = vmul.f32 %v3844_v15, %v3987_v58  ;;  %v4134_v4 = vld [vmem:[#allocation2 + $0x9] sm:$0xff] }
  0x2e   : > { %6074 = vst [vmem:[#allocation36_spill] sm:$0xff] %v4121_v61  ;;  %v850_v28 = vadd.f32 %v3921_v37, %v820_v41  ;;  %v764_v60 = vadd.f32 %v756_v39, %v734_v7  ;;  %v4138_v35 = vmul.f32 %v3844_v15, %v3964_v51  ;;  %v816_v29 = vmul.f32 %v3849_v16, %v4002_v2  ;;  %v4146_v56 = vld [vmem:[#allocation2 + $0xa] sm:$0xff] }
  0x2f   : > { %6075 = vst [vmem:[#allocation37_spill] sm:$0xff] %v4125_v63  ;;  %v4144_v63 = vmul.f32 %v3985_v57, %v3890_v30  ;;  %v4148_v21 = vld [vmem:[#allocation2 + $0xb] sm:$0xff]  ;;  %v765_v44 = vadd.f32 %v757_v0, %v735_v47  ;;  %v4150_v37 = vadd.f32 %v758_v19, %v736_v10  ;;  %v817_v39 = vmul.f32 %v3849_v16, %v4004_v3 }
  0x30   : > { %6076 = vst [vmem:[#allocation38_spill] sm:$0xff] %v4138_v35  ;;  %v880_v36 = vadd.f32 %v3939_v43, %v850_v28  ;;  %v4157_v41 = vmul.f32 %v3799_v1, %v4127_v25  ;;  %v4161_v30 = vmul.f32 %v3806_v5, %v4129_v18  ;;  %v794_v57 = vadd.f32 %v786_v9, %v764_v60  ;;  %v6098_v35 = vld [vmem:[#allocation23_spill] sm:$0xff] }
  0x31   : > { %6077 = vst [vmem:[#allocation39_spill] sm:$0xff] %v4144_v63  ;;  %v846_v7 = vmul.f32 %v3871_v23, %v4018_v6  ;;  %v4167_v0 = vmul.f32 %v3821_v8, %v4134_v4  ;;  %v795_v19 = vadd.f32 %v787_v20, %v765_v44  ;;  %v847_v43 = vmul.f32 %v3871_v23, %v4020_v14 }
  0x32   : > { %v910_v47 = vadd.f32 %v3956_v48, %v880_v36  ;;  %v4174_v10 = vmul.f32 %v3828_v11, %v4146_v56  ;;  %v4178_v9 = vmul.f32 %v3833_v12, %v4148_v21  ;;  %v4182_v28 = vmul.f32 %v3849_v16, %v4127_v25 }
  0x33   : > { %v824_v60 = vadd.f32 %v816_v29, %v794_v57  ;;  %v4186_v20 = vmul.f32 %v3849_v16, %v3989_v59  ;;  %v825_v44 = vadd.f32 %v817_v39, %v795_v19  ;;  %v4190_v48 = vmul.f32 %v3871_v23, %v4129_v18 }
  0x34   : > { %6078 = vst [vmem:[#allocation40_spill] sm:$0xff] %v4178_v9  ;;  %v940_v36 = vadd.f32 %v3959_v49, %v910_v47  ;;  %v4195_v63 = vmul.f32 %v3871_v23, %v4016_v13  ;;  %v4199_v24 = vmul.f32 %v3895_v31, %v4134_v4  ;;  %v906_v29 = vmul.f32 %v3895_v31, %v4035_v42 }
  0x35   : > { %6079 = vst [vmem:[#allocation41_spill] sm:$0xff] %v4186_v20  ;;  %v854_v61 = vadd.f32 %v846_v7, %v824_v60  ;;  %v855_v57 = vadd.f32 %v847_v43, %v825_v44  ;;  %v4205_v39 = vmul.f32 %v3895_v31, %v4033_v40  ;;  %v907_v49 = vmul.f32 %v3895_v31, %v4048_v26 }
  0x36   : > { %6080 = vst [vmem:[#allocation42_spill] sm:$0xff] %v4195_v63  ;;  %6081 = vst [vmem:[#allocation43_spill] sm:$0xff] %v4199_v24  ;;  %v4210_v19 = vadd.f32 %v3962_v50, %v940_v36  ;;  %v4215_v47 = vmul.f32 %v3900_v32, %v4146_v56  ;;  %v4219_v60 = vmul.f32 %v3900_v32, %v4050_v34  ;;  %v6090_v63 = vld [vmem:[#allocation14_spill] sm:$0xff] }
  0x37   : > { %6082 = vst [vmem:[#allocation44_spill] sm:$0xff] %v4205_v39  ;;  %v884_v7 = vadd.f32 %v3970_v53, %v854_v61  ;;  %v936_v43 = vmul.f32 %v3900_v32, %v4065_v62  ;;  %v885_v44 = vadd.f32 %v3974_v54, %v855_v57  ;;  %v937_v31 = vmul.f32 %v3900_v32, %v4067_v45 }
  0x38   : > { %6083 = vst [vmem:[#allocation45_spill] sm:$0xff] %v4215_v47  ;;  %6084 = vst [vmem:[#allocation46_spill] sm:$0xff] %v4219_v60  ;;  %v4228_v50 = vmul.f32 %v3905_v33, %v4148_v21  ;;  %v1000_v53 = vadd.f32 %v3977_v55, %v4210_v19  ;;  %v4234_v36 = vmul.f32 %v3905_v33, %v4077_v22 }
  0x39   : > { %v914_v61 = vadd.f32 %v906_v29, %v884_v7  ;;  %v966_v60 = vmul.f32 %v3905_v33, %v4079_v17  ;;  %v967_v54 = vmul.f32 %v3905_v33, %v4090_v46  ;;  %v4242_v57 = vmul.f32 %v3926_v38, %v3964_v51  ;;  %v6089_v29 = vld [vmem:[#allocation18_spill] sm:$0xff] }
  0x3a   : > { %6085 = vst [vmem:[#allocation47_spill] sm:$0xff] %v4228_v50  ;;  %6086 = vst [vmem:[#allocation48_spill] sm:$0xff] %v4234_v36  ;;  %v4246_v32 = vmul.f32 %v3926_v38, %v3966_v52  ;;  %v996_v55 = vmul.f32 %v3926_v38, %v3987_v58  ;;  %v1030_v7 = vadd.f32 %v6089_v29, %v1000_v53  ;;  %v6093_v50 = vld [vmem:[#allocation16_spill] sm:$0xff] }
  0x3b   : > { %6087 = vst [vmem:[#allocation49_spill] sm:$0xff] %v4242_v57  ;;  %v915_v36 = vadd.f32 %v907_v49, %v885_v44  ;;  %v944_v39 = vadd.f32 %v936_v43, %v914_v61  ;;  %v4253_v20 = vmul.f32 %v6090_v63, %v4127_v25  ;;  %v4257_v33 = vmul.f32 %v6090_v63, %v3989_v59  ;;  %v6094_v49 = vld [vmem:[#allocation19_spill] sm:$0xff] }
  0x3c   : > { %6088 = vst [vmem:[#allocation50_spill] sm:$0xff] %v4246_v32  ;;  %v4261_v57 = vmul.f32 %v6090_v63, %v4002_v2  ;;  %v1026_v32 = vmul.f32 %v6090_v63, %v4004_v3  ;;  %v4267_v53 = vmul.f32 %v6093_v50, %v4129_v18  ;;  %v1060_v43 = vadd.f32 %v6094_v49, %v1030_v7  ;;  %v4309_v63 = vld [vmem:[%s5924_s1 + $0x16] ss:$0 sm:$0xff] }
  0x3d   : > { %6091 = vst [vmem:[#allocation18_spill] sm:$0xff] %v4257_v33  ;;  %v974_v44 = vadd.f32 %v966_v60, %v944_v39  ;;  %v4272_v61 = vmul.f32 %v6093_v50, %v4016_v13  ;;  %v4276_v29 = vmul.f32 %v6093_v50, %v4018_v6  ;;  %v4283_v33 = vld [vmem:[%s5924_s1 + $0x15] ss:$0 sm:$0xff]  ;;  %v6099_v39 = vld [vmem:[#allocation25_spill] sm:$0xff]  ;;  %6105 = vst [vmem:[#allocation57_spill] sm:$0xff] %v4309_v63 }
  0x3e   : > { %6092 = vst [vmem:[#allocation51_spill] sm:$0xff] %v4261_v57  ;;  %v1056_v57 = vmul.f32 %v6093_v50, %v4020_v14  ;;  %6097 = vst [vmem:[#allocation53_spill] sm:$0xff] %v4283_v33  ;;  %v1090_v47 = vadd.f32 %v6098_v35, %v1060_v43  ;;  %v4288_v60 = vmul.f32 %v6099_v39, %v4134_v4  ;;  %v6103_v35 = vld [vmem:[#allocation28_spill] sm:$0xff] }
  0x3f   : > { %6095 = vst [vmem:[#allocation19_spill] sm:$0xff] %v4272_v61  ;;  %6096 = vst [vmem:[#allocation52_spill] sm:$0xff] %v4276_v29  ;;  %v4292_v7 = vmul.f32 %v6099_v39, %v4033_v40  ;;  %v4296_v49 = vmul.f32 %v6099_v39, %v4035_v42  ;;  %v4298_v29 = vld [vmem:[#allocation2 + $0x5] sm:$0xff]  ;;  %v945_v61 = vadd.f32 %v937_v31, %v915_v36 }
  0x40   : > { %6100 = vst [vmem:[#allocation23_spill] sm:$0xff] %v4288_v60  ;;  %v1004_v50 = vadd.f32 %v996_v55, %v974_v44  ;;  %v1116_v9 = vmul.f32 %v6099_v39, %v4048_v26  ;;  %v4304_v43 = vmul.f32 %v6103_v35, %v4146_v56  ;;  %v4318_v31 = vmul.f32 %v6103_v35, %v4065_v62  ;;  %v4325_v55 = vld [vmem:[%s5924_s1 + $0x17] ss:$0 sm:$0xff] }
  0x41   : > { %6101 = vst [vmem:[#allocation54_spill] sm:$0xff] %v4292_v7  ;;  %6102 = vst [vmem:[#allocation55_spill] sm:$0xff] %v4296_v49  ;;  %v6106_v7 = vld [vmem:[#allocation33_spill] sm:$0xff]  ;;  %v4314_v49 = vmul.f32 %v6103_v35, %v4050_v34  ;;  %v1146_v36 = vmul.f32 %v6103_v35, %v4067_v45  ;;  %v4342_v35 = vld [vmem:[%s5924_s1 + $0x18] ss:$0 sm:$0xff] }
  0x42   : > { %6104 = vst [vmem:[#allocation56_spill] sm:$0xff] %v4304_v43  ;;  %v1120_v60 = vadd.f32 %v6106_v7, %v1090_v47  ;;  %6108 = vst [vmem:[#allocation58_spill] sm:$0xff] %v4318_v31  ;;  %v1034_v44 = vadd.f32 %v1026_v32, %v1004_v50  ;;  %v4329_v47 = vmul.f32 %v4088_v27, %v4148_v21 }
  0x43   : > { %6107 = vst [vmem:[#allocation33_spill] sm:$0xff] %v4314_v49  ;;  %6109 = vst [vmem:[#allocation59_spill] sm:$0xff] %v4325_v55  ;;  %v4333_v7 = vmul.f32 %v4088_v27, %v4077_v22  ;;  %v4337_v31 = vmul.f32 %v4088_v27, %v4079_v17  ;;  %v6114_v49 = vld [vmem:[#allocation34_spill] sm:$0xff]  ;;  %v4347_v32 = vmul.f32 %v4088_v27, %v4090_v46  ;;  %v6119_v27 = vld [vmem:[#allocation35_spill] sm:$0xff] }
  0x44   : > { %6110 = vst [vmem:[#allocation60_spill] sm:$0xff] %v4329_v47  ;;  %6113 = vst [vmem:[#allocation63_spill] sm:$0xff] %v4342_v35  ;;  %v1150_v39 = vadd.f32 %v6114_v49, %v1120_v60  ;;  %v1201_v50 = vmul.f32 %v4283_v33, %v4298_v29  ;;  %v4355_v47 = vadd.f32 %v967_v54, %v945_v61  ;;  %v4368_v49 = vld [vmem:[%s5924_s1 + $0x19] ss:$0 sm:$0xff] }
  0x45   : > { %6111 = vst [vmem:[#allocation61_spill] sm:$0xff] %v4333_v7  ;;  %6112 = vst [vmem:[#allocation62_spill] sm:$0xff] %v4337_v31  ;;  %v4353_v7 = vmul.f32 %v4283_v33, %v3964_v51  ;;  %v1064_v31 = vadd.f32 %v1056_v57, %v1034_v44  ;;  %v4359_v43 = vmul.f32 %v4283_v33, %v3966_v52  ;;  %v4384_v44 = vld [vmem:[%s5924_s1 + $0x1a] ss:$0 sm:$0xff] }
  0x46   : > { %v4363_v60 = vmul.f32 %v4283_v33, %v3987_v58  ;;  %6118 = vst [vmem:[#allocation66_spill] sm:$0xff] %v4368_v49  ;;  %v1180_v24 = vadd.f32 %v6119_v27, %v1150_v39  ;;  %v1230_v54 = vmul.f32 %v4309_v63, %v4127_v25  ;;  %v4375_v57 = vmul.f32 %v4309_v63, %v3989_v59  ;;  %v6134_v33 = vld [vmem:[#allocation8_spill] sm:$0xff] }
  0x47   : > { %6115 = vst [vmem:[#allocation34_spill] sm:$0xff] %v4353_v7  ;;  %6116 = vst [vmem:[#allocation64_spill] sm:$0xff] %v4359_v43  ;;  %v4379_v61 = vmul.f32 %v4309_v63, %v4002_v2  ;;  %v4389_v27 = vmul.f32 %v4309_v63, %v4004_v3  ;;  %v1259_v25 = vmul.f32 %v4325_v55, %v4129_v18  ;;  %v6130_v7 = vld [vmem:[#allocation6_spill] sm:$0xff] }
  0x48   : > { %6117 = vst [vmem:[#allocation65_spill] sm:$0xff] %v4363_v60  ;;  %6120 = vst [vmem:[#allocation35_spill] sm:$0xff] %v4375_v57  ;;  %v6123_v60 = vld [vmem:[#allocation30_spill] sm:$0xff]  ;;  %v4395_v39 = vmul.f32 %v4325_v55, %v4016_v13  ;;  %v1209_v57 = vadd.f32 %v1201_v50, %v1180_v24  ;;  %v4419_v24 = vmul.f32 %v4342_v35, %v6130_v7  ;;  %v6132_v50 = vld [vmem:[#allocation7_spill] sm:$0xff] }
  0x49   : > { %6121 = vst [vmem:[#allocation67_spill] sm:$0xff] %v4379_v61  ;;  %6122 = vst [vmem:[#allocation68_spill] sm:$0xff] %v4384_v44  ;;  %v1094_v43 = vadd.f32 %v6123_v60, %v1064_v31  ;;  %v4400_v61 = vld [vmem:[%s5924_s1 + $0x1b] ss:$0 sm:$0xff]  ;;  %v4404_v31 = vmul.f32 %v4325_v55, %v4018_v6  ;;  %v4408_v60 = vmul.f32 %v4325_v55, %v4020_v14 }
  0x4a   : > { %6124 = vst [vmem:[#allocation30_spill] sm:$0xff] %v4389_v27  ;;  %6125 = vst [vmem:[#allocation69_spill] sm:$0xff] %v4395_v39  ;;  %v6129_v27 = vld [vmem:[#allocation5_spill] sm:$0xff]  ;;  %v4415_v39 = vld [vmem:[%s5924_s1 + $0x1c] ss:$0 sm:$0xff]  ;;  %v1238_v55 = vadd.f32 %v1230_v54, %v1209_v57  ;;  %v1346_v57 = vmul.f32 %v4384_v44, %v4146_v56  ;;  %v4480_v56 = vmul.f32 %v4384_v44, %v4067_v45 }
  0x4b   : > { %6126 = vst [vmem:[#allocation70_spill] sm:$0xff] %v4400_v61  ;;  %6127 = vst [vmem:[#allocation71_spill] sm:$0xff] %v4404_v31  ;;  %v1288_v18 = vmul.f32 %v4342_v35, %v6129_v27  ;;  %v1124_v63 = vadd.f32 %v1116_v9, %v1094_v43  ;;  %v4423_v31 = vmul.f32 %v4342_v35, %v6132_v50  ;;  %v4432_v27 = vld [vmem:[%s5924_s1 + $0x1d] ss:$0 sm:$0xff]  ;;  %v4452_v54 = vld [vmem:[%s5924_s1 + $0x1f] ss:$0 sm:$0xff] }
  0x4c   : > { %6128 = vst [vmem:[#allocation72_spill] sm:$0xff] %v4408_v60  ;;  %6131 = vst [vmem:[#allocation5_spill] sm:$0xff] %v4419_v24  ;;  %v4427_v60 = vmul.f32 %v4342_v35, %v6134_v33  ;;  %v1317_v9 = vmul.f32 %v4368_v49, %v4134_v4  ;;  %v4438_v43 = vmul.f32 %v4368_v49, %v4033_v40  ;;  %v4471_v24 = vld [vmem:[%s5924_s1 + $0x20] ss:$0 sm:$0xff]  ;;  %v4491_v35 = vld [vmem:[%s5924_s1 + $0x22] ss:$0 sm:$0xff] }
  0x4d   : > { %6133 = vst [vmem:[#allocation6_spill] sm:$0xff] %v4423_v31  ;;  %v4442_v31 = vmul.f32 %v4368_v49, %v4035_v42  ;;  %6139 = vst [vmem:[#allocation75_spill] sm:$0xff] %v4452_v54  ;;  %v4456_v4 = vmul.f32 %v4368_v49, %v4048_v26  ;;  %v1267_v49 = vadd.f32 %v1259_v25, %v1238_v55 }
  0x4e   : > { %6135 = vst [vmem:[#allocation7_spill] sm:$0xff] %v4427_v60  ;;  %6136 = vst [vmem:[#allocation8_spill] sm:$0xff] %v4438_v43  ;;  %v4447_v60 = vld [vmem:[%s5924_s1 + $0x1e] ss:$0 sm:$0xff]  ;;  %v4466_v43 = vmul.f32 %v4384_v44, %v4065_v62  ;;  %v1154_v62 = vadd.f32 %v1146_v36, %v1124_v63  ;;  %v4495_v55 = vmul.f32 %v4400_v61, %v4079_v17 }
  0x4f   : > { %6137 = vst [vmem:[#allocation73_spill] sm:$0xff] %v4442_v31  ;;  %6138 = vst [vmem:[#allocation74_spill] sm:$0xff] %v4447_v60  ;;  %v4462_v31 = vmul.f32 %v4384_v44, %v4050_v34  ;;  %v4499_v25 = vmul.f32 %v4400_v61, %v4090_v46  ;;  %v4507_v44 = vmul.f32 %v4415_v39, %v3987_v58 }
  0x50   : > { %6140 = vst [vmem:[#allocation76_spill] sm:$0xff] %v4456_v4  ;;  %6142 = vst [vmem:[#allocation78_spill] sm:$0xff] %v4466_v43  ;;  %v4476_v4 = vld [vmem:[%s5924_s1 + $0x21] ss:$0 sm:$0xff]  ;;  %v4486_v43 = vmul.f32 %v4400_v61, %v4077_v22  ;;  %v1435_v63 = vmul.f32 %v4432_v27, %v3989_v59  ;;  %v4513_v36 = vmul.f32 %v4432_v27, %v4004_v3 }
  0x51   : > { %6141 = vst [vmem:[#allocation77_spill] sm:$0xff] %v4462_v31  ;;  %6143 = vst [vmem:[#allocation79_spill] sm:$0xff] %v4471_v24  ;;  %v1375_v31 = vmul.f32 %v4400_v61, %v4148_v21  ;;  %v1405_v21 = vmul.f32 %v4415_v39, %v3964_v51  ;;  %v1465_v51 = vmul.f32 %v4447_v60, %v4016_v13 }
  0x52   : > { %6144 = vst [vmem:[#allocation80_spill] sm:$0xff] %v4476_v4  ;;  %6145 = vst [vmem:[#allocation81_spill] sm:$0xff] %v4480_v56  ;;  %v4503_v56 = vld [vmem:[#allocation2 + $0x65] sm:$0xff]  ;;  %v4529_v59 = vmul.f32 %v4452_v54, %v6134_v33  ;;  %v1525_v13 = vmul.f32 %v4471_v24, %v4033_v40  ;;  %v4540_v61 = vmul.f32 %v4471_v24, %v4048_v26 }
  0x53   : > { %6146 = vst [vmem:[#allocation82_spill] sm:$0xff] %v4486_v43  ;;  %6147 = vst [vmem:[#allocation83_spill] sm:$0xff] %v4491_v35  ;;  %v1296_v43 = vadd.f32 %v1288_v18, %v1267_v49  ;;  %v4523_v49 = vmul.f32 %v4447_v60, %v4020_v14  ;;  %v1495_v18 = vmul.f32 %v4452_v54, %v6130_v7 }
  0x54   : > { %6148 = vst [vmem:[#allocation84_spill] sm:$0xff] %v4495_v55  ;;  %6149 = vst [vmem:[#allocation85_spill] sm:$0xff] %v4499_v25  ;;  %v4515_v55 = vld [vmem:[#allocation2 + $0x66] sm:$0xff]  ;;  %v4544_v7 = vmul.f32 %v4476_v4, %v4050_v34  ;;  %v4553_v54 = vmul.f32 %v4476_v4, %v4067_v45  ;;  %v4557_v40 = vmul.f32 %v4491_v35, %v4077_v22  ;;  %v4574_v22 = vld [vmem:[%s5924_s1 + $0x24] ss:$0 sm:$0xff] }
  0x55   : > { %6150 = vst [vmem:[#allocation86_spill] sm:$0xff] %v4507_v44  ;;  %6151 = vst [vmem:[#allocation87_spill] sm:$0xff] %v4513_v36  ;;  %v4517_v25 = vld [vmem:[#allocation2 + $0x67] sm:$0xff]  ;;  %v4534_v36 = vld [vmem:[%s5924_s1 + $0x23] ss:$0 sm:$0xff]  ;;  %v1325_v44 = vadd.f32 %v1317_v9, %v1296_v43  ;;  %v784_v34 = vmul.f32 %v3844_v15, %v4298_v29  ;;  %v993_v24 = vmul.f32 %v3926_v38, %v4298_v29 }
  0x56   : > { %6152 = vst [vmem:[#allocation88_spill] sm:$0xff] %v4515_v55  ;;  %6153 = vst [vmem:[#allocation89_spill] sm:$0xff] %v4517_v25  ;;  %v6159_v9 = vld [vmem:[#allocation4_spill] sm:$0xff] }
  0x57   : > { %6154 = vst [vmem:[#allocation90_spill] sm:$0xff] %v4523_v49  ;;  %6155 = vst [vmem:[#allocation91_spill] sm:$0xff] %v4529_v59  ;;  %v4546_v49 = vld [vmem:[#allocation2 + $0x69] sm:$0xff]  ;;  %v4549_v59 = vadd.f32 %v4347_v32, %v1154_v62  ;;  %v575_v43 = vmul.f32 %v6159_v9, %v4298_v29  ;;  %v579_v62 = vmul.f32 %v6159_v9, %v4503_v56 }
  0x58   : > { %6156 = vst [vmem:[#allocation92_spill] sm:$0xff] %v4540_v61  ;;  %6157 = vst [vmem:[#allocation93_spill] sm:$0xff] %v4546_v49  ;;  %v1354_v61 = vadd.f32 %v1346_v57, %v1325_v44  ;;  %v4569_v32 = vmul.f32 %v4491_v35, %v4090_v46  ;;  %v609_v57 = vmul.f32 %v3799_v1, %v4515_v55  ;;  %v6162_v35 = vld [vmem:[#allocation21_spill] sm:$0xff] }
  0x59   : > { %6158 = vst [vmem:[#allocation94_spill] sm:$0xff] %v4553_v54  ;;  %6161 = vst [vmem:[#allocation95_spill] sm:$0xff] %v4574_v22  ;;  %v613_v44 = vadd.f32 %v4157_v41, %v575_v43  ;;  %v639_v29 = vmul.f32 %v3806_v5, %v4517_v25  ;;  %v4583_v9 = vmul.f32 %v4534_v36, %v3966_v52  ;;  %v4587_v46 = vld [vmem:[#allocation2 + $0x6a] sm:$0xff] }
  0x5a   : > { %6160 = vst [vmem:[#allocation4_spill] sm:$0xff] %v4569_v32  ;;  %v1383_v54 = vadd.f32 %v1375_v31, %v1354_v61  ;;  %v792_v32 = vadd.f32 %v784_v34, %v6162_v35  ;;  %v1001_v4 = vadd.f32 %v993_v24, %v4210_v19  ;;  %6163 = vst [vmem:[#allocation21_spill] sm:$0xff] %v4587_v46  ;;  %v4590_v41 = vld [vmem:[#allocation2 + $0x6b] sm:$0xff] }
  0x5b   : > { %v643_v60 = vadd.f32 %v4161_v30, %v613_v44  ;;  %6164 = vst [vmem:[#allocation96_spill] sm:$0xff] %v4590_v41  ;;  %v617_v43 = vadd.f32 %v609_v57, %v579_v62  ;;  %v699_v1 = vmul.f32 %v3821_v8, %v4546_v49  ;;  %v788_v5 = vmul.f32 %v3844_v15, %v4503_v56  ;;  %v6165_v24 = vld [vmem:[#allocation13_spill] sm:$0xff] }
  0x5c   : > { %v1413_v61 = vadd.f32 %v1405_v21, %v1383_v54  ;;  %v822_v31 = vadd.f32 %v4182_v28, %v792_v32  ;;  %v1031_v35 = vadd.f32 %v4253_v20, %v1001_v4  ;;  %v818_v19 = vmul.f32 %v3849_v16, %v4515_v55  ;;  %v6166_v16 = vld [vmem:[#allocation20_spill] sm:$0xff]  ;;  %v6167_v32 = vld [vmem:[#allocation15_spill] sm:$0xff] }
  0x5d   : > { %v673_v34 = vadd.f32 %v6165_v24, %v643_v60  ;;  %v647_v30 = vadd.f32 %v639_v29, %v617_v43  ;;  %v796_v44 = vadd.f32 %v788_v5, %v4150_v37  ;;  %v848_v62 = vmul.f32 %v3871_v23, %v4517_v25  ;;  %v6170_v5 = vld [vmem:[#allocation43_spill] sm:$0xff]  ;;  %v4633_v24 = vld [vmem:[%s5924_s1 + $0x26] ss:$0 sm:$0xff] }
  0x5e   : > { %v1443_v8 = vadd.f32 %v1435_v63, %v1413_v61  ;;  %v4606_v15 = vmul.f32 %v4574_v22, %v4002_v2  ;;  %v852_v28 = vadd.f32 %v4190_v48, %v822_v31  ;;  %v1061_v20 = vadd.f32 %v4267_v53, %v1031_v35  ;;  %v6168_v63 = vld [vmem:[#allocation24_spill] sm:$0xff]  ;;  %v6171_v31 = vld [vmem:[#allocation23_spill] sm:$0xff]  ;;  %6173 = vst [vmem:[#allocation20_spill] sm:$0xff] %v4633_v24 }
  0x5f   : > { %v703_v54 = vadd.f32 %v4167_v0, %v673_v34  ;;  %v677_v4 = vadd.f32 %v6166_v16, %v647_v30  ;;  %v729_v60 = vmul.f32 %v3828_v11, %v4587_v46  ;;  %v826_v37 = vadd.f32 %v818_v19, %v796_v44  ;;  %v4621_v48 = vld [vmem:[%s5924_s1 + $0x25] ss:$0 sm:$0xff]  ;;  %v6172_v19 = vld [vmem:[#allocation14_spill] sm:$0xff] }
  0x60   : > { %v1473_v21 = vadd.f32 %v1465_v51, %v1443_v8  ;;  %v882_v23 = vadd.f32 %v6167_v32, %v852_v28  ;;  %v1091_v57 = vadd.f32 %v6168_v63, %v1061_v20  ;;  %v759_v29 = vmul.f32 %v3833_v12, %v4590_v41  ;;  %6169 = vst [vmem:[#allocation13_spill] sm:$0xff] %v4621_v48  ;;  %v6174_v34 = vld [vmem:[#allocation40_spill] sm:$0xff]  ;;  %v6175_v30 = vld [vmem:[#allocation22_spill] sm:$0xff]  ;;  %v4650_v28 = vld [vmem:[%s5924_s1 + $0x28] ss:$0 sm:$0xff] }
  0x61   : > { %v733_v0 = vadd.f32 %v4174_v10, %v703_v54  ;;  %v707_v53 = vadd.f32 %v699_v1, %v677_v4  ;;  %v856_v43 = vadd.f32 %v848_v62, %v826_v37  ;;  %v997_v11 = vmul.f32 %v3926_v38, %v4503_v56  ;;  %v4645_v8 = vld [vmem:[%s5924_s1 + $0x27] ss:$0 sm:$0xff]  ;;  %6177 = vst [vmem:[#allocation24_spill] sm:$0xff] %v4650_v28  ;;  %v4655_v20 = vld [vmem:[%s5924_s1 + $0x29] ss:$0 sm:$0xff] }
  0x62   : > { %v1503_v51 = vadd.f32 %v1495_v18, %v1473_v21  ;;  %v912_v61 = vadd.f32 %v6170_v5, %v882_v23  ;;  %v1121_v35 = vadd.f32 %v6171_v31, %v1091_v57  ;;  %v1027_v12 = vmul.f32 %v6172_v19, %v4515_v55  ;;  %6176 = vst [vmem:[#allocation15_spill] sm:$0xff] %v4645_v8  ;;  %v6180_v54 = vld [vmem:[#allocation56_spill] sm:$0xff]  ;;  %v4662_v4 = vld [vmem:[%s5924_s1 + $0x2a] ss:$0 sm:$0xff] }
  0x63   : > { %v763_v10 = vadd.f32 %v6174_v34, %v733_v0  ;;  %v737_v1 = vadd.f32 %v729_v60, %v707_v53  ;;  %v4637_v44 = vadd.f32 %v6175_v30, %v856_v43  ;;  %v1005_v38 = vadd.f32 %v997_v11, %v4355_v47  ;;  %6178 = vst [vmem:[#allocation43_spill] sm:$0xff] %v4655_v20  ;;  %v6179_v47 = vld [vmem:[#allocation45_spill] sm:$0xff]  ;;  %v6182_v60 = vld [vmem:[#allocation38_spill] sm:$0xff]  ;;  %v6184_v23 = vld [vmem:[#allocation16_spill] sm:$0xff] }
  0x64   : > { %v1533_v18 = vadd.f32 %v1525_v13, %v1503_v51  ;;  %v1675_v62 = vmul.f32 %v4621_v48, %v4018_v6  ;;  %v942_v13 = vadd.f32 %v6179_v47, %v912_v61  ;;  %v1151_v16 = vadd.f32 %v6180_v54, %v1121_v35  ;;  %6181 = vst [vmem:[#allocation23_spill] sm:$0xff] %v4662_v4  ;;  %v4675_v53 = vld [vmem:[%s5924_s1 + $0x2b] ss:$0 sm:$0xff]  ;;  %v6186_v43 = vld [vmem:[#allocation47_spill] sm:$0xff]  ;;  %v6187_v51 = vld [vmem:[#allocation60_spill] sm:$0xff] }
  0x65   : > { %v793_v37 = vadd.f32 %v6182_v60, %v763_v10  ;;  %v4665_v21 = vadd.f32 %v759_v29, %v737_v1  ;;  %v1035_v32 = vadd.f32 %v1027_v12, %v1005_v38  ;;  %v1057_v63 = vmul.f32 %v6184_v23, %v4517_v25  ;;  %6185 = vst [vmem:[#allocation40_spill] sm:$0xff] %v4675_v53  ;;  %v6188_v61 = vld [vmem:[#allocation29_spill] sm:$0xff]  ;;  %v6193_v47 = vld [vmem:[#allocation42_spill] sm:$0xff] }
  0x66   : > { %v1563_v57 = vadd.f32 %v4544_v7, %v1533_v18  ;;  %v1705_v0 = vmul.f32 %v4633_v24, %v6132_v50  ;;  %v972_v11 = vadd.f32 %v6186_v43, %v942_v13  ;;  %v1181_v5 = vadd.f32 %v6187_v51, %v1151_v16  ;;  %v6189_v35 = vld [vmem:[#allocation41_spill] sm:$0xff]  ;;  %v6194_v54 = vld [vmem:[#allocation34_spill] sm:$0xff] }
  0x67   : > { %6183 = vst [vmem:[#allocation14_spill] sm:$0xff] %v4665_v21  ;;  %v1735_v29 = vmul.f32 %v4645_v8, %v4035_v42  ;;  %v1765_v31 = vmul.f32 %v4650_v28, %v6188_v61  ;;  %v1795_v7 = vmul.f32 %v4655_v20, %v4079_v17  ;;  %v823_v50 = vadd.f32 %v6189_v35, %v793_v37  ;;  %v4694_v34 = vld [vmem:[%s5924_s1 + $0x2c] ss:$0 sm:$0xff]  ;;  %v6195_v37 = vld [vmem:[#allocation18_spill] sm:$0xff] }
  0x68   : > { %v1593_v19 = vadd.f32 %v4557_v40, %v1563_v57  ;;  %v4689_v12 = vmul.f32 %v4662_v4, %v3987_v58  ;;  %6190 = vst [vmem:[#allocation22_spill] sm:$0xff] %v4694_v34  ;;  %v6191_v10 = vld [vmem:[#allocation49_spill] sm:$0xff]  ;;  %v4701_v18 = vmul.f32 %v4675_v53, %v4004_v3  ;;  %v1065_v13 = vadd.f32 %v1057_v63, %v1035_v32  ;;  %v6199_v32 = vld [vmem:[#allocation59_spill] sm:$0xff]  ;;  %v6210_v4 = vld [vmem:[#allocation36_spill] sm:$0xff] }
  0x69   : > { %v1002_v1 = vadd.f32 %v6191_v10, %v972_v11  ;;  %v6192_v30 = vld [vmem:[#allocation53_spill] sm:$0xff]  ;;  %v853_v40 = vadd.f32 %v6193_v47, %v823_v50  ;;  %v1210_v16 = vadd.f32 %v6194_v54, %v1181_v5  ;;  %v4712_v51 = vmul.f32 %v4694_v34, %v4020_v14  ;;  %v6205_v54 = vld [vmem:[#allocation44_spill] sm:$0xff] }
  0x6a   : > { %v1205_v38 = vmul.f32 %v6192_v30, %v4503_v56  ;;  %v1623_v60 = vadd.f32 %v4583_v9, %v1593_v19  ;;  %v6196_v43 = vld [vmem:[#allocation57_spill] sm:$0xff]  ;;  %v6198_v30 = vld [vmem:[#allocation35_spill] sm:$0xff]  ;;  %v1263_v63 = vmul.f32 %v6199_v32, %v4517_v25  ;;  %v6209_v25 = vld [vmem:[#allocation26_spill] sm:$0xff]  ;;  %v1095_v21 = vadd.f32 %v6210_v4, %v1065_v13 }
  0x6b   : > { %v1032_v23 = vadd.f32 %v6195_v37, %v1002_v1  ;;  %v1234_v11 = vmul.f32 %v6196_v43, %v4515_v55  ;;  %v6197_v35 = vld [vmem:[#allocation17_spill] sm:$0xff]  ;;  %v1239_v50 = vadd.f32 %v6198_v30, %v1210_v16  ;;  %v6202_v19 = vld [vmem:[#allocation19_spill] sm:$0xff]  ;;  %v6215_v13 = vld [vmem:[#allocation48_spill] sm:$0xff] }
  0x6c   : > { %v1213_v57 = vadd.f32 %v1205_v38, %v4549_v59  ;;  %v883_v10 = vadd.f32 %v6197_v35, %v853_v40  ;;  %v1653_v9 = vadd.f32 %v4606_v15, %v1623_v60  ;;  %v4722_v59 = vld [vmem:[%s5924_s1 + $0x2d] ss:$0 sm:$0xff]  ;;  %v4727_v5 = vld [vmem:[%s5924_s1 + $0x2e] ss:$0 sm:$0xff]  ;;  %v6204_v30 = vld [vmem:[#allocation63_spill] sm:$0xff] }
  0x6d   : > { %6200 = vst [vmem:[#allocation45_spill] sm:$0xff] %v4722_v59  ;;  %6201 = vst [vmem:[#allocation56_spill] sm:$0xff] %v4727_v5  ;;  %v1062_v1 = vadd.f32 %v6202_v19, %v1032_v23  ;;  %v6203_v47 = vld [vmem:[#allocation9_spill] sm:$0xff]  ;;  %v6206_v15 = vld [vmem:[#allocation10_spill] sm:$0xff] }
  0x6e   : > { %v1242_v38 = vadd.f32 %v1234_v11, %v1213_v57  ;;  %v1292_v40 = vmul.f32 %v6204_v30, %v6203_v47  ;;  %v913_v16 = vadd.f32 %v6205_v54, %v883_v10  ;;  %v908_v60 = vmul.f32 %v6206_v15, %v4546_v49  ;;  %v6207_v37 = vld [vmem:[#allocation25_spill] sm:$0xff]  ;;  %v6211_v10 = vld [vmem:[#allocation46_spill] sm:$0xff] }
  0x6f   : > { %v1117_v35 = vmul.f32 %v6207_v37, %v4546_v49  ;;  %v6208_v32 = vld [vmem:[#allocation69_spill] sm:$0xff]  ;;  %v1683_v34 = vadd.f32 %v1675_v62, %v1653_v9  ;;  %v1092_v53 = vadd.f32 %v6209_v25, %v1062_v1  ;;  %v4742_v57 = vmul.f32 %v4722_v59, %v6134_v33  ;;  %v6214_v25 = vld [vmem:[#allocation66_spill] sm:$0xff]  ;;  %v6216_v9 = vld [vmem:[#allocation11_spill] sm:$0xff] }
  0x70   : > { %v1268_v43 = vadd.f32 %v6208_v32, %v1239_v50  ;;  %v1271_v23 = vadd.f32 %v1263_v63, %v1242_v38  ;;  %v4746_v11 = vmul.f32 %v4727_v5, %v4048_v26  ;;  %v943_v19 = vadd.f32 %v6211_v10, %v913_v16  ;;  %v6212_v47 = vld [vmem:[#allocation5_spill] sm:$0xff]  ;;  %v6213_v50 = vld [vmem:[#allocation54_spill] sm:$0xff]  ;;  %v6217_v38 = vld [vmem:[#allocation8_spill] sm:$0xff] }
  0x71   : > { %v1713_v15 = vadd.f32 %v1705_v0, %v1683_v34  ;;  %v1122_v62 = vadd.f32 %v6213_v50, %v1092_v53  ;;  %v1321_v4 = vmul.f32 %v6214_v25, %v4546_v49  ;;  %v916_v33 = vadd.f32 %v908_v60, %v4637_v44  ;;  %v6218_v16 = vld [vmem:[#allocation33_spill] sm:$0xff]  ;;  %v6219_v0 = vld [vmem:[#allocation28_spill] sm:$0xff]  ;;  %v6220_v34 = vld [vmem:[#allocation50_spill] sm:$0xff] }
  0x72   : > { %v1297_v54 = vadd.f32 %v6212_v47, %v1268_v43  ;;  %v1300_v32 = vadd.f32 %v1292_v40, %v1271_v23  ;;  %v973_v63 = vadd.f32 %v6215_v13, %v943_v19  ;;  %v938_v1 = vmul.f32 %v6216_v9, %v4587_v46  ;;  %v6221_v23 = vld [vmem:[#allocation12_spill] sm:$0xff]  ;;  %v6222_v19 = vld [vmem:[#allocation77_spill] sm:$0xff]  ;;  %v6226_v13 = vld [vmem:[#allocation51_spill] sm:$0xff] }
  0x73   : > { %v1743_v30 = vadd.f32 %v1735_v29, %v1713_v15  ;;  %v1152_v10 = vadd.f32 %v6218_v16, %v1122_v62  ;;  %v1125_v43 = vadd.f32 %v1117_v35, %v1095_v21  ;;  %v1147_v53 = vmul.f32 %v6219_v0, %v4587_v46  ;;  %v4770_v29 = vld [vmem:[%s5924_s1 + $0x2f] ss:$0 sm:$0xff]  ;;  %v6225_v15 = vld [vmem:[#allocation68_spill] sm:$0xff] }
  0x74   : > { %v1326_v37 = vadd.f32 %v6217_v38, %v1297_v54  ;;  %v1003_v40 = vadd.f32 %v6220_v34, %v973_v63  ;;  %v968_v47 = vmul.f32 %v6221_v23, %v4590_v41  ;;  %v1406_v44 = vmul.f32 %v4415_v39, %v3966_v52  ;;  %6223 = vst [vmem:[#allocation38_spill] sm:$0xff] %v4770_v29  ;;  %v6224_v21 = vld [vmem:[#allocation61_spill] sm:$0xff]  ;;  %v6227_v38 = vld [vmem:[#allocation82_spill] sm:$0xff]  ;;  %v6229_v16 = vld [vmem:[#allocation64_spill] sm:$0xff] }
  0x75   : > { %v1773_v60 = vadd.f32 %v1765_v31, %v1743_v30  ;;  %v1182_v35 = vadd.f32 %v6224_v21, %v1152_v10  ;;  %v1329_v54 = vadd.f32 %v1321_v4, %v1300_v32  ;;  %v1350_v62 = vmul.f32 %v6225_v15, %v4587_v46  ;;  %v4782_v30 = vld [vmem:[%s5924_s1 + $0x30] ss:$0 sm:$0xff]  ;;  %v6230_v4 = vld [vmem:[#allocation31_spill] sm:$0xff] }
  0x76   : > { %v1355_v50 = vadd.f32 %v6222_v19, %v1326_v37  ;;  %v1033_v63 = vadd.f32 %v6226_v13, %v1003_v40  ;;  %v946_v9 = vadd.f32 %v938_v1, %v916_v33  ;;  %v1436_v52 = vmul.f32 %v4432_v27, %v4002_v2  ;;  %6228 = vst [vmem:[#allocation16_spill] sm:$0xff] %v4782_v30  ;;  %v6231_v1 = vld [vmem:[#allocation52_spill] sm:$0xff]  ;;  %v6232_v2 = vld [vmem:[#allocation74_spill] sm:$0xff]  ;;  %v6233_v19 = vld [vmem:[#allocation67_spill] sm:$0xff] }
  0x77   : > { %v1803_v31 = vadd.f32 %v1795_v7, %v1773_v60  ;;  %v1211_v10 = vadd.f32 %v6229_v16, %v1182_v35  ;;  %v1155_v32 = vadd.f32 %v1147_v53, %v1125_v43  ;;  %v1177_v0 = vmul.f32 %v6230_v4, %v4590_v41  ;;  %v6234_v21 = vld [vmem:[#allocation70_spill] sm:$0xff]  ;;  %v6235_v53 = vld [vmem:[#allocation32_spill] sm:$0xff]  ;;  %v6236_v13 = vld [vmem:[#allocation27_spill] sm:$0xff] }
  0x78   : > { %v1384_v37 = vadd.f32 %v6227_v38, %v1355_v50  ;;  %v1975_v33 = vmul.f32 %v4770_v29, %v4067_v45  ;;  %v1063_v34 = vadd.f32 %v6231_v1, %v1033_v63  ;;  %v1466_v7 = vmul.f32 %v6232_v2, %v4018_v6  ;;  %v3680_v29 = vld [vmem:[#allocation2 + $0x38] sm:$0xff] }
  0x79   : > { %v1833_v23 = vadd.f32 %v4689_v12, %v1803_v31  ;;  %v1240_v50 = vadd.f32 %v6233_v19, %v1211_v10  ;;  %v1358_v60 = vadd.f32 %v1350_v62, %v1329_v54  ;;  %v1379_v43 = vmul.f32 %v6234_v21, %v4590_v41  ;;  %v6237_v63 = vld [vmem:[#allocation75_spill] sm:$0xff] }
  0x7a   : > { %v1414_v40 = vadd.f32 %v1406_v44, %v1384_v37  ;;  %v2005_v35 = vmul.f32 %v4782_v30, %v6235_v53  ;;  %v1093_v38 = vadd.f32 %v6236_v13, %v1063_v34  ;;  %v1496_v44 = vmul.f32 %v3680_v29, %v6237_v63  ;;  %v6238_v6 = vld [vmem:[#allocation71_spill] sm:$0xff]  ;;  %v6242_v29 = vld [vmem:[#allocation6_spill] sm:$0xff] }
  0x7b   : > { %v1863_v37 = vadd.f32 %v4701_v18, %v1833_v23  ;;  %v1269_v1 = vadd.f32 %v6238_v6, %v1240_v50  ;;  %v976_v12 = vadd.f32 %v968_v47, %v946_v9  ;;  %v4802_v31 = vadd.f32 %v1177_v0, %v1155_v32  ;;  %v6239_v54 = vld [vmem:[#allocation55_spill] sm:$0xff]  ;;  %v6244_v9 = vld [vmem:[#allocation58_spill] sm:$0xff]  ;;  %v6245_v23 = vld [vmem:[#allocation80_spill] sm:$0xff] }
  0x7c   : > { %v1444_v16 = vadd.f32 %v1436_v52, %v1414_v40  ;;  %v1123_v62 = vadd.f32 %v6239_v54, %v1093_v38  ;;  %v4807_v10 = vmul.f32 %v4415_v39, %v4503_v56  ;;  %v6241_v34 = vld [vmem:[#allocation79_spill] sm:$0xff]  ;;  %v4813_v18 = vadd.f32 %v1379_v43, %v1358_v60  ;;  %v6249_v43 = vld [vmem:[#allocation73_spill] sm:$0xff]  ;;  %v6250_v6 = vld [vmem:[#allocation62_spill] sm:$0xff] }
  0x7d   : > { %v1526_v52 = vmul.f32 %v6241_v34, %v4035_v42  ;;  %v1893_v40 = vadd.f32 %v4712_v51, %v1863_v37  ;;  %v1298_v13 = vadd.f32 %v6242_v29, %v1269_v1  ;;  %v4817_v47 = vmul.f32 %v4432_v27, %v4515_v55  ;;  %v4824_v42 = vld [vmem:[#allocation2 + $0x7d] sm:$0xff]  ;;  %v3681_v54 = vld [vmem:[#allocation2 + $0x50] sm:$0xff]  ;;  %v6252_v29 = vld [vmem:[#allocation65_spill] sm:$0xff] }
  0x7e   : > { %6240 = vst [vmem:[#allocation47_spill] sm:$0xff] %v4807_v10  ;;  %v1474_v19 = vadd.f32 %v1466_v7, %v1444_v16  ;;  %v1153_v32 = vadd.f32 %v6244_v9, %v1123_v62  ;;  %v1556_v50 = vmul.f32 %v6245_v23, %v6188_v61  ;;  %v6246_v7 = vld [vmem:[#allocation83_spill] sm:$0xff]  ;;  %6247 = vst [vmem:[#allocation29_spill] sm:$0xff] %v4824_v42  ;;  %v4894_v10 = vld [vmem:[#allocation2 + $0x82] sm:$0xff] }
  0x7f   : > { %6243 = vst [vmem:[#allocation60_spill] sm:$0xff] %v4817_v47  ;;  %v1586_v38 = vmul.f32 %v6246_v7, %v4079_v17  ;;  %v4826_v51 = vld [vmem:[#allocation2 + $0x7e] sm:$0xff]  ;;  %v1923_v60 = vadd.f32 %v4742_v57, %v1893_v40  ;;  %v1327_v16 = vadd.f32 %v6249_v43, %v1298_v13  ;;  %v1616_v37 = vmul.f32 %v4534_v36, %v3987_v58 }
  0x80   : > { %v1504_v0 = vadd.f32 %v1496_v44, %v1474_v19  ;;  %6248 = vst [vmem:[#allocation41_spill] sm:$0xff] %v4826_v51  ;;  %v1646_v44 = vmul.f32 %v4574_v22, %v4004_v3  ;;  %v1183_v1 = vadd.f32 %v6250_v6, %v1153_v32  ;;  %v1676_v17 = vmul.f32 %v4621_v48, %v4020_v14  ;;  %v4840_v19 = vld [vmem:[#allocation2 + $0x7f] sm:$0xff]  ;;  %v3682_v3 = vld [vmem:[%s5924_s1 + $0x7] ss:$0 sm:$0xff]  ;;  %v3683_v14 = vld [vmem:[%s5924_s1 + $0x8] ss:$0 sm:$0xff] }
  0x81   : > { %v4838_v62 = vmul.f32 %v3681_v54, %v4633_v24  ;;  %6251 = vst [vmem:[#allocation49_spill] sm:$0xff] %v4840_v19  ;;  %v1953_v57 = vadd.f32 %v4746_v11, %v1923_v60  ;;  %v4845_v58 = vmul.f32 %v4645_v8, %v4048_v26  ;;  %v819_v40 = vmul.f32 %v3683_v14, %v4826_v51  ;;  %v4865_v43 = vld [vmem:[#allocation2 + $0x81] sm:$0xff]  ;;  %v6255_v6 = vld [vmem:[#allocation14_spill] sm:$0xff]  ;;  %v6279_v22 = vld [vmem:[#allocation63_spill] sm:$0xff] }
  0x82   : > { %v1534_v61 = vadd.f32 %v1526_v52, %v1504_v0  ;;  %v789_v52 = vmul.f32 %v3682_v3, %v4824_v42  ;;  %v1212_v13 = vadd.f32 %v6252_v29, %v1183_v1  ;;  %v4858_v11 = vmul.f32 %v4650_v28, %v4067_v45  ;;  %v6253_v0 = vld [vmem:[#allocation78_spill] sm:$0xff]  ;;  %6254 = vst [vmem:[#allocation42_spill] sm:$0xff] %v4865_v43  ;;  %v3684_v1 = vld [vmem:[%s5924_s1 + $0x9] ss:$0 sm:$0xff]  ;;  %v4875_v45 = vld [vmem:[%s5925_s2] ss:$0 sm:$0xff] }
  0x83   : > { %v4862_v26 = vmul.f32 %v4655_v20, %v6235_v53  ;;  %v1983_v32 = vadd.f32 %v1975_v33, %v1953_v57  ;;  %v1356_v60 = vadd.f32 %v6253_v0, %v1327_v16  ;;  %6256 = vst [vmem:[#allocation34_spill] sm:$0xff] %v4875_v45  ;;  %v6257_v33 = vld [vmem:[#allocation23_spill] sm:$0xff]  ;;  %v6258_v16 = vld [vmem:[#allocation40_spill] sm:$0xff]  ;;  %v3685_v3 = vld [vmem:[%s5924_s1 + $0xe] ss:$0 sm:$0xff] }
  0x84   : > { %v1564_v9 = vadd.f32 %v1556_v50, %v1534_v61  ;;  %v797_v54 = vadd.f32 %v789_v52, %v6255_v6  ;;  %v849_v50 = vmul.f32 %v3684_v1, %v4840_v19  ;;  %v4879_v61 = vmul.f32 %v6257_v33, %v4503_v56  ;;  %v6259_v29 = vld [vmem:[#allocation30_spill] sm:$0xff]  ;;  %v6260_v6 = vld [vmem:[#allocation89_spill] sm:$0xff]  ;;  %6262 = vst [vmem:[#allocation18_spill] sm:$0xff] %v4894_v10 }
  0x85   : > { %v4883_v57 = vmul.f32 %v6258_v16, %v4515_v55  ;;  %v998_v52 = vmul.f32 %v3685_v3, %v4824_v42  ;;  %v2013_v14 = vadd.f32 %v2005_v35, %v1983_v32  ;;  %v1241_v0 = vadd.f32 %v6259_v29, %v1212_v13  ;;  %v6261_v1 = vld [vmem:[#allocation22_spill] sm:$0xff]  ;;  %v4896_v33 = vld [vmem:[#allocation2 + $0x83] sm:$0xff]  ;;  %v3686_v16 = vld [vmem:[%s5924_s1 + $0xb] ss:$0 sm:$0xff] }
  0x86   : > { %v1594_v53 = vadd.f32 %v1586_v38, %v1564_v9  ;;  %v4892_v38 = vmul.f32 %v6261_v1, %v6260_v6  ;;  %v827_v9 = vadd.f32 %v819_v40, %v797_v54  ;;  %6263 = vst [vmem:[#allocation17_spill] sm:$0xff] %v4896_v33  ;;  %v909_v20 = vmul.f32 %v3686_v16, %v4865_v43  ;;  %v3687_v35 = vld [vmem:[%s5924_s1 + $0xf] ss:$0 sm:$0xff]  ;;  %v4971_v6 = vld [vmem:[#allocation2 + $0x80] sm:$0xff] }
  0x87   : > { %v1006_v28 = vadd.f32 %v998_v52, %v976_v12  ;;  %v1028_v13 = vmul.f32 %v3687_v35, %v4826_v51  ;;  %v4907_v40 = vadd.f32 %v4875_v45, %v2013_v14  ;;  %v4917_v52 = vld [vmem:[#allocation2 + $0x68] sm:$0xff]  ;;  %v4925_v14 = vmul.f32 %v4727_v5, %v4546_v49  ;;  %6278 = vst [vmem:[#allocation25_spill] sm:$0xff] %v4971_v6 }
  0x88   : > { %v1624_v47 = vadd.f32 %v1616_v37, %v1594_v53  ;;  %v6265_v37 = vld [vmem:[#allocation84_spill] sm:$0xff]  ;;  %v857_v54 = vadd.f32 %v849_v50, %v827_v9  ;;  %v4913_v53 = vld [vmem:[%s5924_s1 + $0x10] ss:$0 sm:$0xff]  ;;  %6266 = vst [vmem:[#allocation19_spill] sm:$0xff] %v4917_v52  ;;  %v4921_v29 = vmul.f32 %v4917_v52, %v4722_v59  ;;  %v6269_v1 = vld [vmem:[#allocation37_spill] sm:$0xff] }
  0x89   : > { %6264 = vst [vmem:[#allocation35_spill] sm:$0xff] %v4907_v40  ;;  %v1385_v32 = vadd.f32 %v6265_v37, %v1356_v60  ;;  %v1058_v12 = vmul.f32 %v4913_v53, %v4840_v19  ;;  %v4927_v60 = vld [vmem:[#allocation2 + $0x95] sm:$0xff]  ;;  %v1036_v50 = vadd.f32 %v1028_v13, %v1006_v28  ;;  %2038 = vadd.xlane.f32.xlu0 %v4907_v40  ;;  %v6268_v9 = vld [vmem:[#allocation72_spill] sm:$0xff]  ;;  %v3691_v5 = vld [vmem:[%s5924_s1 + $0xd] ss:$0 sm:$0xff] }
  0x8a   : > { %v1654_v16 = vadd.f32 %v1646_v44, %v1624_v47  ;;  %6267 = vst [vmem:[#allocation9_spill] sm:$0xff] %v4927_v60  ;;  %v1270_v37 = vadd.f32 %v6268_v9, %v1241_v0  ;;  %v887_v45 = vadd.f32 %v6269_v1, %v857_v54  ;;  %v3690_v47 = vld [vmem:[%s5924_s1 + $0xc] ss:$0 sm:$0xff]  ;;  %v969_v59 = vmul.f32 %v3691_v5, %v4896_v33  ;;  %v4943_v0 = vld [vmem:[%s5924_s1 + $0x12] ss:$0 sm:$0xff] }
  0x8b   : > { %v939_v44 = vmul.f32 %v3690_v47, %v4894_v10  ;;  %v1066_v28 = vadd.f32 %v1058_v12, %v1036_v50  ;;  %6270 = vst [vmem:[#allocation44_spill] sm:$0xff] %v4943_v0  ;;  %v1118_v1 = vmul.f32 %v4943_v0, %v4865_v43  ;;  %v6271_v13 = vld [vmem:[#allocation53_spill] sm:$0xff]  ;;  %v6272_v9 = vld [vmem:[#allocation86_spill] sm:$0xff]  ;;  %v999_v49 = vmul.f32 %v3685_v3, %v4927_v60  ;;  %v6274_v50 = vld [vmem:[#allocation39_spill] sm:$0xff] }
  0x8c   : > { %v1684_v8 = vadd.f32 %v1676_v17, %v1654_v16  ;;  %v1206_v54 = vmul.f32 %v6271_v13, %v4824_v42  ;;  %v1415_v47 = vadd.f32 %v6272_v9, %v1385_v32  ;;  %v917_v40 = vadd.f32 %v909_v20, %v887_v45  ;;  %v6273_v5 = vld [vmem:[#allocation57_spill] sm:$0xff]  ;;  %v4954_v16 = vld [vmem:[#allocation2 + $0x96] sm:$0xff]  ;;  %v4960_v0 = vld [vmem:[%s5924_s1 + $0x13] ss:$0 sm:$0xff] }
  0x8d   : > { %v1235_v17 = vmul.f32 %v6273_v5, %v4826_v51  ;;  %v1096_v52 = vadd.f32 %v6274_v50, %v1066_v28  ;;  %6275 = vst [vmem:[#allocation10_spill] sm:$0xff] %v4960_v0  ;;  %v1148_v32 = vmul.f32 %v4960_v0, %v4894_v10  ;;  %v6276_v45 = vld [vmem:[#allocation7_spill] sm:$0xff]  ;;  %v1293_v0 = vmul.f32 %v4971_v6, %v6279_v22 }
  0x8e   : > { %v1714_v12 = vadd.f32 %v4838_v62, %v1684_v8  ;;  %v1214_v20 = vadd.f32 %v1206_v54, %v4802_v31  ;;  %v1299_v3 = vadd.f32 %v6276_v45, %v1270_v37  ;;  %v947_v9 = vadd.f32 %v939_v44, %v917_v40  ;;  %v6277_v62 = vld [vmem:[#allocation59_spill] sm:$0xff] }
  0x8f   : > { %v1178_v8 = vmul.f32 %v6230_v4, %v4896_v33  ;;  %v1264_v24 = vmul.f32 %v6277_v62, %v4840_v19  ;;  %v1126_v50 = vadd.f32 %v1118_v1, %v1096_v52  ;;  %v1029_v31 = vmul.f32 %v3687_v35, %v4954_v16  ;;  %v6280_v1 = vld [vmem:[#allocation76_spill] sm:$0xff]  ;;  %v6281_v45 = vld [vmem:[#allocation87_spill] sm:$0xff] }
  0x90   : > { %v1744_v28 = vadd.f32 %v4845_v58, %v1714_v12  ;;  %v1243_v48 = vadd.f32 %v1235_v17, %v1214_v20  ;;  %v977_v55 = vadd.f32 %v969_v59, %v947_v9  ;;  %v1207_v40 = vmul.f32 %v6271_v13, %v4927_v60  ;;  %v4991_v12 = vld [vmem:[#allocation2 + $0x97] sm:$0xff] }
  0x91   : > { %v1322_v4 = vmul.f32 %v6214_v25, %v4865_v43  ;;  %v1156_v44 = vadd.f32 %v1148_v32, %v1126_v50  ;;  %v1409_v52 = vmul.f32 %v4415_v39, %v4824_v42  ;;  %v1328_v54 = vadd.f32 %v6280_v1, %v1299_v3 }
  0x92   : > { %v1774_v37 = vadd.f32 %v4858_v11, %v1744_v28  ;;  %v1272_v58 = vadd.f32 %v1264_v24, %v1243_v48  ;;  %v1236_v59 = vmul.f32 %v6273_v5, %v4954_v16  ;;  %v1351_v35 = vmul.f32 %v6225_v15, %v4894_v10 }
  0x93   : > { %v1439_v13 = vmul.f32 %v4432_v27, %v4826_v51  ;;  %v1186_v11 = vadd.f32 %v1178_v8, %v1156_v44  ;;  %v1417_v24 = vadd.f32 %v1409_v52, %v4813_v18  ;;  %v1007_v32 = vadd.f32 %v999_v49, %v977_v55  ;;  %v6283_v18 = vld [vmem:[#allocation90_spill] sm:$0xff] }
  0x94   : > { %v1804_v17 = vadd.f32 %v4862_v26, %v1774_v37  ;;  %v1301_v48 = vadd.f32 %v1293_v0, %v1272_v58  ;;  %v1380_v20 = vmul.f32 %v6234_v21, %v4896_v33  ;;  %v1445_v3 = vadd.f32 %v6281_v45, %v1415_v47  ;;  %v6282_v37 = vld [vmem:[#allocation81_spill] sm:$0xff] }
  0x95   : > { %v1469_v9 = vmul.f32 %v6232_v2, %v4840_v19  ;;  %v1215_v50 = vadd.f32 %v1207_v40, %v1186_v11  ;;  %v1447_v26 = vadd.f32 %v1439_v13, %v1417_v24  ;;  %v1357_v5 = vadd.f32 %v6282_v37, %v1328_v54 }
  0x96   : > { %v1834_v28 = vadd.f32 %v4879_v61, %v1804_v17  ;;  %v1330_v1 = vadd.f32 %v1322_v4, %v1301_v48  ;;  %v1059_v0 = vmul.f32 %v4913_v53, %v4991_v12  ;;  %v1475_v55 = vadd.f32 %v6283_v18, %v1445_v3  ;;  %v6284_v53 = vld [vmem:[#allocation91_spill] sm:$0xff]  ;;  %v6287_v48 = vld [vmem:[#allocation38_spill] sm:$0xff] }
  0x97   : > { %v1499_v49 = vmul.f32 %v4971_v6, %v6237_v63  ;;  %v1477_v44 = vadd.f32 %v1469_v9, %v1447_v26  ;;  %v1529_v61 = vmul.f32 %v6241_v34, %v4865_v43  ;;  %v1037_v40 = vadd.f32 %v1029_v31, %v1007_v32  ;;  %v6288_v32 = vld [vmem:[#allocation92_spill] sm:$0xff] }
  0x98   : > { %v1864_v47 = vadd.f32 %v4883_v57, %v1834_v28  ;;  %v1359_v8 = vadd.f32 %v1351_v35, %v1330_v1  ;;  %v1265_v4 = vmul.f32 %v6277_v62, %v4991_v12  ;;  %v1410_v58 = vmul.f32 %v4415_v39, %v4927_v60  ;;  %v6285_v57 = vld [vmem:[#allocation85_spill] sm:$0xff]  ;;  %v6289_v28 = vld [vmem:[#allocation94_spill] sm:$0xff] }
  0x99   : > { %v1505_v52 = vadd.f32 %v6284_v53, %v1475_v55  ;;  %v1244_v13 = vadd.f32 %v1236_v59, %v1215_v50  ;;  %v1507_v11 = vadd.f32 %v1499_v49, %v1477_v44  ;;  %v5016_v35 = vadd.f32 %v6285_v57, %v1357_v5  ;;  %v6290_v55 = vld [vmem:[#allocation4_spill] sm:$0xff] }
  0x9a   : > { %v1894_v54 = vadd.f32 %v4892_v38, %v1864_v47  ;;  %v1388_v17 = vadd.f32 %v1380_v20, %v1359_v8  ;;  %v1976_v24 = vmul.f32 %v6287_v48, %v4587_v46  ;;  %v2006_v31 = vmul.f32 %v4782_v30, %v4590_v41  ;;  %v6291_v47 = vld [vmem:[#allocation88_spill] sm:$0xff]  ;;  %v6292_v8 = vld [vmem:[#allocation95_spill] sm:$0xff] }
  0x9b   : > { %6286 = vst [vmem:[#allocation69_spill] sm:$0xff] %v5016_v35  ;;  %v1535_v45 = vadd.f32 %v6288_v32, %v1505_v52  ;;  %v1440_v9 = vmul.f32 %v4432_v27, %v4954_v16  ;;  %v1537_v38 = vadd.f32 %v1529_v61, %v1507_v11  ;;  %v1559_v59 = vmul.f32 %v6245_v23, %v4894_v10  ;;  %v6293_v61 = vld [vmem:[#allocation89_spill] sm:$0xff]  ;;  %v5043_v52 = vld [vmem:[#allocation2 + $0x99] sm:$0xff] }
  0x9c   : > { %v1924_v3 = vadd.f32 %v4921_v29, %v1894_v54  ;;  %v1067_v20 = vadd.f32 %v1059_v0, %v1037_v40  ;;  %v1470_v5 = vmul.f32 %v6232_v2, %v4991_v12  ;;  %v1617_v1 = vmul.f32 %v4534_v36, %v4503_v56  ;;  %v6294_v40 = vld [vmem:[#allocation13_spill] sm:$0xff]  ;;  %v5049_v57 = vld [vmem:[#allocation2 + $0x9a] sm:$0xff] }
  0x9d   : > { %v1565_v50 = vadd.f32 %v6289_v28, %v1535_v45  ;;  %v1273_v37 = vadd.f32 %v1265_v4, %v1244_v13  ;;  %v1418_v29 = vadd.f32 %v1410_v58, %v1388_v17  ;;  %v1589_v18 = vmul.f32 %v6246_v7, %v4896_v33  ;;  %v6295_v4 = vld [vmem:[#allocation20_spill] sm:$0xff]  ;;  %v6296_v58 = vld [vmem:[#allocation19_spill] sm:$0xff]  ;;  %v6297_v13 = vld [vmem:[#allocation93_spill] sm:$0xff] }
  0x9e   : > { %v1954_v26 = vadd.f32 %v4925_v14, %v1924_v3  ;;  %v1619_v0 = vmul.f32 %v4534_v36, %v4927_v60  ;;  %v1647_v44 = vmul.f32 %v6292_v8, %v6291_v47  ;;  %v1677_v53 = vmul.f32 %v6294_v40, %v6293_v61  ;;  %v6298_v17 = vld [vmem:[#allocation15_spill] sm:$0xff]  ;;  %v6299_v45 = vld [vmem:[#allocation24_spill] sm:$0xff]  ;;  %v6304_v61 = vld [vmem:[#allocation10_spill] sm:$0xff] }
  0x9f   : > { %v1595_v49 = vadd.f32 %v6290_v55, %v1565_v50  ;;  %v1567_v14 = vadd.f32 %v1559_v59, %v1537_v38  ;;  %v1707_v54 = vmul.f32 %v6296_v58, %v6295_v4  ;;  %v1737_v11 = vmul.f32 %v6298_v17, %v6297_v13  ;;  %v6300_v28 = vld [vmem:[#allocation43_spill] sm:$0xff] }
  0xa0   : > { %v1984_v56 = vadd.f32 %v1976_v24, %v1954_v26  ;;  %v1767_v3 = vmul.f32 %v6299_v45, %v4587_v46  ;;  %v1797_v50 = vmul.f32 %v6300_v28, %v4590_v41  ;;  %v5055_v55 = vld [vmem:[#allocation2 + $0x98] sm:$0xff]  ;;  %v3696_v24 = vld [vmem:[%s5924_s1 + $0x11] ss:$0 sm:$0xff]  ;;  %v1448_v26 = vadd.f32 %v1440_v9, %v1418_v29  ;;  %v6303_v41 = vld [vmem:[#allocation40_spill] sm:$0xff] }
  0xa1   : > { %v1625_v32 = vadd.f32 %v1617_v1, %v1595_v49  ;;  %v1089_v38 = vmul.f32 %v3696_v24, %v5055_v55  ;;  %v6301_v47 = vld [vmem:[#allocation23_spill] sm:$0xff]  ;;  %v6302_v49 = vld [vmem:[#allocation44_spill] sm:$0xff]  ;;  %v5069_v58 = vmul.f32 %v6303_v41, %v4826_v51  ;;  %v1149_v28 = vmul.f32 %v6304_v61, %v5049_v57  ;;  %v6305_v24 = vld [vmem:[#allocation34_spill] sm:$0xff] }
  0xa2   : > { %v2014_v59 = vadd.f32 %v2006_v31, %v1984_v56  ;;  %v1827_v60 = vmul.f32 %v6301_v47, %v4824_v42  ;;  %v5063_v1 = vld [vmem:[#allocation2 + $0x9b] sm:$0xff]  ;;  %v1119_v46 = vmul.f32 %v6302_v49, %v5043_v52  ;;  %v1597_v9 = vadd.f32 %v1589_v18, %v1567_v14  ;;  %v6307_v29 = vld [vmem:[#allocation22_spill] sm:$0xff] }
  0xa3   : > { %v1655_v13 = vadd.f32 %v1647_v44, %v1625_v32  ;;  %v1097_v35 = vadd.f32 %v1089_v38, %v1067_v20  ;;  %v5078_v56 = vmul.f32 %v6307_v29, %v4840_v19  ;;  %v5080_v42 = vld [vmem:[#allocation2 + $0xad] sm:$0xff]  ;;  %v1294_v44 = vmul.f32 %v5055_v55, %v6279_v22 }
  0xa4   : > { %v5074_v31 = vadd.f32 %v6305_v24, %v2014_v59  ;;  %v3697_v20 = vld [vmem:[%s5924_s1 + $0x14] ss:$0 sm:$0xff]  ;;  %v1323_v18 = vmul.f32 %v6214_v25, %v5043_v52  ;;  %v1478_v14 = vadd.f32 %v1470_v5, %v1448_v26  ;;  %v6308_v38 = vld [vmem:[#allocation45_spill] sm:$0xff]  ;;  %v3698_v5 = vld [vmem:[%s5924_s1 + $0x15] ss:$0 sm:$0xff] }
  0xa5   : > { %v1685_v32 = vadd.f32 %v1677_v53, %v1655_v13  ;;  %v1127_v49 = vadd.f32 %v1119_v46, %v1097_v35  ;;  %v1179_v61 = vmul.f32 %v3697_v20, %v5063_v1  ;;  %v5093_v59 = vmul.f32 %v4971_v6, %v6308_v38  ;;  %v5095_v19 = vld [vmem:[#allocation2 + $0xae] sm:$0xff]  ;;  %v6309_v13 = vld [vmem:[#allocation56_spill] sm:$0xff] }
  0xa6   : > { %6306 = vst [vmem:[#allocation26_spill] sm:$0xff] %v5074_v31  ;;  %2040 = vadd.xlane.f32.xlu0 %v5074_v31  ;;  %v1302_v53 = vadd.f32 %v1294_v44, %v1273_v37  ;;  %v1352_v46 = vmul.f32 %v6225_v15, %v5049_v57  ;;  %v5101_v20 = vmul.f32 %v6309_v13, %v4865_v43  ;;  %v5103_v51 = vld [vmem:[#allocation2 + $0xaf] sm:$0xff] }
  0xa7   : > { %v1715_v35 = vadd.f32 %v1707_v54, %v1685_v32  ;;  %v1157_v29 = vadd.f32 %v1149_v28, %v1127_v49  ;;  %v1208_v26 = vmul.f32 %v3698_v5, %v5080_v42  ;;  %v5111_v37 = vmul.f32 %v6287_v48, %v4894_v10  ;;  %v5119_v49 = vld [vmem:[#allocation2 + $0xb1] sm:$0xff]  ;;  %v6310_v6 = vld [vmem:[#allocation57_spill] sm:$0xff] }
  0xa8   : > { %v5115_v54 = vmul.f32 %v4782_v30, %v4896_v33  ;;  %v1331_v44 = vadd.f32 %v1323_v18, %v1302_v53  ;;  %v1381_v32 = vmul.f32 %v6234_v21, %v5063_v1  ;;  %v1627_v31 = vadd.f32 %v1619_v0, %v1597_v9  ;;  %v5123_v13 = vld [vmem:[#allocation2 + $0xb2] sm:$0xff] }
  0xa9   : > { %v1745_v28 = vadd.f32 %v1737_v11, %v1715_v35  ;;  %v1187_v43 = vadd.f32 %v1179_v61, %v1157_v29  ;;  %v1237_v5 = vmul.f32 %v6310_v6, %v5095_v19  ;;  %v1266_v10 = vmul.f32 %v6277_v62, %v5103_v51  ;;  %v5131_v9 = vld [vmem:[#allocation2 + $0xb0] sm:$0xff] }
  0xaa   : > { %v1360_v48 = vadd.f32 %v1352_v46, %v1331_v44  ;;  %v1411_v18 = vmul.f32 %v4415_v39, %v5080_v42  ;;  %v1500_v53 = vmul.f32 %v5055_v55, %v6237_v63  ;;  %v1295_v29 = vmul.f32 %v5131_v9, %v6279_v22  ;;  %v5137_v61 = vld [vmem:[#allocation2 + $0xb3] sm:$0xff] }
  0xab   : > { %v1775_v0 = vadd.f32 %v1767_v3, %v1745_v28  ;;  %v1216_v11 = vadd.f32 %v1208_v26, %v1187_v43  ;;  %v1530_v6 = vmul.f32 %v6241_v34, %v5043_v52  ;;  %v1324_v62 = vmul.f32 %v6214_v25, %v5119_v49 }
  0xac   : > { %v1389_v46 = vadd.f32 %v1381_v32, %v1360_v48  ;;  %v1441_v35 = vmul.f32 %v4432_v27, %v5095_v19  ;;  %v1508_v44 = vadd.f32 %v1500_v53, %v1478_v14  ;;  %v1353_v26 = vmul.f32 %v6225_v15, %v5123_v13 }
  0xad   : > { %v1805_v3 = vadd.f32 %v1797_v50, %v1775_v0  ;;  %v1245_v43 = vadd.f32 %v1237_v5, %v1216_v11  ;;  %v1560_v22 = vmul.f32 %v6245_v23, %v5049_v57  ;;  %v1471_v33 = vmul.f32 %v6232_v2, %v5103_v51 }
  0xae   : > { %v1419_v28 = vadd.f32 %v1411_v18, %v1389_v46  ;;  %v1538_v30 = vadd.f32 %v1530_v6, %v1508_v44  ;;  %v1590_v25 = vmul.f32 %v6246_v7, %v5063_v1  ;;  %v1382_v50 = vmul.f32 %v6234_v21, %v5137_v61 }
  0xaf   : > { %v1835_v48 = vadd.f32 %v1827_v60, %v1805_v3  ;;  %v1274_v32 = vadd.f32 %v1266_v10, %v1245_v43  ;;  %v1412_v14 = vmul.f32 0.0, %v4415_v39  ;;  %v1501_v15 = vmul.f32 %v5131_v9, %v6237_v63 }
  0xb0   : > { %v1449_v5 = vadd.f32 %v1441_v35, %v1419_v28  ;;  %v1568_v53 = vadd.f32 %v1560_v22, %v1538_v30  ;;  %v1620_v18 = vmul.f32 %v4534_v36, %v5080_v42  ;;  %v1531_v60 = vmul.f32 %v6241_v34, %v5119_v49 }
  0xb1   : > { %v1865_v0 = vadd.f32 %v5069_v58, %v1835_v48  ;;  %v1303_v11 = vadd.f32 %v1295_v29, %v1274_v32  ;;  %v1649_v10 = vmul.f32 %v6292_v8, %v4954_v16  ;;  %v1650_v39 = vmul.f32 %v6292_v8, %v5095_v19 }
  0xb2   : > { %v1479_v21 = vadd.f32 %v1471_v33, %v1449_v5  ;;  %v1598_v6 = vadd.f32 %v1590_v25, %v1568_v53  ;;  %v1679_v30 = vmul.f32 %v6294_v40, %v4991_v12  ;;  %v1442_v58 = vmul.f32 0.0, %v4432_v27 }
  0xb3   : > { %v1895_v46 = vadd.f32 %v5078_v56, %v1865_v0  ;;  %v1332_v35 = vadd.f32 %v1324_v62, %v1303_v11  ;;  %v1657_v29 = vadd.f32 %v1649_v10, %v1627_v31  ;;  %v1561_v3 = vmul.f32 %v6245_v23, %v5123_v13  ;;  %v6311_v10 = vld [vmem:[#allocation43_spill] sm:$0xff] }
  0xb4   : > { %v1509_v44 = vadd.f32 %v1501_v15, %v1479_v21  ;;  %v1628_v43 = vadd.f32 %v1620_v18, %v1598_v6  ;;  %v1709_v33 = vmul.f32 %v5055_v55, %v6295_v4  ;;  %v1591_v25 = vmul.f32 %v6246_v7, %v5137_v61 }
  0xb5   : > { %v1925_v22 = vadd.f32 %v5093_v59, %v1895_v46  ;;  %v1361_v28 = vadd.f32 %v1353_v26, %v1332_v35  ;;  %v1687_v48 = vadd.f32 %v1679_v30, %v1657_v29  ;;  %v1680_v27 = vmul.f32 %v6294_v40, %v5103_v51 }
  0xb6   : > { %v1539_v56 = vadd.f32 %v1531_v60, %v1509_v44  ;;  %v1658_v62 = vadd.f32 %v1650_v39, %v1628_v43  ;;  %v1739_v31 = vmul.f32 %v6298_v17, %v5043_v52  ;;  %v1769_v59 = vmul.f32 %v6299_v45, %v5049_v57 }
  0xb7   : > { %v1955_v32 = vadd.f32 %v5101_v20, %v1925_v22  ;;  %v1390_v5 = vadd.f32 %v1382_v50, %v1361_v28  ;;  %v1717_v15 = vadd.f32 %v1709_v33, %v1687_v48  ;;  %v1472_v26 = vmul.f32 0.0, %v6232_v2  ;;  %v6313_v28 = vld [vmem:[#allocation69_spill] sm:$0xff] }
  0xb8   : > { %v1502_v7 = vmul.f32 0.0, %v6237_v63  ;;  %v1569_v53 = vadd.f32 %v1561_v3, %v1539_v56  ;;  %v1621_v18 = vmul.f32 0.0, %v4534_v36  ;;  %v1799_v21 = vmul.f32 %v6311_v10, %v5063_v1 }
  0xb9   : > { %v1985_v0 = vadd.f32 %v5111_v37, %v1955_v32  ;;  %v1420_v11 = vadd.f32 %v1412_v14, %v1390_v5  ;;  %v1747_v60 = vadd.f32 %v1739_v31, %v1717_v15  ;;  %v1651_v50 = vmul.f32 0.0, %v6292_v8  ;;  %v3700_v37 = vld [vmem:[%s5924_s1 + $0x1e] ss:$0 sm:$0xff]  ;;  %v6312_v14 = vld [vmem:[#allocation89_spill] sm:$0xff]  ;;  %v6317_v5 = vld [vmem:[#allocation60_spill] sm:$0xff] }
  0xba   : > { %v1599_v20 = vadd.f32 %v1591_v25, %v1569_v53  ;;  %v1688_v6 = vadd.f32 %v1680_v27, %v1658_v62  ;;  %v1710_v39 = vmul.f32 %v5131_v9, %v6295_v4  ;;  %v1829_v36 = vmul.f32 %v6301_v47, %v5080_v42  ;;  %v6314_v25 = vld [vmem:[#allocation47_spill] sm:$0xff]  ;;  %v6315_v62 = vld [vmem:[#allocation22_spill] sm:$0xff] }
  0xbb   : > { %v2015_v2 = vadd.f32 %v5115_v54, %v1985_v0  ;;  %v1450_v63 = vadd.f32 %v1442_v58, %v1420_v11  ;;  %v1777_v30 = vadd.f32 %v1769_v59, %v1747_v60  ;;  %v1468_v46 = vmul.f32 %v3700_v37, %v6312_v14  ;;  %v6316_v31 = vld [vmem:[#allocation19_spill] sm:$0xff]  ;;  %v6318_v11 = vld [vmem:[#allocation93_spill] sm:$0xff] }
  0xbc   : > { %v1532_v35 = vmul.f32 0.0, %v6241_v34  ;;  %v1562_v29 = vmul.f32 0.0, %v6245_v23  ;;  %v1629_v44 = vadd.f32 %v1621_v18, %v1599_v20  ;;  %v1859_v43 = vmul.f32 %v6303_v41, %v5095_v19  ;;  %v3701_v19 = vld [vmem:[%s5924_s1 + $0x1f] ss:$0 sm:$0xff]  ;;  %v6320_v37 = vld [vmem:[#allocation21_spill] sm:$0xff] }
  0xbd   : > { %v5202_v3 = vadd.f32 %v6305_v24, %v2015_v2  ;;  %v1480_v54 = vadd.f32 %v1472_v26, %v1450_v63  ;;  %v1807_v58 = vadd.f32 %v1799_v21, %v1777_v30  ;;  %v1681_v42 = vmul.f32 0.0, %v6294_v40  ;;  %v3702_v26 = vld [vmem:[%s5924_s1 + $0x22] ss:$0 sm:$0xff] }
  0xbe   : > { %v1718_v33 = vadd.f32 %v1710_v39, %v1688_v6  ;;  %v1740_v22 = vmul.f32 %v6298_v17, %v5119_v49  ;;  %v1416_v34 = vadd.f32 %v6314_v25, %v6313_v28  ;;  %v1659_v48 = vadd.f32 %v1651_v50, %v1629_v44  ;;  %v6319_v30 = vld [vmem:[#allocation56_spill] sm:$0xff] }
  0xbf   : > { %2042 = vadd.xlane.f32.xlu1 %v5202_v3  ;;  %v1510_v23 = vadd.f32 %v1502_v7, %v1480_v54  ;;  %v1837_v56 = vadd.f32 %v1829_v36, %v1807_v58  ;;  %v1889_v27 = vmul.f32 %v6315_v62, %v5103_v51  ;;  %v1498_v32 = vmul.f32 %v3701_v19, %v6316_v31  ;;  %v3703_v51 = vld [vmem:[%s5924_s1 + $0x20] ss:$0 sm:$0xff] }
  0xc0   : > { %v1446_v15 = vadd.f32 %v6317_v5, %v1416_v34  ;;  %v1592_v53 = vmul.f32 0.0, %v3702_v26  ;;  %v1919_v0 = vmul.f32 %v5131_v9, %v6308_v38  ;;  %v1528_v60 = vmul.f32 %v3703_v51, %v6318_v11  ;;  %v3704_v9 = vld [vmem:[%s5924_s1 + $0x21] ss:$0 sm:$0xff] }
  0xc1   : > { %v1540_v59 = vadd.f32 %v1532_v35, %v1510_v23  ;;  %v1867_v7 = vadd.f32 %v1859_v43, %v1837_v56  ;;  %v1748_v21 = vadd.f32 %v1740_v22, %v1718_v33  ;;  %v1770_v20 = vmul.f32 %v6299_v45, %v5123_v13  ;;  %v6321_v35 = vld [vmem:[#allocation96_spill] sm:$0xff] }
  0xc2   : > { %v1476_v6 = vadd.f32 %v1468_v46, %v1446_v15  ;;  %v1689_v2 = vadd.f32 %v1681_v42, %v1659_v48  ;;  %v1949_v36 = vmul.f32 %v6319_v30, %v5119_v49  ;;  %v1558_v14 = vmul.f32 %v3704_v9, %v6320_v37  ;;  %v6323_v28 = vld [vmem:[#allocation16_spill] sm:$0xff]  ;;  %v6327_v37 = vld [vmem:[#allocation25_spill] sm:$0xff] }
  0xc3   : > { %v1570_v39 = vadd.f32 %v1562_v29, %v1540_v59  ;;  %v1897_v63 = vadd.f32 %v1889_v27, %v1867_v7  ;;  %v1588_v44 = vmul.f32 %v3702_v26, %v6321_v35  ;;  %v1800_v54 = vmul.f32 %v6311_v10, %v5137_v61  ;;  %v6322_v29 = vld [vmem:[#allocation38_spill] sm:$0xff] }
  0xc4   : > { %v1506_v58 = vadd.f32 %v1498_v32, %v1476_v6  ;;  %v1979_v33 = vmul.f32 %v6322_v29, %v5123_v13  ;;  %v1711_v22 = vmul.f32 0.0, %v6295_v4  ;;  %v1778_v49 = vadd.f32 %v1770_v20, %v1748_v21  ;;  %v3705_v32 = vld [vmem:[%s5924_s1 + $0x23] ss:$0 sm:$0xff]  ;;  %v6324_v13 = vld [vmem:[#allocation29_spill] sm:$0xff] }
  0xc5   : > { %v1600_v43 = vadd.f32 %v1592_v53, %v1570_v39  ;;  %v1927_v46 = vadd.f32 %v1919_v0, %v1897_v63  ;;  %v2009_v25 = vmul.f32 %v6323_v28, %v5137_v61  ;;  %v1741_v23 = vmul.f32 0.0, %v6298_v17  ;;  %v6325_v0 = vld [vmem:[#allocation41_spill] sm:$0xff] }
  0xc6   : > { %v1536_v34 = vadd.f32 %v1528_v60, %v1506_v58  ;;  %v1719_v27 = vadd.f32 %v1711_v22, %v1689_v2  ;;  %v1771_v19 = vmul.f32 0.0, %v6299_v45  ;;  %v1618_v5 = vmul.f32 %v3705_v32, %v6324_v13  ;;  %v6326_v6 = vld [vmem:[#allocation49_spill] sm:$0xff] }
  0xc7   : > { %v1630_v48 = vadd.f32 %v1621_v18, %v1600_v43  ;;  %v1957_v56 = vadd.f32 %v1949_v36, %v1927_v46  ;;  %v1801_v61 = vmul.f32 0.0, %v6311_v10  ;;  %v1808_v53 = vadd.f32 %v1800_v54, %v1778_v49  ;;  %v6329_v49 = vld [vmem:[#allocation18_spill] sm:$0xff] }
  0xc8   : > { %v1566_v31 = vadd.f32 %v1558_v14, %v1536_v34  ;;  %v1749_v26 = vadd.f32 %v1741_v23, %v1719_v27  ;;  %v1648_v18 = vmul.f32 %v6292_v8, %v6325_v0  ;;  %v1830_v51 = vmul.f32 0.0, %v6301_v47 }
  0xc9   : > { %v1660_v15 = vadd.f32 %v1651_v50, %v1630_v48  ;;  %v1987_v59 = vadd.f32 %v1979_v33, %v1957_v56  ;;  %v1678_v39 = vmul.f32 %v6294_v40, %v6326_v6  ;;  %v1860_v63 = vmul.f32 0.0, %v6303_v41  ;;  %v6328_v40 = vld [vmem:[#allocation42_spill] sm:$0xff] }
  0xca   : > { %v1596_v7 = vadd.f32 %v1588_v44, %v1566_v31  ;;  %v1779_v60 = vadd.f32 %v1771_v19, %v1749_v26  ;;  %v1708_v8 = vmul.f32 %v6327_v37, %v6295_v4  ;;  %v1838_v14 = vadd.f32 %v1830_v51, %v1808_v53  ;;  %v6330_v31 = vld [vmem:[#allocation17_spill] sm:$0xff] }
  0xcb   : > { %v2017_v11 = vadd.f32 %v2009_v25, %v1987_v59  ;;  %v1690_v21 = vadd.f32 %v1681_v42, %v1660_v15  ;;  %v1890_v42 = vmul.f32 0.0, %v6315_v62  ;;  %v1738_v58 = vmul.f32 %v6298_v17, %v6328_v40  ;;  %v6331_v15 = vld [vmem:[#allocation9_spill] sm:$0xff]  ;;  %v6332_v40 = vld [vmem:[#allocation35_spill] sm:$0xff] }
  0xcc   : > { %v1626_v20 = vadd.f32 %v1618_v5, %v1596_v7  ;;  %v1809_v2 = vadd.f32 %v1801_v61, %v1779_v60  ;;  %v1920_v46 = vmul.f32 0.0, %v6308_v38  ;;  %v1768_v25 = vmul.f32 %v6299_v45, %v6329_v49  ;;  %v3534_v49 = vld [vmem:[%s5928_s5 + $0x4c] ss:$16 sps:$4 sm:$0xff]  }
  0xcd   : > { %v5257_v50 = vadd.f32 %v6305_v24, %v2017_v11  ;;  %v1720_v36 = vadd.f32 %v1711_v22, %v1690_v21  ;;  %v1868_v4 = vadd.f32 %v1860_v63, %v1838_v14  ;;  %v1950_v48 = vmul.f32 0.0, %v6319_v30 }
  0xce   : > { %v1656_v9 = vadd.f32 %v1648_v18, %v1626_v20  ;;  %v1839_v35 = vadd.f32 %v1830_v51, %v1809_v2  ;;  %v1980_v17 = vmul.f32 0.0, %v6322_v29  ;;  %v2010_v45 = vmul.f32 0.0, %v6323_v28 }
  0xcf   : > { %2046 = vadd.xlane.f32.xlu0 %v5257_v50  ;;  %v1750_v44 = vadd.f32 %v1741_v23, %v1720_v36  ;;  %v1798_v23 = vmul.f32 %v6311_v10, %v6330_v31  ;;  %v1898_v59 = vadd.f32 %v1890_v42, %v1868_v4  ;;  %v1888_v10 = vmul.f32 %v6315_v62, %v4991_v12 }
  0xd0   : > { %v1686_v54 = vadd.f32 %v1678_v39, %v1656_v9  ;;  %v1869_v43 = vadd.f32 %v1860_v63, %v1839_v35  ;;  %v1948_v39 = vmul.f32 %v6319_v30, %v5043_v52  ;;  %v1978_v12 = vmul.f32 %v6322_v29, %v5049_v57  ;;  %v3522_v29 = vld [vmem:[%s5928_s5 + $0xc] ss:$16 sps:$4 sm:$0xff]   ;;  %v3525_v35 = vld [vmem:[%s5928_s5 + $0x8] ss:$16 sps:$4 sm:$0xff]  }
  0xd1   : > { %v1780_v33 = vadd.f32 %v1771_v19, %v1750_v44  ;;  %v1828_v19 = vmul.f32 %v6301_v47, %v6331_v15  ;;  %v1928_v11 = vadd.f32 %v1920_v46, %v1898_v59  ;;  %v1918_v47 = vmul.f32 %v5055_v55, %v6308_v38  ;;  %2446 = vmatprep.subr.bf16.mxu1 %v3522_v29  ;;  %v3538_v59 = vld [vmem:[%s5928_s5 + $0x64] ss:$16 sps:$4 sm:$0xff]   ;;  %v3567_v29 = vld [vmem:[%s5928_s5 + $0xe8] ss:$16 sps:$4 sm:$0xff]  }
  0xd2   : > { %v1716_v22 = vadd.f32 %v1708_v8, %v1686_v54  ;;  %v1899_v34 = vadd.f32 %v1890_v42, %v1869_v43  ;;  %2447 = vmatpush1.bf16.msra.mxu1 %v3525_v35 }
  0xd3   : > { %v1810_v56 = vadd.f32 %v1801_v61, %v1780_v33  ;;  %v1858_v61 = vmul.f32 %v6303_v41, %v4954_v16  ;;  %v1958_v41 = vadd.f32 %v1950_v48, %v1928_v11  ;;  %v3531_v33 = vld [vmem:[%s5928_s5 + $0x28] ss:$16 sps:$4 sm:$0xff]  }
  0xd4   : > { %v1746_v27 = vadd.f32 %v1738_v58, %v1716_v22  ;;  %v1929_v32 = vadd.f32 %v1920_v46, %v1899_v34  ;;  %v3532_v22 = vld [vmem:[%s5928_s5 + $0x44] ss:$16 sps:$4 sm:$0xff]  }
  0xd5   : > { %v1840_v13 = vadd.f32 %v1830_v51, %v1810_v56  ;;  %v1988_v55 = vadd.f32 %v1980_v17, %v1958_v41  ;;  %v6333_v34 = vld [vmem:[#allocation26_spill] sm:$0xff] }
  0xd6   : > { %v1776_v5 = vadd.f32 %v1768_v25, %v1746_v27  ;;  %v1959_v26 = vadd.f32 %v1950_v48, %v1929_v32 }
  0xd7   : > { %v1870_v53 = vadd.f32 %v1860_v63, %v1840_v13  ;;  %v2008_v63 = vmul.f32 %v6323_v28, %v5063_v1  ;;  %v2018_v37 = vadd.f32 %v2010_v45, %v1988_v55  ;;  %v3520_v1 = vld [vmem:[%s5928_s5 + $0x4] ss:$16 sps:$4 sm:$0xff]   ;;  %v3524_v28 = vld [vmem:[%s5928_s5] ss:$16 sps:$4 sm:$0xff]  }
  0xd8   : > { %v1806_v7 = vadd.f32 %v1798_v23, %v1776_v5  ;;  %v1989_v0 = vadd.f32 %v1980_v17, %v1959_v26  ;;  %2373 = vmatprep.subr.bf16.mxu0 %v3520_v1  ;;  %v3542_v26 = vld [vmem:[%s5928_s5 + $0x60] ss:$16 sps:$4 sm:$0xff]   ;;  %v3550_v55 = vld [vmem:[%s5928_s5 + $0xa4] ss:$16 sps:$4 sm:$0xff]  }
  0xd9   : > { %v1900_v51 = vadd.f32 %v1890_v42, %v1870_v53  ;;  %v5297_v30 = vadd.f32 %v6305_v24, %v2018_v37  ;;  %v3528_v42 = vld [vmem:[%s5928_s5 + $0x2c] ss:$16 sps:$4 sm:$0xff]   ;;  %2374 = vmatpush1.bf16.msra.mxu0 %v3524_v28  ;;  %v3544_v53 = vld [vmem:[%s5928_s5 + $0x84] ss:$16 sps:$4 sm:$0xff]   ;;  %v3566_v1 = vld [vmem:[%s5928_s5 + $0xe0] ss:$16 sps:$4 sm:$0xff]  }
  0xda   : > { %v1836_v18 = vadd.f32 %v1828_v19, %v1806_v7  ;;  %v2019_v60 = vadd.f32 %v2010_v45, %v1989_v0  ;;  %2448 = vmatprep.subr.bf16.mxu1 %v3528_v42  ;;  %v3536_v19 = vld [vmem:[%s5928_s5 + $0x40] ss:$16 sps:$4 sm:$0xff]   ;;  %v3546_v7 = vld [vmem:[%s5928_s5 + $0x8c] ss:$16 sps:$4 sm:$0xff]   ;;  %v3549_v0 = vld [vmem:[%s5928_s5 + $0x88] ss:$16 sps:$4 sm:$0xff]  }
  0xdb   : > { %v1930_v16 = vadd.f32 %v1920_v46, %v1900_v51  ;;  %v3530_v46 = vld [vmem:[%s5928_s5 + $0x20] ss:$16 sps:$4 sm:$0xff]   ;;  %2449 = vmatpush1.bf16.msra.mxu1 %v3531_v33  ;;  %v3556_v37 = vld [vmem:[%s5928_s5 + $0xc4] ss:$16 sps:$4 sm:$0xff]   ;;  %v3723_v28 = vmov 0  }
  0xdc   : > { %v1866_v21 = vadd.f32 %v1858_v61, %v1836_v18  ;;  %v5283_v20 = vadd.f32 %v6305_v24, %v2019_v60  ;;  %2450 = vmatprep.subr.bf16.mxu1 %v3534_v49  ;;  %v3548_v61 = vld [vmem:[%s5928_s5 + $0x80] ss:$16 sps:$4 sm:$0xff]   ;;  %2405 = vmatprep.mubr.bf16.mxu0 %v3723_v28 }
  0xdd   : > { %v1960_v38 = vadd.f32 %v1950_v48, %v1930_v16  ;;  %2478 = vmatprep.mubr.bf16.mxu1 %v3723_v28  ;;  %v5446_v33 = vld [vmem:[%s5926_s3] ss:$0 sm:$0xff] }
  0xde   : > { %v1896_v6 = vadd.f32 %v1888_v10, %v1866_v21  ;;  %2050 = vadd.xlane.f32.xlu0 %v5283_v20 }
  0xdf   : > { %v1990_v8 = vadd.f32 %v1980_v17, %v1960_v38  ;;  %v3552_v38 = vld [vmem:[%s5928_s5 + $0xac] ss:$16 sps:$4 sm:$0xff]  }
  0xe0   : > { %v1926_v2 = vadd.f32 %v1918_v47, %v1896_v6 }
  0xe1   : > { %v2020_v14 = vadd.f32 %v2010_v45, %v1990_v8  ;;  %v3543_v45 = vld [vmem:[%s5928_s5 + $0x68] ss:$16 sps:$4 sm:$0xff]   ;;  %v3558_v8 = vld [vmem:[%s5928_s5 + $0xcc] ss:$16 sps:$4 sm:$0xff]  }
  0xe2   : > { %v1956_v62 = vadd.f32 %v1948_v39, %v1926_v2 }
  0xe3   : > { %v5301_v57 = vadd.f32 %v6305_v24, %v2020_v14  ;;  %v3562_v14 = vld [vmem:[%s5928_s5 + $0xe4] ss:$16 sps:$4 sm:$0xff]  }
  0xe4   : > { %v1986_v36 = vadd.f32 %v1978_v12, %v1956_v62 }
  0xe6   : > { %v2016_v9 = vadd.f32 %v2008_v63, %v1986_v36  ;;  %v3554_v36 = vld [vmem:[%s5928_s5 + $0xa0] ss:$16 sps:$4 sm:$0xff]  }
  0xe8   : > { %v5293_v52 = vadd.f32 %v6305_v24, %v2016_v9  ;;  %v3526_v24 = vld [vmem:[%s5928_s5 + $0x24] ss:$16 sps:$4 sm:$0xff]   ;;  %v3555_v9 = vld [vmem:[%s5928_s5 + $0xa8] ss:$16 sps:$4 sm:$0xff]  }
  0xe9   : > { %2375 = vmatprep.subr.bf16.mxu0 %v3526_v24 }
  0xea   : > { %2044 = vadd.xlane.f32.xlu1 %v5293_v52  ;;  %2376 = vmatpush1.bf16.msra.mxu0 %v3530_v46 }
  0xeb   : > { %2377 = vmatprep.subr.bf16.mxu0 %v3532_v22 }
  0xee   : > { %2048 = vadd.xlane.f32.xlu1 %v5297_v30  ;;  %2378 = vmatpush1.bf16.msra.mxu0 %v3536_v19 }
  0xef   : > { %2379 = vmatprep.subr.bf16.mxu0 %v3538_v59 }
  0xf2   : > { %2052 = vadd.xlane.f32.xlu1 %v5301_v57  ;;  %2380 = vmatpush1.bf16.msra.mxu0 %v3542_v26 }
  0xf3   : > { %2381 = vmatprep.subr.bf16.mxu0 %v3544_v53 }
  0xf6   : > { %2382 = vmatpush1.bf16.msra.mxu0 %v3548_v61 }
  0xf7   : > { %2383 = vmatprep.subr.bf16.mxu0 %v3550_v55 }
  0xfa   : > { %2384 = vmatpush1.bf16.msra.mxu0 %v3554_v36 }
  0xfb   : > { %2385 = vmatprep.subr.bf16.mxu0 %v3556_v37 }
 0x116   : > { %v2039_v44 = vpop.xlane.xlu0 %2038 }
 0x117   : > { %v2055_v54 = vmul.f32 0.0078125, %v2039_v44 }
 0x119   : > { %v5323_v58 = vsub.f32 %v6332_v40, %v2055_v54 }
 0x11b   : > { %v2071_v43 = vmul.f32 %v5323_v58, %v5323_v58 }
 0x11d   : > { %2079 = vadd.xlane.f32.xlu0 %v2071_v43 }
 0x133   : > { %v2041_v25 = vpop.xlane.xlu0 %2040 }
 0x134   : > { %v2056_v4 = vmul.f32 0.0078125, %v2041_v25 }
 0x136   : > { %v5340_v48 = vsub.f32 %v6333_v34, %v2056_v4  ;;  %v5453_v4 = vld [vmem:[%s5927_s4] ss:$0 sm:$0xff] }
 0x138   : > { %v2072_v56 = vmul.f32 %v5340_v48, %v5340_v48 }
 0x13a   : > { %2081 = vadd.xlane.f32.xlu1 %v2072_v56 }
 0x14c   : > { %v2043_v27 = vpop.xlane.xlu1 %2042 }
 0x14d   : > { %v2057_v31 = vmul.f32 0.0078125, %v2043_v27 }
 0x14f   : > { %v5345_v23 = vsub.f32 %v5202_v3, %v2057_v31  ;;  %v3537_v3 = vld [vmem:[%s5928_s5 + $0x48] ss:$16 sps:$4 sm:$0xff]  }
 0x150   : > { %2451 = vmatpush1.bf16.msra.mxu1 %v3537_v3 }
 0x151   : > { %v2073_v32 = vmul.f32 %v5345_v23, %v5345_v23 }
 0x153   : > { %2083 = vadd.xlane.f32.xlu0 %v2073_v32 }
 0x15c   : > { %v2047_v17 = vpop.xlane.xlu0 %2046 }
 0x15d   : > { %v2059_v13 = vmul.f32 0.0078125, %v2047_v17 }
 0x15f   : > { %v5350_v5 = vsub.f32 %v5257_v50, %v2059_v13  ;;  %v3540_v50 = vld [vmem:[%s5928_s5 + $0x6c] ss:$16 sps:$4 sm:$0xff]  }
 0x160   : > { %2452 = vmatprep.subr.bf16.mxu1 %v3540_v50 }
 0x161   : > { %v2075_v15 = vmul.f32 %v5350_v5, %v5350_v5  ;;  %2453 = vmatpush1.bf16.msra.mxu1 %v3543_v45 }
 0x162   : > { %2454 = vmatprep.subr.bf16.mxu1 %v3546_v7 }
 0x163   : > { %2087 = vadd.xlane.f32.xlu0 %v2075_v15 }
 0x165   : > { %2455 = vmatpush1.bf16.msra.mxu1 %v3549_v0 }
 0x166   : > { %2456 = vmatprep.subr.bf16.mxu1 %v3552_v38 }
 0x169   : > { %2457 = vmatpush1.bf16.msra.mxu1 %v3555_v9 }
 0x16a   : > { %2458 = vmatprep.subr.bf16.mxu1 %v3558_v8 }
 0x16b   : > { %v2051_v18 = vpop.xlane.xlu0 %2050 }
 0x16c   : > { %v2061_v10 = vmul.f32 0.0078125, %v2051_v18 }
 0x16e   : > { %v5385_v11 = vsub.f32 %v5283_v20, %v2061_v10 }
 0x170   : > { %v2077_v51 = vmul.f32 %v5385_v11, %v5385_v11 }
 0x172   : > { %2091 = vadd.xlane.f32.xlu0 %v2077_v51 }
 0x177   : > { %v2045_v60 = vpop.xlane.xlu1 %2044 }
 0x178   : > { %v2058_v21 = vmul.f32 0.0078125, %v2045_v60 }
 0x17a   : > { %v5390_v47 = vsub.f32 %v5293_v52, %v2058_v21  ;;  %v3560_v52 = vld [vmem:[%s5928_s5 + $0xc0] ss:$16 sps:$4 sm:$0xff]  }
 0x17b   : > { %v2049_v6 = vpop.xlane.xlu1 %2048  ;;  %2386 = vmatpush1.bf16.msra.mxu0 %v3560_v52 }
 0x17c   : > { %v2060_v39 = vmul.f32 0.0078125, %v2049_v6  ;;  %v2074_v41 = vmul.f32 %v5390_v47, %v5390_v47  ;;  %2387 = vmatprep.subr.bf16.mxu0 %v3562_v14 }
 0x17e   : > { %v5395_v16 = vsub.f32 %v5297_v30, %v2060_v39  ;;  %2085 = vadd.xlane.f32.xlu1 %v2074_v41  ;;  %v3561_v30 = vld [vmem:[%s5928_s5 + $0xc8] ss:$16 sps:$4 sm:$0xff]  }
 0x17f   : > { %v2053_v20 = vpop.xlane.xlu1 %2052  ;;  %2459 = vmatpush1.bf16.msra.mxu1 %v3561_v30  ;;  %2388 = vmatpush1.bf16.msra.mxu0 %v3566_v1 }
 0x180   : > { %v2062_v2 = vmul.f32 0.0078125, %v2053_v20  ;;  %v2076_v12 = vmul.f32 %v5395_v16, %v5395_v16 }
 0x182   : > { %v5400_v62 = vsub.f32 %v5301_v57, %v2062_v2  ;;  %2089 = vadd.xlane.f32.xlu1 %v2076_v12  ;;  %v3564_v57 = vld [vmem:[%s5928_s5 + $0xec] ss:$16 sps:$4 sm:$0xff]  }
 0x183   : > { %2460 = vmatprep.subr.bf16.mxu1 %v3564_v57 }
 0x184   : > { %v2078_v63 = vmul.f32 %v5400_v62, %v5400_v62  ;;  %2461 = vmatpush1.bf16.msra.mxu1 %v3567_v29 }
 0x186   : > { %2093 = vadd.xlane.f32.xlu1 %v2078_v63 }
 0x1aa   : > { %v2080_v35 = vpop.xlane.xlu0 %2079 }
 0x1ab   : > { %v2095_v24 = vmul.f32 0.0078125, %v2080_v35  ;;  %v3569_v35 = vld [vmem:[%s5930_s7 + $0xc0] sm:$0xff]  }
 0x1ac   : > { %3470 = vmatprep.subr.bf16.mxu1 %v3569_v35 }
 0x1ad   : > { %v2103_v42 = vadd.f32 1e-06, %v2095_v24  ;;  %v3570_v24 = vld [vmem:[%s5930_s7] sm:$0xff]  }
 0x1af   : > { %3600 = vrsqrt.f32 %v2103_v42  ;;  %v3572_v42 = vld [vmem:[%s5930_s7 + $0x48] sm:$0xff]  }
 0x1b9   : > { %v3601_v43 = vpop.eup %3600 }
 0x1ba   : > { %v2119_v46 = vmul.f32 %v3601_v43, %v5323_v58  ;;  %v3576_v43 = vld [vmem:[%s5930_s7 + $0x50] sm:$0xff]  }
 0x1bc   : > { %v2133_v25 = vmul.f32 %v5446_v33, %v2119_v46  ;;  %v3577_v46 = vld [vmem:[%s5930_s7 + $0xd0] sm:$0xff]  }
 0x1be   : > { %v2147_v56 = vadd.f32 %v5453_v4, %v2133_v25  ;;  %v3581_v25 = vld [vmem:[%s5930_s7 + $0xd8] sm:$0xff]  }
 0x1c7   : > { %v2082_v44 = vpop.xlane.xlu1 %2081 }
 0x1c8   : > { %v2096_v54 = vmul.f32 0.0078125, %v2082_v44  ;;  %v3573_v44 = vld [vmem:[%s5930_s7 + $0xc8] sm:$0xff]  }
 0x1ca   : > { %v2104_v40 = vadd.f32 1e-06, %v2096_v54  ;;  %v3574_v54 = vld [vmem:[%s5930_s7 + $0x8] sm:$0xff]  }
 0x1cc   : > { %3602 = vrsqrt.f32 %v2104_v40  ;;  %v3575_v40 = vld [vmem:[%s5930_s7 + $0x88] sm:$0xff]  }
 0x1d6   : > { %v3603_v22 = vpop.eup %3602 }
 0x1d7   : > { %v2120_v49 = vmul.f32 %v3603_v22, %v5340_v48  ;;  %v3579_v22 = vld [vmem:[%s5930_s7 + $0x90] sm:$0xff]  }
 0x1d9   : > { %v2134_v34 = vmul.f32 %v5446_v33, %v2120_v49  ;;  %v3580_v49 = vld [vmem:[%s5930_s7 + $0x58] sm:$0xff]  }
 0x1db   : > { %v2148_v58 = vadd.f32 %v5453_v4, %v2134_v34  ;;  %v3583_v34 = vld [vmem:[%s5930_s7 + $0x98] sm:$0xff]  }
 0x1dd   : > { %v2155_v27 = vpack.c.bf16 %v2148_v58, %v2147_v56  ;;  %v3584_v56 = vld [vmem:[%s5930_s7 + $0x60] sm:$0xff]  }
 0x1de   : > { %v3585_v58 = vld [vmem:[%s5930_s7 + $0xe0] sm:$0xff]  }
 0x1df   : > { %2406 = vmatmul.mubr.bf16.vlgmr.msra.gmra.mrb[0].mxu0 %v2155_v27  ;;  %2479 = vmatmul.mubr.bf16.vlgmr.msra.gmra.mrb[0].mxu1 %v2155_v27  ;;  %v3586_v27 = vld [vmem:[%s5930_s7 + $0x20] sm:$0xff]  }
 0x1e0   : > { %2415 = vmatprep.mubr.bf16.mxu0 %v3723_v28  ;;  %2488 = vmatprep.mubr.bf16.mxu1 %v3723_v28  ;;  %v2084_v48 = vpop.xlane.xlu0 %2083 }
 0x1e1   : > { %v2097_v31 = vmul.f32 0.0078125, %v2084_v48  ;;  %v3587_v48 = vld [vmem:[%s5930_s7 + $0xa0] sm:$0xff]  }
 0x1e3   : > { %v2105_v32 = vadd.f32 1e-06, %v2097_v31  ;;  %v3588_v31 = vld [vmem:[%s5930_s7 + $0x68] sm:$0xff]  }
 0x1e5   : > { %3604 = vrsqrt.f32 %v2105_v32  ;;  %v3589_v32 = vld [vmem:[%s5930_s7 + $0xe8] sm:$0xff]  }
 0x1ef   : > { %v3605_v0 = vpop.eup %3604 }
 0x1f0   : > { %v2088_v17 = vpop.xlane.xlu0 %2087  ;;  %v2121_v60 = vmul.f32 %v3605_v0, %v5345_v23 }
 0x1f1   : > { %v2099_v13 = vmul.f32 0.0078125, %v2088_v17  ;;  %v3590_v17 = vld [vmem:[%s5930_s7 + $0x28] sm:$0xff]  }
 0x1f2   : > { %v2135_v39 = vmul.f32 %v5446_v33, %v2121_v60 }
 0x1f3   : > { %v2107_v3 = vadd.f32 1e-06, %v2099_v13  ;;  %v3591_v13 = vld [vmem:[%s5930_s7 + $0xa8] sm:$0xff]  }
 0x1f4   : > { %v2149_v12 = vadd.f32 %v5453_v4, %v2135_v39 }
 0x1ff   : > { %v2092_v50 = vpop.xlane.xlu0 %2091 }
 0x200   : > { %v2101_v53 = vmul.f32 0.0078125, %v2092_v50  ;;  %v3596_v50 = vld [vmem:[%s5930_s7 + $0x78] sm:$0xff]  }
 0x202   : > { %v2109_v10 = vadd.f32 1e-06, %v2101_v53  ;;  %v3599_v53 = vld [vmem:[%s5930_s7 + $0xb8] sm:$0xff]  }
 0x20b   : > { %v2086_v15 = vpop.xlane.xlu1 %2085 }
 0x20c   : > { %v2098_v19 = vmul.f32 0.0078125, %v2086_v15  ;;  %v3592_v15 = vld [vmem:[%s5930_s7 + $0x70] sm:$0xff]  }
 0x20e   : > { %v2106_v59 = vadd.f32 1e-06, %v2098_v19  ;;  %v3593_v19 = vld [vmem:[%s5930_s7 + $0xf0] sm:$0xff]  }
 0x20f   : > { %v2090_v26 = vpop.xlane.xlu1 %2089 }
 0x210   : > { %3606 = vrsqrt.f32 %v2106_v59  ;;  %v2100_v45 = vmul.f32 0.0078125, %v2090_v26  ;;  %v3595_v59 = vld [vmem:[%s5930_s7 + $0xb0] sm:$0xff]   ;;  %v3597_v26 = vld [vmem:[%s5930_s7 + $0xf8] sm:$0xff]  }
 0x211   : > { %3608 = vrsqrt.f32 %v2107_v3  ;;  %v3594_v3 = vld [vmem:[%s5930_s7 + $0x30] sm:$0xff]  }
 0x212   : > { %v2108_v7 = vadd.f32 1e-06, %v2100_v45  ;;  %v3598_v45 = vld [vmem:[%s5930_s7 + $0x38] sm:$0xff]  }
 0x213   : > { %v2094_v61 = vpop.xlane.xlu1 %2093 }
 0x214   : > { %3610 = vrsqrt.f32 %v2108_v7  ;;  %v2102_v18 = vmul.f32 0.0078125, %v2094_v61  ;;  %v2193_v7 = vlaneseq }
 0x216   : > { %v2110_v51 = vadd.f32 1e-06, %v2102_v18  ;;  %v2194_v61 = vshrl.u32 %v2193_v7, 7 }
 0x218   : > { %3612 = vrsqrt.f32 %v2110_v51  ;;  %v2195_v0 = vsub.s32 0, %v2194_v61  ;;  %v2203_v18 = vsub.s32 2, %v2194_v61  ;;  %v2199_v51 = vsub.s32 1, %v2194_v61 }
 0x219   : > { %3614 = vrsqrt.f32 %v2109_v10  ;;  %v2191_v10 = vld [vmem:[%s5929_s6] sm:$0xf]  ;;  %v2207_v60 = vsub.s32 3, %v2194_v61 }
 0x21a   : > { %v3607_v21 = vpop.eup %3606  ;;  %v5585_v39 = vrot.slane %v2191_v10, %v2199_v51 }
 0x21b   : > { %v2122_v6 = vmul.f32 %v3607_v21, %v5390_v47  ;;  %v3609_v41 = vpop.eup %3608  ;;  %v5581_v21 = vrot.slane %v2191_v10, %v2195_v0 }
 0x21c   : > { %v2123_v55 = vmul.f32 %v3609_v41, %v5350_v5  ;;  %v5587_v41 = vrot.slane %v2191_v10, %v2207_v60 }
 0x21d   : > { %v2136_v20 = vmul.f32 %v5446_v33, %v2122_v6  ;;  %v5583_v6 = vrot.slane %v2191_v10, %v2203_v18 }
 0x21e   : > { %v3611_v2 = vpop.eup %3610  ;;  %v2137_v47 = vmul.f32 %v5446_v33, %v2123_v55 }
 0x21f   : > { %v2150_v63 = vadd.f32 %v5453_v4, %v2136_v20  ;;  %v2124_v38 = vmul.f32 %v3611_v2, %v5395_v16 }
 0x220   : > { %v2151_v5 = vadd.f32 %v5453_v4, %v2137_v47 }
 0x221   : > { %v2156_v23 = vpack.c.bf16 %v2150_v63, %v2149_v12  ;;  %v2138_v36 = vmul.f32 %v5446_v33, %v2124_v38 }
 0x222   : > { %v3613_v9 = vpop.eup %3612 }
 0x223   : > { %2416 = vmatmul.mubr.bf16.gmra.mrb[4].mxu0 %v2156_v23  ;;  %2489 = vmatmul.mubr.bf16.gmra.mrb[4].mxu1 %v2156_v23  ;;  %v3615_v37 = vpop.eup %3614  ;;  %v2152_v8 = vadd.f32 %v5453_v4, %v2138_v36  ;;  %v2126_v52 = vmul.f32 %v3613_v9, %v5400_v62 }
 0x224   : > { %2425 = vmatprep.mubr.bf16.mxu0 %v3723_v28  ;;  %2498 = vmatprep.mubr.bf16.mxu1 %v3723_v28  ;;  %v2125_v16 = vmul.f32 %v3615_v37, %v5385_v11  ;;  %v3568_v11 = vld [vmem:[%s5930_s7 + $0x40] sm:$0xff]  }
 0x225   : > { %v2157_v30 = vpack.c.bf16 %v2152_v8, %v2151_v5  ;;  %v2140_v14 = vmul.f32 %v5446_v33, %v2126_v52  ;;  %3430 = vmatprep.subr.bf16.mxu0 %v3568_v11 }
 0x226   : > { %v2139_v57 = vmul.f32 %v5446_v33, %v2125_v16  ;;  %3431 = vmatpush3.bf16.msra.mxu0 %v3570_v24  ;;  %v3578_v33 = vld [vmem:[%s5930_s7 + $0x10] sm:$0xff]  }
 0x227   : > { %v2154_v1 = vadd.f32 %v5453_v4, %v2140_v14  ;;  %3432 = vmatprep.subr.bf16.mxu0 %v3572_v42 }
 0x228   : > { %v2153_v29 = vadd.f32 %v5453_v4, %v2139_v57  ;;  %v3582_v4 = vld [vmem:[%s5930_s7 + $0x18] sm:$0xff]  }
 0x22a   : > { %v2158_v62 = vpack.c.bf16 %v2154_v1, %v2153_v29  ;;  %3433 = vmatpush3.bf16.msra.mxu0 %v3574_v54 }
 0x22b   : > { %2426 = vmatmul.mubr.bf16.gmra.mrb[8].mxu0 %v2157_v30  ;;  %2499 = vmatmul.mubr.bf16.gmra.mrb[8].mxu1 %v2157_v30 }
 0x22c   : > { %2435 = vmatprep.mubr.bf16.mxu0 %v3723_v28  ;;  %2508 = vmatprep.mubr.bf16.mxu1 %v3723_v28  ;;  %v3571_v28 = vld [vmem:[%s5930_s7 + $0x80] sm:$0xff]  }
 0x22d   : > { %3471 = vmatpush3.bf16.msra.mxu1 %v3571_v28  ;;  %3434 = vmatprep.subr.bf16.mxu0 %v3576_v43 }
 0x22e   : > { %3472 = vmatprep.subr.bf16.mxu1 %v3573_v44  ;;  %3435 = vmatpush3.bf16.msra.mxu0 %v3578_v33 }
 0x22f   : > { %3436 = vmatprep.subr.bf16.mxu0 %v3580_v49 }
 0x231   : > { %3473 = vmatpush3.bf16.msra.mxu1 %v3575_v40 }
 0x232   : > { %3474 = vmatprep.subr.bf16.mxu1 %v3577_v46  ;;  %3437 = vmatpush3.bf16.msra.mxu0 %v3582_v4 }
 0x233   : > { %2436 = vmatmul.mubr.bf16.gmra.mrb[12].mxu0 %v2158_v62  ;;  %2509 = vmatmul.mubr.bf16.gmra.mrb[12].mxu1 %v2158_v62 }
 0x234   : > { %3438 = vmatprep.subr.bf16.mxu0 %v3584_v56 }
 0x235   : > { %3475 = vmatpush3.bf16.msra.mxu1 %v3579_v22 }
 0x236   : > { %3476 = vmatprep.subr.bf16.mxu1 %v3581_v25  ;;  %3439 = vmatpush3.bf16.msra.mxu0 %v3586_v27 }
 0x237   : > { %3440 = vmatprep.subr.bf16.mxu0 %v3588_v31 }
 0x239   : > { %3477 = vmatpush3.bf16.msra.mxu1 %v3583_v34 }
 0x23a   : > { %3478 = vmatprep.subr.bf16.mxu1 %v3585_v58  ;;  %3441 = vmatpush3.bf16.msra.mxu0 %v3590_v17 }
 0x23b   : > { %3442 = vmatprep.subr.bf16.mxu0 %v3592_v15 }
 0x23d   : > { %3479 = vmatpush3.bf16.msra.mxu1 %v3587_v48 }
 0x23e   : > { %3480 = vmatprep.subr.bf16.mxu1 %v3589_v32  ;;  %3443 = vmatpush3.bf16.msra.mxu0 %v3594_v3 }
 0x23f   : > { %3444 = vmatprep.subr.bf16.mxu0 %v3596_v50 }
 0x241   : > { %3481 = vmatpush3.bf16.msra.mxu1 %v3591_v13 }
 0x242   : > { %3482 = vmatprep.subr.bf16.mxu1 %v3593_v19  ;;  %3445 = vmatpush3.bf16.msra.mxu0 %v3598_v45 }
 0x245   : > { %3483 = vmatpush3.bf16.msra.mxu1 %v3595_v59 }
 0x246   : > { %3484 = vmatprep.subr.bf16.mxu1 %v3597_v26 }
 0x249   : > { %3485 = vmatpush3.bf16.msra.mxu1 %v3599_v53 }
 0x2b2   : > { %v2407_v20 = vpop.f32.mrb[0].mxu0  ;;  %v2480_v2 = vpop.f32.mrb[0].mxu1 }
 0x2b3   : > { %v5590_v12 = vadd.f32 %v2407_v20, %v5581_v21  ;;  %v5593_v63 = vadd.f32 %v2480_v2, %v5583_v6  ;;  %v2409_v55 = vpop.f32.mrb[1].mxu0  ;;  %v2482_v38 = vpop.f32.mrb[1].mxu1 }
 0x2b4   : > { %v5596_v23 = vadd.f32 %v2409_v55, %v5585_v39  ;;  %v5599_v36 = vadd.f32 %v2482_v38, %v5587_v41  ;;  %v2411_v9 = vpop.f32.mrb[2].mxu0  ;;  %v2484_v47 = vpop.f32.mrb[2].mxu1 }
 0x2b5   : > { %v2519_v37 = vmul.f32 %v5590_v12, %v5590_v12  ;;  %v2521_v8 = vmul.f32 %v5593_v63, %v5593_v63  ;;  %v5606_v52 = vadd.f32 %v2411_v9, %v5581_v21  ;;  %v5609_v5 = vadd.f32 %v2484_v47, %v5583_v6  ;;  %v2413_v16 = vpop.f32.mrb[3].mxu0  ;;  %v2486_v30 = vpop.f32.mrb[3].mxu1 }
 0x2b6   : > { %v2520_v14 = vmul.f32 %v5596_v23, %v5596_v23  ;;  %v2522_v57 = vmul.f32 %v5599_v36, %v5599_v36  ;;  %v5616_v1 = vadd.f32 %v2413_v16, %v5585_v39  ;;  %v5619_v29 = vadd.f32 %v2486_v30, %v5587_v41 }
 0x2b7   : > { %v2551_v62 = vmul.f32 %v2519_v37, %v5590_v12  ;;  %v2553_v11 = vmul.f32 %v2521_v8, %v5593_v63  ;;  %v2523_v35 = vmul.f32 %v5606_v52, %v5606_v52  ;;  %v2525_v24 = vmul.f32 %v5609_v5, %v5609_v5 }
 0x2b8   : > { %v2552_v28 = vmul.f32 %v2520_v14, %v5596_v23  ;;  %v2554_v42 = vmul.f32 %v2522_v57, %v5599_v36  ;;  %v2524_v44 = vmul.f32 %v5616_v1, %v5616_v1  ;;  %v2526_v54 = vmul.f32 %v5619_v29, %v5619_v29 }
 0x2b9   : > { %v2583_v40 = vmul.f32 0.044715, %v2551_v62  ;;  %v2585_v43 = vmul.f32 0.044715, %v2553_v11  ;;  %v2555_v46 = vmul.f32 %v2523_v35, %v5606_v52  ;;  %v2557_v33 = vmul.f32 %v2525_v24, %v5609_v5 }
 0x2ba   : > { %v2584_v22 = vmul.f32 0.044715, %v2552_v28  ;;  %v2586_v49 = vmul.f32 0.044715, %v2554_v42  ;;  %v2556_v25 = vmul.f32 %v2524_v44, %v5616_v1  ;;  %v2558_v4 = vmul.f32 %v2526_v54, %v5619_v29 }
 0x2bb   : > { %v2615_v34 = vadd.f32 %v2583_v40, %v5590_v12  ;;  %v2617_v56 = vadd.f32 %v2585_v43, %v5593_v63  ;;  %v2587_v58 = vmul.f32 0.044715, %v2555_v46  ;;  %v2589_v27 = vmul.f32 0.044715, %v2557_v33 }
 0x2bc   : > { %v2616_v48 = vadd.f32 %v2584_v22, %v5596_v23  ;;  %v2618_v31 = vadd.f32 %v2586_v49, %v5599_v36  ;;  %v2588_v32 = vmul.f32 0.044715, %v2556_v25  ;;  %v2590_v17 = vmul.f32 0.044715, %v2558_v4 }
 0x2bd   : > { %v2647_v13 = vmul.f32 0.7978846, %v2615_v34  ;;  %v2649_v15 = vmul.f32 0.7978846, %v2617_v56  ;;  %v2619_v19 = vadd.f32 %v2587_v58, %v5606_v52  ;;  %v2621_v3 = vadd.f32 %v2589_v27, %v5609_v5 }
 0x2be   : > { %v2648_v59 = vmul.f32 0.7978846, %v2616_v48  ;;  %v2650_v50 = vmul.f32 0.7978846, %v2618_v31  ;;  %v2620_v26 = vadd.f32 %v2588_v32, %v5616_v1  ;;  %v2622_v45 = vadd.f32 %v2590_v17, %v5619_v29 }
 0x2bf   : > { %3616 = vtanh.f32 %v2647_v13  ;;  %v2651_v53 = vmul.f32 0.7978846, %v2619_v19  ;;  %v2653_v7 = vmul.f32 0.7978846, %v2621_v3 }
 0x2c0   : > { %3618 = vtanh.f32 %v2649_v15  ;;  %v2652_v61 = vmul.f32 0.7978846, %v2620_v26  ;;  %v2654_v0 = vmul.f32 0.7978846, %v2622_v45 }
 0x2c1   : > { %3620 = vtanh.f32 %v2648_v59 }
 0x2c2   : > { %3622 = vtanh.f32 %v2650_v50 }
 0x2c3   : > { %3624 = vtanh.f32 %v2651_v53 }
 0x2c4   : > { %3626 = vtanh.f32 %v2653_v7 }
 0x2c5   : > { %3628 = vtanh.f32 %v2652_v61 }
 0x2c6   : > { %3630 = vtanh.f32 %v2654_v0 }
 0x2c9   : > { %v3617_v18 = vpop.eup %3616 }
 0x2ca   : > { %v3619_v10 = vpop.eup %3618  ;;  %v2711_v51 = vadd.f32 1.0, %v3617_v18 }
 0x2cb   : > { %v3621_v60 = vpop.eup %3620  ;;  %v2713_v20 = vadd.f32 1.0, %v3619_v10 }
 0x2cc   : > { %v3623_v2 = vpop.eup %3622  ;;  %v2712_v55 = vadd.f32 1.0, %v3621_v60  ;;  %v2743_v37 = vmul.f32 0.5, %v2711_v51 }
 0x2cd   : > { %v3625_v38 = vpop.eup %3624  ;;  %v2714_v9 = vadd.f32 1.0, %v3623_v2  ;;  %v2745_v30 = vmul.f32 0.5, %v2713_v20 }
 0x2ce   : > { %v3627_v47 = vpop.eup %3626  ;;  %v2715_v8 = vadd.f32 1.0, %v3625_v38  ;;  %v2744_v35 = vmul.f32 0.5, %v2712_v55  ;;  %v2775_v44 = vmul.f32 %v2743_v37, %v5590_v12 }
 0x2cf   : > { %v3629_v16 = vpop.eup %3628  ;;  %v2717_v14 = vadd.f32 1.0, %v3627_v47  ;;  %v2746_v42 = vmul.f32 0.5, %v2714_v9  ;;  %v2777_v43 = vmul.f32 %v2745_v30, %v5593_v63 }
 0x2d0   : > { %v3631_v57 = vpop.eup %3630  ;;  %v2747_v62 = vmul.f32 0.5, %v2715_v8  ;;  %v2716_v11 = vadd.f32 1.0, %v3629_v16  ;;  %v2776_v49 = vmul.f32 %v2744_v35, %v5596_v23 }
 0x2d1   : > { %v2749_v24 = vmul.f32 0.5, %v2717_v14  ;;  %v2718_v28 = vadd.f32 1.0, %v3631_v57  ;;  %v2778_v34 = vmul.f32 %v2746_v42, %v5599_v36 }
 0x2d2   : > { %v2779_v54 = vmul.f32 %v2747_v62, %v5606_v52  ;;  %v2748_v40 = vmul.f32 0.5, %v2716_v11 }
 0x2d3   : > { %v2781_v46 = vmul.f32 %v2749_v24, %v5609_v5  ;;  %v2750_v33 = vmul.f32 0.5, %v2718_v28 }
 0x2d4   : > { %v2807_v22 = vpack.c.bf16 %v2779_v54, %v2775_v44  ;;  %v2780_v25 = vmul.f32 %v2748_v40, %v5616_v1 }
 0x2d5   : > { %v2809_v4 = vpack.c.bf16 %v2781_v46, %v2777_v43  ;;  %v2782_v56 = vmul.f32 %v2750_v33, %v5619_v29 }
 0x2d6   : > { %v2808_v58 = vpack.c.bf16 %v2780_v25, %v2776_v49 }
 0x2d7   : > { %v2810_v12 = vpack.c.bf16 %v2782_v56, %v2778_v34 }
 0x2d8   : > { %3118 = vmatprep.mubr.bf16.mxu0 %v2808_v58 }
 0x2d9   : > { %3183 = vmatprep.mubr.bf16.mxu1 %v2810_v12  ;;  %3119 = vmatmul.mubr.bf16.vlgmr.msra.gmra.mrb[16].mxu0 %v2807_v22 }
 0x2da   : > { %3184 = vmatmul.mubr.bf16.vlgmr.msra.gmra.mrb[16].mxu1 %v2809_v4 }
 0x2f6   : > { %v2417_v63 = vpop.f32.mrb[4].mxu0  ;;  %v2490_v52 = vpop.f32.mrb[4].mxu1 }
 0x2f7   : > { %v5654_v5 = vadd.f32 %v2417_v63, %v5581_v21  ;;  %v5657_v23 = vadd.f32 %v2490_v52, %v5583_v6  ;;  %v2419_v1 = vpop.f32.mrb[5].mxu0  ;;  %v2492_v27 = vpop.f32.mrb[5].mxu1 }
 0x2f8   : > { %v5660_v36 = vadd.f32 %v2419_v1, %v5585_v39  ;;  %v5663_v29 = vadd.f32 %v2492_v27, %v5587_v41  ;;  %v2421_v48 = vpop.f32.mrb[6].mxu0  ;;  %v2494_v31 = vpop.f32.mrb[6].mxu1 }
 0x2f9   : > { %v2527_v32 = vmul.f32 %v5654_v5, %v5654_v5  ;;  %v2529_v17 = vmul.f32 %v5657_v23, %v5657_v23  ;;  %v5670_v13 = vadd.f32 %v2421_v48, %v5581_v21  ;;  %v5673_v15 = vadd.f32 %v2494_v31, %v5583_v6  ;;  %v2423_v19 = vpop.f32.mrb[7].mxu0  ;;  %v2496_v3 = vpop.f32.mrb[7].mxu1 }
 0x2fa   : > { %v2528_v59 = vmul.f32 %v5660_v36, %v5660_v36  ;;  %v2530_v50 = vmul.f32 %v5663_v29, %v5663_v29  ;;  %v5680_v26 = vadd.f32 %v2423_v19, %v5585_v39  ;;  %v5683_v45 = vadd.f32 %v2496_v3, %v5587_v41 }
 0x2fb   : > { %v2559_v53 = vmul.f32 %v2527_v32, %v5654_v5  ;;  %v2561_v7 = vmul.f32 %v2529_v17, %v5657_v23  ;;  %v2531_v61 = vmul.f32 %v5670_v13, %v5670_v13  ;;  %v2533_v0 = vmul.f32 %v5673_v15, %v5673_v15 }
 0x2fc   : > { %v2560_v18 = vmul.f32 %v2528_v59, %v5660_v36  ;;  %v2562_v10 = vmul.f32 %v2530_v50, %v5663_v29  ;;  %v2532_v51 = vmul.f32 %v5680_v26, %v5680_v26  ;;  %v2534_v60 = vmul.f32 %v5683_v45, %v5683_v45 }
 0x2fd   : > { %v2591_v20 = vmul.f32 0.044715, %v2559_v53  ;;  %v2593_v2 = vmul.f32 0.044715, %v2561_v7  ;;  %v2563_v55 = vmul.f32 %v2531_v61, %v5670_v13  ;;  %v2565_v38 = vmul.f32 %v2533_v0, %v5673_v15 }
 0x2fe   : > { %v2592_v9 = vmul.f32 0.044715, %v2560_v18  ;;  %v2594_v47 = vmul.f32 0.044715, %v2562_v10  ;;  %v2564_v37 = vmul.f32 %v2532_v51, %v5680_v26  ;;  %v2566_v8 = vmul.f32 %v2534_v60, %v5683_v45  ;;  %v2427_v16 = vpop.f32.mrb[8].mxu0  ;;  %v2500_v30 = vpop.f32.mrb[8].mxu1 }
 0x2ff   : > { %v2623_v14 = vadd.f32 %v2591_v20, %v5654_v5  ;;  %v2625_v57 = vadd.f32 %v2593_v2, %v5657_v23  ;;  %v2595_v62 = vmul.f32 0.044715, %v2563_v55  ;;  %v2597_v11 = vmul.f32 0.044715, %v2565_v38  ;;  %v2429_v35 = vpop.f32.mrb[9].mxu0  ;;  %v2502_v24 = vpop.f32.mrb[9].mxu1 }
 0x300   : > { %v2624_v28 = vadd.f32 %v2592_v9, %v5660_v36  ;;  %v2626_v42 = vadd.f32 %v2594_v47, %v5663_v29  ;;  %v2596_v44 = vmul.f32 0.044715, %v2564_v37  ;;  %v2598_v54 = vmul.f32 0.044715, %v2566_v8  ;;  %v2431_v40 = vpop.f32.mrb[10].mxu0  ;;  %v2504_v43 = vpop.f32.mrb[10].mxu1 }
 0x301   : > { %v2655_v46 = vmul.f32 0.7978846, %v2623_v14  ;;  %v2657_v33 = vmul.f32 0.7978846, %v2625_v57  ;;  %v2627_v22 = vadd.f32 %v2595_v62, %v5670_v13  ;;  %v2629_v49 = vadd.f32 %v2597_v11, %v5673_v15  ;;  %v2433_v25 = vpop.f32.mrb[11].mxu0  ;;  %v2506_v4 = vpop.f32.mrb[11].mxu1 }
 0x302   : > { %v2656_v34 = vmul.f32 0.7978846, %v2624_v28  ;;  %v2658_v56 = vmul.f32 0.7978846, %v2626_v42  ;;  %v2628_v58 = vadd.f32 %v2596_v44, %v5680_v26  ;;  %v2630_v12 = vadd.f32 %v2598_v54, %v5683_v45 }
 0x303   : > { %3632 = vtanh.f32 %v2655_v46  ;;  %v2659_v63 = vmul.f32 0.7978846, %v2627_v22  ;;  %v2661_v52 = vmul.f32 0.7978846, %v2629_v49  ;;  %v5710_v1 = vadd.f32 %v2427_v16, %v5581_v21 }
 0x304   : > { %3634 = vtanh.f32 %v2657_v33  ;;  %v2660_v27 = vmul.f32 0.7978846, %v2628_v58  ;;  %v2662_v48 = vmul.f32 0.7978846, %v2630_v12  ;;  %v5713_v31 = vadd.f32 %v2500_v30, %v5583_v6 }
 0x305   : > { %3636 = vtanh.f32 %v2656_v34  ;;  %v2535_v32 = vmul.f32 %v5710_v1, %v5710_v1  ;;  %v5718_v17 = vadd.f32 %v2429_v35, %v5585_v39  ;;  %v5721_v19 = vadd.f32 %v2502_v24, %v5587_v41 }
 0x306   : > { %3638 = vtanh.f32 %v2658_v56  ;;  %v2537_v3 = vmul.f32 %v5713_v31, %v5713_v31  ;;  %v5726_v59 = vadd.f32 %v2431_v40, %v5581_v21  ;;  %v5729_v50 = vadd.f32 %v2504_v43, %v5583_v6  ;;  %v2437_v53 = vpop.f32.mrb[12].mxu0  ;;  %v2510_v7 = vpop.f32.mrb[12].mxu1 }
 0x307   : > { %3640 = vtanh.f32 %v2659_v63  ;;  %v2567_v61 = vmul.f32 %v2535_v32, %v5710_v1  ;;  %v2536_v0 = vmul.f32 %v5718_v17, %v5718_v17  ;;  %v2538_v18 = vmul.f32 %v5721_v19, %v5721_v19  ;;  %v2439_v10 = vpop.f32.mrb[13].mxu0  ;;  %v2512_v51 = vpop.f32.mrb[13].mxu1 }
 0x308   : > { %3642 = vtanh.f32 %v2661_v52  ;;  %v2569_v60 = vmul.f32 %v2537_v3, %v5713_v31  ;;  %v2539_v20 = vmul.f32 %v5726_v59, %v5726_v59  ;;  %v2541_v2 = vmul.f32 %v5729_v50, %v5729_v50  ;;  %v5741_v55 = vpop.f32.mrb[14].mxu0  ;;  %v5743_v38 = vpop.f32.mrb[14].mxu1 }
 0x309   : > { %3644 = vtanh.f32 %v2660_v27  ;;  %v2599_v9 = vmul.f32 0.044715, %v2567_v61  ;;  %v2568_v47 = vmul.f32 %v2536_v0, %v5718_v17  ;;  %v2570_v37 = vmul.f32 %v2538_v18, %v5721_v19  ;;  %v5747_v8 = vpop.f32.mrb[15].mxu0  ;;  %v5749_v16 = vpop.f32.mrb[15].mxu1 }
 0x30a   : > { %3646 = vtanh.f32 %v2662_v48  ;;  %v2601_v30 = vmul.f32 0.044715, %v2569_v60  ;;  %v2571_v14 = vmul.f32 %v2539_v20, %v5726_v59  ;;  %v2573_v57 = vmul.f32 %v2541_v2, %v5729_v50 }
 0x30b   : > { %v2631_v62 = vadd.f32 %v2599_v9, %v5710_v1  ;;  %v2600_v11 = vmul.f32 0.044715, %v2568_v47  ;;  %v2602_v35 = vmul.f32 0.044715, %v2570_v37  ;;  %v5755_v24 = vadd.f32 %v2433_v25, %v5585_v39 }
 0x30c   : > { %v2633_v28 = vadd.f32 %v2601_v30, %v5713_v31  ;;  %v2603_v42 = vmul.f32 0.044715, %v2571_v14  ;;  %v2605_v44 = vmul.f32 0.044715, %v2573_v57  ;;  %v5759_v54 = vadd.f32 %v2506_v4, %v5587_v41 }
 0x30d   : > { %v5761_v40 = vpop.eup %3632  ;;  %v2663_v43 = vmul.f32 0.7978846, %v2631_v62  ;;  %v2632_v46 = vadd.f32 %v2600_v11, %v5718_v17  ;;  %v2634_v33 = vadd.f32 %v2602_v35, %v5721_v19  ;;  %v2540_v22 = vmul.f32 %v5755_v24, %v5755_v24 }
 0x30e   : > { %v5767_v49 = vpop.eup %3634  ;;  %v2665_v25 = vmul.f32 0.7978846, %v2633_v28  ;;  %v2635_v34 = vadd.f32 %v2603_v42, %v5726_v59  ;;  %v2637_v56 = vadd.f32 %v2605_v44, %v5729_v50  ;;  %v2542_v4 = vmul.f32 %v5759_v54, %v5759_v54 }
 0x30f   : > { %v5773_v58 = vpop.eup %3636  ;;  %3648 = vtanh.f32 %v2663_v43  ;;  %v2664_v12 = vmul.f32 0.7978846, %v2632_v46  ;;  %v2666_v63 = vmul.f32 0.7978846, %v2634_v33  ;;  %v2572_v52 = vmul.f32 %v2540_v22, %v5755_v24 }
 0x310   : > { %v5776_v27 = vpop.eup %3638  ;;  %3650 = vtanh.f32 %v2665_v25  ;;  %v2667_v48 = vmul.f32 0.7978846, %v2635_v34  ;;  %v2669_v32 = vmul.f32 0.7978846, %v2637_v56  ;;  %v2574_v3 = vmul.f32 %v2542_v4, %v5759_v54 }
 0x311   : > { %v5779_v61 = vpop.eup %3640  ;;  %3652 = vtanh.f32 %v2664_v12  ;;  %v2604_v0 = vmul.f32 0.044715, %v2572_v52  ;;  %v5782_v18 = vadd.f32 %v2437_v53, %v5581_v21  ;;  %v5785_v60 = vadd.f32 %v2510_v7, %v5583_v6 }
 0x312   : > { %v5787_v20 = vpop.eup %3642  ;;  %3654 = vtanh.f32 %v2666_v63  ;;  %v2606_v2 = vmul.f32 0.044715, %v2574_v3  ;;  %v5790_v9 = vadd.f32 %v2439_v10, %v5585_v39  ;;  %v5793_v47 = vadd.f32 %v2512_v51, %v5587_v41 }
 0x313   : > { %v3645_v37 = vpop.eup %3644  ;;  %3656 = vtanh.f32 %v2667_v48  ;;  %v2636_v30 = vadd.f32 %v2604_v0, %v5755_v24  ;;  %v2543_v53 = vmul.f32 %v5782_v18, %v5782_v18  ;;  %v2545_v7 = vmul.f32 %v5785_v60, %v5785_v60 }
 0x314   : > { %v5800_v14 = vpop.eup %3646  ;;  %3658 = vtanh.f32 %v2669_v32  ;;  %v2638_v57 = vadd.f32 %v2606_v2, %v5759_v54  ;;  %v2544_v10 = vmul.f32 %v5790_v9, %v5790_v9  ;;  %v2546_v51 = vmul.f32 %v5793_v47, %v5793_v47 }
 0x315   : > { %v2668_v62 = vmul.f32 0.7978846, %v2636_v30  ;;  %v2575_v11 = vmul.f32 %v2543_v53, %v5782_v18  ;;  %v2577_v35 = vmul.f32 %v2545_v7, %v5785_v60  ;;  %v5811_v28 = vadd.f32 %v5741_v55, %v5581_v21 }
 0x316   : > { %v2670_v42 = vmul.f32 0.7978846, %v2638_v57  ;;  %v2576_v44 = vmul.f32 %v2544_v10, %v5790_v9  ;;  %v2578_v43 = vmul.f32 %v2546_v51, %v5793_v47  ;;  %v5817_v46 = vadd.f32 %v5743_v38, %v5583_v6 }
 0x317   : > { %3660 = vtanh.f32 %v2668_v62  ;;  %v2607_v33 = vmul.f32 0.044715, %v2575_v11  ;;  %v2609_v22 = vmul.f32 0.044715, %v2577_v35  ;;  %v2547_v25 = vmul.f32 %v5811_v28, %v5811_v28 }
 0x318   : > { %3662 = vtanh.f32 %v2670_v42  ;;  %v2608_v34 = vmul.f32 0.044715, %v2576_v44  ;;  %v2610_v56 = vmul.f32 0.044715, %v2578_v43  ;;  %v2549_v21 = vmul.f32 %v5817_v46, %v5817_v46 }
 0x319   : > { %v5823_v55 = vpop.eup %3648  ;;  %v2639_v4 = vadd.f32 %v2607_v33, %v5782_v18  ;;  %v2641_v12 = vadd.f32 %v2609_v22, %v5785_v60  ;;  %v2579_v6 = vmul.f32 %v2547_v25, %v5811_v28  ;;  %v5830_v38 = vadd.f32 %v5747_v8, %v5585_v39 }
 0x31a   : > { %v5832_v63 = vpop.eup %3650  ;;  %v2640_v52 = vadd.f32 %v2608_v34, %v5790_v9  ;;  %v2642_v48 = vadd.f32 %v2610_v56, %v5793_v47  ;;  %v2581_v32 = vmul.f32 %v2549_v21, %v5817_v46  ;;  %v5839_v3 = vadd.f32 %v5749_v16, %v5587_v41 }
 0x31b   : > { %v3653_v0 = vpop.eup %3652  ;;  %v2671_v2 = vmul.f32 0.7978846, %v2639_v4  ;;  %v2673_v30 = vmul.f32 0.7978846, %v2641_v12  ;;  %v2611_v53 = vmul.f32 0.044715, %v2579_v6  ;;  %v2548_v39 = vmul.f32 %v5830_v38, %v5830_v38 }
 0x31c   : > { %v3655_v8 = vpop.eup %3654  ;;  %v2672_v7 = vmul.f32 0.7978846, %v2640_v52  ;;  %v2674_v57 = vmul.f32 0.7978846, %v2642_v48  ;;  %v2613_v10 = vmul.f32 0.044715, %v2581_v32  ;;  %v2550_v51 = vmul.f32 %v5839_v3, %v5839_v3 }
 0x31d   : > { %v5845_v62 = vpop.eup %3656  ;;  %3664 = vtanh.f32 %v2671_v2  ;;  %v2643_v41 = vadd.f32 %v2611_v53, %v5811_v28  ;;  %v2580_v16 = vmul.f32 %v2548_v39, %v5830_v38  ;;  %v2720_v11 = vadd.f32 1.0, %v5773_v58 }
 0x31e   : > { %v5850_v35 = vpop.eup %3658  ;;  %3666 = vtanh.f32 %v2673_v30  ;;  %v2645_v42 = vadd.f32 %v2613_v10, %v5817_v46  ;;  %v2582_v44 = vmul.f32 %v2550_v51, %v5839_v3  ;;  %v2724_v43 = vadd.f32 1.0, %v3645_v37 }
 0x31f   : > { %3668 = vtanh.f32 %v2672_v7  ;;  %v2675_v33 = vmul.f32 0.7978846, %v2643_v41  ;;  %v2612_v22 = vmul.f32 0.044715, %v2580_v16  ;;  %v2752_v25 = vmul.f32 0.5, %v2720_v11 }
 0x320   : > { %3670 = vtanh.f32 %v2674_v57  ;;  %v2677_v34 = vmul.f32 0.7978846, %v2645_v42  ;;  %v2614_v56 = vmul.f32 0.044715, %v2582_v44  ;;  %v2756_v21 = vmul.f32 0.5, %v2724_v43 }
 0x321   : > { %v3661_v4 = vpop.eup %3660  ;;  %3672 = vtanh.f32 %v2675_v33  ;;  %v2644_v58 = vadd.f32 %v2612_v22, %v5830_v38  ;;  %v2784_v12 = vmul.f32 %v2752_v25, %v5660_v36  ;;  %v2722_v6 = vadd.f32 1.0, %v5776_v27 }
 0x322   : > { %v3663_v52 = vpop.eup %3662  ;;  %3674 = vtanh.f32 %v2677_v34  ;;  %v2646_v37 = vadd.f32 %v2614_v56, %v5839_v3  ;;  %v2788_v48 = vmul.f32 %v2756_v21, %v5680_v26  ;;  %v2726_v32 = vadd.f32 1.0, %v5800_v14 }
 0x323   : > { %v2676_v2 = vmul.f32 0.7978846, %v2644_v58  ;;  %v2754_v30 = vmul.f32 0.5, %v2722_v6  ;;  %v2719_v53 = vadd.f32 1.0, %v5761_v40  ;;  %v2723_v39 = vadd.f32 1.0, %v5779_v61 }
 0x324   : > { %v2678_v7 = vmul.f32 0.7978846, %v2646_v37  ;;  %v2812_v57 = vpack.c.bf16 %v2788_v48, %v2784_v12  ;;  %v2758_v10 = vmul.f32 0.5, %v2726_v32  ;;  %v2721_v36 = vadd.f32 1.0, %v5767_v49 }
 0x325   : > { %3676 = vtanh.f32 %v2676_v2  ;;  %v2786_v27 = vmul.f32 %v2754_v30, %v5663_v29  ;;  %v2751_v51 = vmul.f32 0.5, %v2719_v53  ;;  %v2755_v41 = vmul.f32 0.5, %v2723_v39 }
 0x326   : > { %3678 = vtanh.f32 %v2678_v7  ;;  %3126 = vmatprep.mubr.bf16.mxu0 %v2812_v57  ;;  %v2790_v26 = vmul.f32 %v2758_v10, %v5683_v45  ;;  %v2725_v14 = vadd.f32 1.0, %v5787_v20  ;;  %v2753_v16 = vmul.f32 0.5, %v2721_v36 }
 0x327   : > { %v3665_v40 = vpop.eup %3664  ;;  %v2783_v61 = vmul.f32 %v2751_v51, %v5654_v5  ;;  %v2787_v11 = vmul.f32 %v2755_v41, %v5670_v13  ;;  %v2728_v42 = vadd.f32 1.0, %v3653_v0  ;;  %v2732_v44 = vadd.f32 1.0, %v3661_v4 }
 0x328   : > { %v3667_v49 = vpop.eup %3666  ;;  %v2814_v43 = vpack.c.bf16 %v2790_v26, %v2786_v27  ;;  %v2757_v33 = vmul.f32 0.5, %v2725_v14  ;;  %v2785_v29 = vmul.f32 %v2753_v16, %v5657_v23  ;;  %v2730_v22 = vadd.f32 1.0, %v3655_v8 }
 0x329   : > { %v3669_v25 = vpop.eup %3668  ;;  %v2811_v34 = vpack.c.bf16 %v2787_v11, %v2783_v61  ;;  %v2760_v56 = vmul.f32 0.5, %v2728_v42  ;;  %v2764_v45 = vmul.f32 0.5, %v2732_v44  ;;  %v2734_v21 = vadd.f32 1.0, %v3663_v52 }
 0x32a   : > { %v3671_v20 = vpop.eup %3670  ;;  %3191 = vmatprep.mubr.bf16.mxu1 %v2814_v43  ;;  %v2789_v58 = vmul.f32 %v2757_v33, %v5673_v15  ;;  %v2762_v5 = vmul.f32 0.5, %v2730_v22  ;;  %v2727_v13 = vadd.f32 1.0, %v5823_v55  ;;  %v2731_v0 = vadd.f32 1.0, %v5845_v62 }
 0x32b   : > { %v3673_v4 = vpop.eup %3672  ;;  %3127 = vmatmul.mubr.bf16.gmra.mrb[20].mxu0 %v2811_v34  ;;  %v2792_v12 = vmul.f32 %v2760_v56, %v5718_v17  ;;  %v2796_v23 = vmul.f32 %v2764_v45, %v5755_v24  ;;  %v2766_v8 = vmul.f32 0.5, %v2734_v21  ;;  %v2729_v6 = vadd.f32 1.0, %v5832_v63 }
 0x32c   : > { %v3675_v37 = vpop.eup %3674  ;;  %v2813_v52 = vpack.c.bf16 %v2789_v58, %v2785_v29  ;;  %v2794_v48 = vmul.f32 %v2762_v5, %v5721_v19  ;;  %v2759_v32 = vmul.f32 0.5, %v2727_v13  ;;  %v2763_v15 = vmul.f32 0.5, %v2731_v0 }
 0x32d   : > { %v2816_v2 = vpack.c.bf16 %v2796_v23, %v2792_v12  ;;  %v2798_v55 = vmul.f32 %v2766_v8, %v5759_v54  ;;  %v2733_v62 = vadd.f32 1.0, %v5850_v35  ;;  %v2761_v30 = vmul.f32 0.5, %v2729_v6  ;;  %v5899_v12 = vld [vmem:[%s5932_s9] ss:$0 sm:$0xff] }
 0x32e   : > { %3192 = vmatmul.mubr.bf16.gmra.mrb[20].mxu1 %v2813_v52  ;;  %v2791_v17 = vmul.f32 %v2759_v32, %v5710_v1  ;;  %v2795_v24 = vmul.f32 %v2763_v15, %v5726_v59  ;;  %v2736_v53 = vadd.f32 1.0, %v3669_v25  ;;  %v2738_v39 = vadd.f32 1.0, %v3671_v20  ;;  %v3706_v32 = vld [vmem:[#allocation2 + $0x8] sm:$0xff] }
 0x32f   : > { %v3677_v63 = vpop.eup %3676  ;;  %3134 = vmatprep.mubr.bf16.mxu0 %v2816_v2  ;;  %v2818_v7 = vpack.c.bf16 %v2798_v55, %v2794_v48  ;;  %v2765_v57 = vmul.f32 0.5, %v2733_v62  ;;  %v2793_v19 = vmul.f32 %v2761_v30, %v5713_v31  ;;  %v2735_v10 = vadd.f32 1.0, %v3665_v40  ;;  %v3707_v2 = vld [vmem:[#allocation2 + $0x20] sm:$0xff] }
 0x330   : > { %v3679_v36 = vpop.eup %3678  ;;  %v2815_v27 = vpack.c.bf16 %v2795_v24, %v2791_v17  ;;  %v2740_v54 = vadd.f32 1.0, %v3677_v63  ;;  %v2768_v51 = vmul.f32 0.5, %v2736_v53  ;;  %v2770_v35 = vmul.f32 0.5, %v2738_v39 }
 0x331   : > { %3199 = vmatprep.mubr.bf16.mxu1 %v2818_v7  ;;  %v2797_v41 = vmul.f32 %v2765_v57, %v5729_v50  ;;  %v2742_v1 = vadd.f32 1.0, %v3679_v36  ;;  %v2739_v26 = vadd.f32 1.0, %v3673_v4  ;;  %v2767_v59 = vmul.f32 0.5, %v2735_v10 }
 0x332   : > { %v2772_v14 = vmul.f32 0.5, %v2740_v54  ;;  %v2737_v16 = vadd.f32 1.0, %v3667_v49  ;;  %v2800_v31 = vmul.f32 %v2768_v51, %v5790_v9  ;;  %v2741_v44 = vadd.f32 1.0, %v3675_v37 }
 0x333   : > { %3135 = vmatmul.mubr.bf16.gmra.mrb[24].mxu0 %v2815_v27  ;;  %v2817_v61 = vpack.c.bf16 %v2797_v41, %v2793_v19  ;;  %v2774_v11 = vmul.f32 0.5, %v2742_v1  ;;  %v2771_v42 = vmul.f32 0.5, %v2739_v26  ;;  %v2802_v33 = vmul.f32 %v2770_v35, %v5793_v47 }
 0x334   : > { %v2804_v40 = vmul.f32 %v2772_v14, %v5830_v38  ;;  %v2769_v43 = vmul.f32 0.5, %v2737_v16  ;;  %v2799_v50 = vmul.f32 %v2767_v59, %v5782_v18  ;;  %v2773_v25 = vmul.f32 0.5, %v2741_v44  ;;  %v5893_v18 = vld [vmem:[%s5931_s8] ss:$0 sm:$0xff] }
 0x335   : > { %v2806_v29 = vmul.f32 %v2774_v11, %v5839_v3  ;;  %v2803_v22 = vmul.f32 %v2771_v42, %v5811_v28 }
 0x336   : > { %3200 = vmatmul.mubr.bf16.gmra.mrb[24].mxu1 %v2817_v61  ;;  %v2820_v49 = vpack.c.bf16 %v2804_v40, %v2800_v31  ;;  %v2801_v9 = vmul.f32 %v2769_v43, %v5785_v60  ;;  %v2805_v38 = vmul.f32 %v2773_v25, %v5817_v46  ;;  %v3708_v61 = vld [vmem:[#allocation2 + $0x38] sm:$0xff] }
 0x337   : > { %v2822_v34 = vpack.c.bf16 %v2806_v29, %v2802_v33  ;;  %v2819_v56 = vpack.c.bf16 %v2803_v22, %v2799_v50  ;;  %v3709_v50 = vld [vmem:[#allocation2 + $0x50] sm:$0xff] }
 0x338   : > { %3142 = vmatprep.mubr.bf16.mxu0 %v2820_v49  ;;  %v2821_v45 = vpack.c.bf16 %v2805_v38, %v2801_v9 }
 0x339   : > { %3207 = vmatprep.mubr.bf16.mxu1 %v2822_v34 }
 0x33b   : > { %3143 = vmatmul.mubr.bf16.gmra.mrb[28].mxu0 %v2819_v56 }
 0x33e   : > { %3208 = vmatmul.mubr.bf16.gmra.mrb[28].mxu1 %v2821_v45 }
 0x3ac   : > { %v3446_v47 = vpop.f32.mrb[16].mxu0 }
 0x3ad   : > { %v3486_v3 = vpop.f32.mrb[16].mxu1  ;;  %v3447_v28 = vpop.f32.mrb[17].mxu0 }
 0x3ae   : > { %v3448_v21 = vadd.f32 %v3447_v28, %v3446_v47  ;;  %v3487_v20 = vpop.f32.mrb[17].mxu1  ;;  %v3449_v58 = vpop.f32.mrb[18].mxu0 }
 0x3af   : > { %v3488_v5 = vadd.f32 %v3487_v20, %v3486_v3  ;;  %v3489_v13 = vpop.f32.mrb[18].mxu1  ;;  %v3450_v60 = vpop.f32.mrb[19].mxu0 }
 0x3b0   : > { %v3121_v46 = vadd.f32 %v3448_v21, %v5893_v18  ;;  %v3451_v0 = vadd.f32 %v3450_v60, %v3449_v58  ;;  %v3490_v4 = vpop.f32.mrb[19].mxu1 }
 0x3b1   : > { %v3491_v23 = vadd.f32 %v3490_v4, %v3489_v13 }
 0x3b2   : > { %v3186_v8 = vadd.f32 %v3488_v5, %v3121_v46  ;;  %v3124_v6 = vadd.f32 %v3451_v0, %v5893_v18  ;;  %v3710_v5 = vld [vmem:[#allocation2 + $0x68] sm:$0xff] }
 0x3b4   : > { %v3223_v37 = vmul.f32 %v5899_v12, %v3186_v8  ;;  %v3189_v52 = vadd.f32 %v3491_v23, %v3124_v6 }
 0x3b6   : > { %v3224_v48 = vmul.f32 %v5899_v12, %v3189_v52  ;;  %v3231_v15 = vadd.f32 %v3706_v32, %v3223_v37  ;;  %v3711_v37 = vld [vmem:[#allocation2 + $0x80] sm:$0xff] }
 0x3b8   : > { %v3232_v55 = vadd.f32 %v3707_v2, %v3224_v48 }
 0x3ba   : > { %v3239_v62 = vadd.f32 %v3232_v55, %v3231_v15 }
 0x3fe   : > { %v3452_v30 = vpop.f32.mrb[20].mxu0 }
 0x3ff   : > { %v3453_v17 = vpop.f32.mrb[21].mxu0 }
 0x400   : > { %v3454_v24 = vadd.f32 %v3453_v17, %v3452_v30  ;;  %v3455_v53 = vpop.f32.mrb[22].mxu0 }
 0x401   : > { %v3492_v39 = vpop.f32.mrb[20].mxu1  ;;  %v3456_v63 = vpop.f32.mrb[23].mxu0 }
 0x402   : > { %v3129_v7 = vadd.f32 %v3454_v24, %v5893_v18  ;;  %v3493_v57 = vpop.f32.mrb[21].mxu1  ;;  %v3457_v19 = vadd.f32 %v3456_v63, %v3455_v53  ;;  %v3712_v53 = vld [vmem:[#allocation2 + $0x98] sm:$0xff] }
 0x403   : > { %v3494_v10 = vadd.f32 %v3493_v57, %v3492_v39  ;;  %v3495_v36 = vpop.f32.mrb[22].mxu1  ;;  %v3713_v57 = vld [vmem:[#allocation2 + $0xb0] sm:$0xff] }
 0x404   : > { %v3132_v27 = vadd.f32 %v3457_v19, %v5893_v18  ;;  %v3496_v54 = vpop.f32.mrb[23].mxu1 }
 0x405   : > { %v3194_v51 = vadd.f32 %v3494_v10, %v3129_v7  ;;  %v3497_v35 = vadd.f32 %v3496_v54, %v3495_v36 }
 0x406   : > { %v3458_v41 = vpop.f32.mrb[24].mxu0 }
 0x407   : > { %v3225_v1 = vmul.f32 %v5899_v12, %v3194_v51  ;;  %v3197_v26 = vadd.f32 %v3497_v35, %v3132_v27  ;;  %v3459_v59 = vpop.f32.mrb[25].mxu0 }
 0x408   : > { %v3460_v14 = vadd.f32 %v3459_v59, %v3458_v41  ;;  %v3461_v16 = vpop.f32.mrb[26].mxu0 }
 0x409   : > { %v3233_v11 = vadd.f32 %v3708_v61, %v3225_v1  ;;  %v3226_v42 = vmul.f32 %v5899_v12, %v3197_v26  ;;  %v3498_v31 = vpop.f32.mrb[24].mxu1  ;;  %v3462_v40 = vpop.f32.mrb[27].mxu0 }
 0x40a   : > { %v3137_v44 = vadd.f32 %v3460_v14, %v5893_v18  ;;  %v3499_v43 = vpop.f32.mrb[25].mxu1  ;;  %v3463_v33 = vadd.f32 %v3462_v40, %v3461_v16 }
 0x40b   : > { %v3240_v29 = vadd.f32 %v3239_v62, %v3233_v11  ;;  %v3234_v22 = vadd.f32 %v3709_v50, %v3226_v42  ;;  %v3500_v49 = vadd.f32 %v3499_v43, %v3498_v31  ;;  %v3501_v25 = vpop.f32.mrb[26].mxu1 }
 0x40c   : > { %v3140_v34 = vadd.f32 %v3463_v33, %v5893_v18  ;;  %v3502_v56 = vpop.f32.mrb[27].mxu1 }
 0x40d   : > { %v3241_v9 = vadd.f32 %v3240_v29, %v3234_v22  ;;  %v3202_v38 = vadd.f32 %v3500_v49, %v3137_v44  ;;  %v3503_v45 = vadd.f32 %v3502_v56, %v3501_v25 }
 0x40e   : > { %v3464_v47 = vpop.f32.mrb[28].mxu0 }
 0x40f   : > { %v3227_v3 = vmul.f32 %v5899_v12, %v3202_v38  ;;  %v3205_v28 = vadd.f32 %v3503_v45, %v3140_v34  ;;  %v3465_v21 = vpop.f32.mrb[29].mxu0 }
 0x410   : > { %v3466_v20 = vadd.f32 %v3465_v21, %v3464_v47  ;;  %v3467_v58 = vpop.f32.mrb[30].mxu0 }
 0x411   : > { %v3235_v13 = vadd.f32 %v3710_v5, %v3227_v3  ;;  %v3228_v60 = vmul.f32 %v5899_v12, %v3205_v28  ;;  %v3504_v46 = vpop.f32.mrb[28].mxu1  ;;  %v3468_v0 = vpop.f32.mrb[31].mxu0 }
 0x412   : > { %v3145_v4 = vadd.f32 %v3466_v20, %v5893_v18  ;;  %v3505_v23 = vpop.f32.mrb[29].mxu1  ;;  %v3469_v8 = vadd.f32 %v3468_v0, %v3467_v58 }
 0x413   : > { %v3242_v6 = vadd.f32 %v3241_v9, %v3235_v13  ;;  %v3236_v52 = vadd.f32 %v3711_v37, %v3228_v60  ;;  %v3506_v48 = vadd.f32 %v3505_v23, %v3504_v46  ;;  %v3507_v32 = vpop.f32.mrb[30].mxu1 }
 0x414   : > { %v3148_v15 = vadd.f32 %v3469_v8, %v5893_v18  ;;  %v3508_v2 = vpop.f32.mrb[31].mxu1 }
 0x415   : > { %v3243_v55 = vadd.f32 %v3242_v6, %v3236_v52  ;;  %v3210_v62 = vadd.f32 %v3506_v48, %v3145_v4  ;;  %v3509_v30 = vadd.f32 %v3508_v2, %v3507_v32 }
 0x417   : > { %v3229_v17 = vmul.f32 %v5899_v12, %v3210_v62  ;;  %v3213_v24 = vadd.f32 %v3509_v30, %v3148_v15 }
 0x419   : > { %v3237_v39 = vadd.f32 %v3712_v53, %v3229_v17  ;;  %v3230_v63 = vmul.f32 %v5899_v12, %v3213_v24 }
 0x41b   : > { %v3244_v7 = vadd.f32 %v3243_v55, %v3237_v39  ;;  %v3238_v19 = vadd.f32 %v3713_v57, %v3230_v63 }
 0x41d   : > { %v3245_v10 = vadd.f32 %v3244_v7, %v3238_v19 }
 0x41f   : > { %v3246_v36 = vrot.slane %v3245_v10, 4 }
 0x421   : > { %v3247_v27 = vadd.f32 %v3246_v36, %v3245_v10 }
 0x423   : > { %v3248_v54 = vrot.slane %v3247_v27, 2 }
 0x425   : > { %v3249_v18 = vadd.f32 %v3248_v54, %v3247_v27 }
 0x427   : > { %v3250_v51 = vrot.slane %v3249_v18, 1 }
 0x429   : > { %v3251_v35 = vadd.f32 %v3250_v51, %v3249_v18 }
 0x42b   : > { %v3253_v41 = vmul.f32 0.015625, %v3251_v35 }
 0x42d   : > { %3254 = vst [vmem:[%s355_s30] sm:$0x1] %v3253_v41 }
 0x42e PF: > { %s20_s13 = sadd.s32 1, %s3720_s13  }
 0x42f   : > { %p17_p4 = scmp.ge.s32.totalorder %s20_s13, 4  }
 0x431   :  { %19 = sbr.rel (!%p17_p4) target bundleno = 1 (0x1), region = 139 }

</bundles_post_ra>
